<compile_context>
chip_gen: v6e
topology: v6e:2x2x1
jax: 0.10.0
libtpu: 0.0.40
codegen_flags: <defaults>
</compile_context>

<pallas_src>
import functools

import jax
import jax.numpy as jnp
from jax import lax
from jax.experimental import pallas as pl
from jax.experimental.pallas import tpu as pltpu


def _linear_add_relu_kernel(n, c, h, x_ref, w_ref, b_ref, other_ref, o_ref):
    """Single-invocation kernel (no grid); all operands resident in VMEM.

    x_ref:     (M, K)        f32  flattened activations, M = N*C*H
    w_ref:     (O, K)        f32  Linear weight, PyTorch (out, in) layout
    b_ref:     (1, O)        f32  Linear bias
    other_ref: (C, 1)        f32  channel-wise additive term
    o_ref:     (N, C, H, O)  f32  output
    """
    # MXU matmul, contracting the last dim of both operands (RHS transposed is
    # native to the MXU -> no transpose anywhere).
    y = lax.dot_general(
        x_ref[...], w_ref[...],
        dimension_numbers=(((1,), (1,)), ((), ())),
        preferred_element_type=jnp.float32,
        precision=lax.Precision.HIGHEST,
    )                                                   # (M, O)

    o = y.shape[-1]
    # Split only the leading (sublane) dim: H is a multiple of 8, so this is a
    # free re-grouping of vregs (no tile crossing, no data movement).
    y = y.reshape(n, c, h, o)                           # (N, C, H, O)

    # Fuse bias + channel-wise `other` in-kernel: (C,1) + (1,O) -> (C,O).
    bo = other_ref[...] + b_ref[...]

    # Broadcast over batch and H (sublane broadcast) + ReLU; all VPU filler.
    y = y + bo[None, :, None, :]
    o_ref[...] = jnp.maximum(y, 0.0).astype(o_ref.dtype)


@jax.jit
def model_forward(x, weight, bias, other):
    """x: (N, C, H, K) f32, weight: (O, K), bias: (O,), other: (1, C, 1, 1).

    Returns relu(linear(x) + other) with shape (N, C, H, O).
    """
    N, C, H, K = x.shape
    O = weight.shape[0]
    M = N * C * H

    # Wrapper does only free view-reshapes (no arithmetic, no HBM round trips).
    x_flat = x.reshape(M, K)          # (M, K)  contiguous view
    b2 = bias.reshape(1, O)           # (1, O)  view
    other2 = other.reshape(C, 1)      # (C, 1)  view (leading dims are 1)

    flops = 2 * M * K * O + 3 * M * O
    bytes_accessed = 4 * (M * K + O * K + O + C + M * O)

    kernel = functools.partial(_linear_add_relu_kernel, N, C, H)
    vmem_spec = pl.BlockSpec(memory_space=pltpu.MemorySpace.VMEM)

    out = pl.pallas_call(
        kernel,
        out_shape=jax.ShapeDtypeStruct((N, C, H, O), x.dtype),
        in_specs=[vmem_spec, vmem_spec, vmem_spec, vmem_spec],
        out_specs=vmem_spec,
        cost_estimate=pl.CostEstimate(
            flops=flops, transcendentals=0, bytes_accessed=bytes_accessed),
    )(x_flat, weight, b2, other2)

    return out


if __name__ == "__main__":
    key = jax.random.PRNGKey(0)
    k_x, k_w, k_b, k_o = jax.random.split(key, 4)

    # NOTE: the reference script's x1=(1,32,64,64) is inconsistent with
    # Linear(32, 8) applied over the last dim; K must be 32, so we use a small
    # well-defined shape (1, 32, 16, 32).
    # TODO(synk): confirm whether the original model intended a 1x1-conv-style
    # linear over the channel axis instead of the last dim.
    N, C, H, K, O = 1, 32, 16, 32, 8

    # PyTorch Linear default init: U(-1/sqrt(K), 1/sqrt(K))
    bound = 1.0 / (K ** 0.5)
    weight = jax.random.uniform(k_w, (O, K), jnp.float32, -bound, bound)
    bias = jax.random.uniform(k_b, (O,), jnp.float32, -bound, bound)
    other = jax.random.normal(k_o, (1, C, 1, 1), jnp.float32)
    x1 = jax.random.normal(k_x, (N, C, H, K), jnp.float32)

    out = model_forward(x1, weight, bias, other)
    out = jax.block_until_ready(out)

    # Reference in plain JAX (precision pinned to match the in-kernel matmul).
    ref = jnp.maximum(
        jnp.einsum("nchk,ok->ncho", x1, weight,
                   precision=lax.Precision.HIGHEST) + bias + other, 0.0)
    assert out.shape == (N, C, H, O)
    assert jnp.allclose(out, ref, atol=2e-5, rtol=2e-5)

    print("KERNEL_OK")
</pallas_src>

<mosaic_0001>
module attributes {stable_mosaic.version = 11 : i64} {
  func.func @_linear_add_relu_kernel(%arg0: memref<512x32xf32, #tpu.memory_space<vmem>>, %arg1: memref<8x32xf32, #tpu.memory_space<vmem>>, %arg2: memref<1x8xf32, #tpu.memory_space<vmem>>, %arg3: memref<32x1xf32, #tpu.memory_space<vmem>>, %arg4: memref<1x32x16x8xf32, #tpu.memory_space<vmem>>) attributes {dimension_semantics = [], scalar_prefetch = 0 : i64, scratch_operands = 0 : i64, tpu.core_type = #tpu.core_type<tc>} {
    %c0 = arith.constant 0 : index
    %c0_0 = arith.constant 0 : index
    %0 = vector.load %arg0[%c0, %c0_0] : memref<512x32xf32, #tpu.memory_space<vmem>>, vector<512x32xf32>
    %c0_1 = arith.constant 0 : index
    %c0_2 = arith.constant 0 : index
    %1 = vector.load %arg1[%c0_1, %c0_2] : memref<8x32xf32, #tpu.memory_space<vmem>>, vector<8x32xf32>
    %cst = arith.constant dense<0.000000e+00> : vector<512x8xf32>
    %2 = tpu.matmul %0, %1, %cst {dimension_numbers = #tpu.dot_dimension_numbers<[1], [1], [0], [0], [0, 0, 1, 0], [], []>, precision = #tpu.contract_precision<fp32>} : vector<512x32xf32>, vector<8x32xf32>, vector<512x8xf32> -> vector<512x8xf32>
    %3 = vector.shape_cast %2 : vector<512x8xf32> to vector<1x32x16x8xf32>
    %c0_3 = arith.constant 0 : index
    %c0_4 = arith.constant 0 : index
    %4 = vector.load %arg3[%c0_3, %c0_4] : memref<32x1xf32, #tpu.memory_space<vmem>>, vector<32x1xf32>
    %c0_5 = arith.constant 0 : index
    %c0_6 = arith.constant 0 : index
    %5 = vector.load %arg2[%c0_5, %c0_6] : memref<1x8xf32, #tpu.memory_space<vmem>>, vector<1x8xf32>
    %6 = vector.broadcast %4 : vector<32x1xf32> to vector<32x8xf32>
    %7 = vector.broadcast %5 : vector<1x8xf32> to vector<32x8xf32>
    %8 = arith.addf %6, %7 : vector<32x8xf32>
    %9 = vector.shape_cast %8 : vector<32x8xf32> to vector<1x32x1x8xf32>
    %10 = vector.broadcast %9 : vector<1x32x1x8xf32> to vector<1x32x16x8xf32>
    %11 = arith.addf %3, %10 : vector<1x32x16x8xf32>
    %cst_7 = arith.constant 0.000000e+00 : f32
    %12 = vector.broadcast %cst_7 : f32 to vector<1x32x16x8xf32>
    %13 = arith.maximumf %11, %12 : vector<1x32x16x8xf32>
    %c0_8 = arith.constant 0 : index
    %c0_9 = arith.constant 0 : index
    %c0_10 = arith.constant 0 : index
    %c0_11 = arith.constant 0 : index
    %14 = vector.load %arg4[%c0_8, %c0_9, %c0_10, %c0_11] : memref<1x32x16x8xf32, #tpu.memory_space<vmem>>, vector<1x32x16x8xf32>
    tpu.vector_store %arg4[%c0_8, %c0_9, %c0_10, %c0_11], %13 {strides = array<i32>} : memref<1x32x16x8xf32, #tpu.memory_space<vmem>>, vector<1x32x16x8xf32>,
    return
  }
}

</mosaic_0001>

<bundles_post_ra>
// kernel: model_forward.1
= control target key start
LH: loop header
LB: loop body
LE: loop exit
PB: predicated region body
PF: predicated region fallthrough
CT: control target
= control target key end

     0   :  { %9 = vsyncpa [#allocation3], 0  ;;  %s5048_s15 = smov [#allocation2]   ;;  %s6859_s0 = inlined_call_operand.hbm [shape: f32[512,32], index: 0, kind: input, shape index: {}]   ;;  %s6860_s1 = inlined_call_operand.vmem [shape: f32[8,32], index: 1, kind: input, shape index: {}]   ;;  %s6861_s2 = inlined_call_operand.vmem [shape: f32[1,8], index: 2, kind: input, shape index: {}]   ;;  %s6862_s3 = inlined_call_operand.vmem [shape: f32[32,1], index: 3, kind: input, shape index: {}]   ;;  %s6863_s4 = inlined_call_operand.vmem [shape: f32[1,32,16,8], index: 4, kind: output, shape index: {}]  }
   0x1   :  { %s15_s16 = sshll.u32 %s5048_s15, 4  ;;  %s16_s16 = int_to_ptr.vmem [resolvable:$true] %s15_s16 }
   0x2   :  { %s5034_s17 = scalar_lea.vmem %s16_s16, 8192  ;;  %p5039_p1 = scmp.lt.s32.totalorder %s16_s16, %s16_s16 }
   0x3   :  { %p5035_p0 = scmp.ne.s32.totalorder %s16_s16, %s5034_s17  ;;  %p5040_p2 = scmp.lt.s32.totalorder %s5034_s17, %s5034_s17 }
   0x5   :  { %p5041_p3 = por %p5040_p2, %p5039_p1 }
   0x7   :  { %p5042_p4 = pnand %p5041_p3, %p5035_p0 }
   0x9   :  { %5045 = shalt.err (!%p5042_p4)
}
   0xa   :  { %s5049_s18 = smov 128   ;;  %s5050_s19 = smov 8  }
   0xb   :  { %21 = dma.hbm_to_vmem [thread:$0]  %s6859_s0, 8192, %s16_s16, [#allocation3], %s5049_s18, %s5049_s18, %s5050_s19  }
   0xc   :  { %5046 = dma.done.wait [#allocation3], 8192  }
   0xd   :  { %5047 = vsyncadd [#allocation3], 4294959104  ;;  %vm96_vm0 = vcmask 261120   ;;  %v95_v0 = vld [vmem:[%s6860_s1] sm:$0xff]  ;;  %v32_v2 = vld [vmem:[#allocation2 + $0x8] sm:$0xff]  ;;  %vm3970_vm1 = vcmask 64512  }
   0xe   :  { %v31_v1 = vld [vmem:[#allocation2] sm:$0xff]  ;;  %v290_v3 = vsel %vm96_vm0, %v95_v0, 0  ;;  %v101_v5 = vsel %vm96_vm0, %v32_v2, 0  ;;  %v33_v6 = vld [vmem:[#allocation2 + $0x10] sm:$0xff]  ;;  %v34_v7 = vld [vmem:[#allocation2 + $0x18] sm:$0xff] }
   0xf   :  { %v98_v4 = vsel %vm96_vm0, %v31_v1, 0  ;;  %v35_v8 = vld [vmem:[#allocation2 + $0x20] sm:$0xff]  ;;  %v5087_v9 = vand.u32 4294901760, %v290_v3  ;;  %v5091_v11 = vand.u32 4294901760, %v101_v5  ;;  %v104_v12 = vsel %vm96_vm0, %v33_v6, 0  ;;  %v36_v13 = vld [vmem:[#allocation2 + $0x28] sm:$0xff] }
  0x10   :  { %v5089_v10 = vand.u32 4294901760, %v98_v4  ;;  %v37_v14 = vld [vmem:[#allocation2 + $0x30] sm:$0xff]  ;;  %v5094_v15 = vand.u32 4294901760, %v104_v12  ;;  %v107_v16 = vsel %vm96_vm0, %v34_v7, 0  ;;  %v110_v17 = vsel %vm96_vm0, %v35_v8, 0  ;;  %v38_v43 = vld [vmem:[#allocation2 + $0x38] sm:$0xff] }
  0x11   :  { %7044 = vst [vmem:[#allocation6_spill] sm:$0xff] %v5091_v11  ;;  %v113_v18 = vsel %vm96_vm0, %v36_v13, 0  ;;  %4431 = vmatprep.subr.mxu0 %v5087_v9  ;;  %v1030_v20 = vsub.f32 %v290_v3, %v5087_v9  ;;  %v5105_v21 = vsub.f32 %v101_v5, %v5091_v11  ;;  %v5108_v22 = vand.u32 4294901760, %v107_v16  ;;  %v39_v44 = vld [vmem:[#allocation2 + $0x40] sm:$0xff]  ;;  %v40_v45 = vld [vmem:[#allocation2 + $0x48] sm:$0xff]  ;;  %v41_v54 = vld [vmem:[#allocation2 + $0x50] sm:$0xff] }
  0x12   :  { %7043 = vst [vmem:[#allocation5_spill] sm:$0xff] %v5089_v10  ;;  %7045 = vst [vmem:[#allocation7_spill] sm:$0xff] %v5094_v15  ;;  %v5101_v19 = vsub.f32 %v98_v4, %v5089_v10  ;;  %4531 = vmatprep.mubr.f32.mxu1 %v5089_v10  ;;  %4432 = vmatpush3.xpose.msra.mxu0 %v5087_v9  ;;  %v5112_v23 = vsub.f32 %v104_v12, %v5094_v15  ;;  %v5114_v24 = vand.u32 4294901760, %v110_v17  ;;  %v42_v55 = vld [vmem:[#allocation2 + $0x58] sm:$0xff]  ;;  %v43_v0 = vld [vmem:[#allocation2 + $0x60] sm:$0xff] }
  0x13   :  { %7046 = vst [vmem:[#allocation8_spill] sm:$0xff] %v5108_v22  ;;  %v5116_v25 = vand.u32 4294901760, %v113_v18  ;;  %v116_v26 = vsel %vm96_vm0, %v37_v14, 0  ;;  %v5120_v28 = vand.u32 4294901760, %v1030_v20  ;;  %v6878_v29 = vand.u32 4294901760, %v5105_v21  ;;  %4627 = vmatprep.subr.mxu0 %v1030_v20  ;;  %v44_v1 = vld [vmem:[#allocation2 + $0x68] sm:$0xff] }
  0x14   :  { %7047 = vst [vmem:[#allocation9_spill] sm:$0xff] %v5114_v24  ;;  %v6879_v27 = vand.u32 4294901760, %v5101_v19  ;;  %v5124_v30 = vsub.f32 %v107_v16, %v5108_v22  ;;  %v6877_v31 = vand.u32 4294901760, %v5112_v23  ;;  %v5128_v32 = vsub.f32 %v110_v17, %v5114_v24  ;;  %v45_v13 = vld [vmem:[#allocation2 + $0x70] sm:$0xff] }
  0x15   :  { %7048 = vst [vmem:[#allocation10_spill] sm:$0xff] %v5116_v25  ;;  %v5131_v33 = vsub.f32 %v113_v18, %v5116_v25  ;;  %v5133_v34 = vand.u32 4294901760, %v116_v26  ;;  %v1032_v36 = vsub.f32 %v1030_v20, %v5120_v28  ;;  %v371_v37 = vsub.f32 %v5105_v21, %v6878_v29 }
  0x16   :  { %v361_v35 = vsub.f32 %v5101_v19, %v6879_v27  ;;  %v6876_v38 = vand.u32 4294901760, %v5124_v30  ;;  %v381_v39 = vsub.f32 %v5112_v23, %v6877_v31  ;;  %v6873_v40 = vand.u32 4294901760, %v5128_v32 }
  0x17   :  { %7049 = vst [vmem:[#allocation11_spill] sm:$0xff] %v5133_v34  ;;  %v6872_v41 = vand.u32 4294901760, %v5131_v33  ;;  %v5149_v42 = vsub.f32 %v116_v26, %v5133_v34  ;;  %v1033_v47 = vand.u32 4294901760, %v1032_v36  ;;  %v372_v48 = vand.u32 4294901760, %v371_v37 }
  0x18   :  { %v362_v46 = vand.u32 4294901760, %v361_v35  ;;  %v391_v49 = vsub.f32 %v5124_v30, %v6876_v38  ;;  %v382_v50 = vand.u32 4294901760, %v381_v39  ;;  %v401_v51 = vsub.f32 %v5128_v32, %v6873_v40  ;;  %v54_v40 = vld [vmem:[#allocation2 + $0xb8] sm:$0xff] }
  0x19   :  { %v411_v52 = vsub.f32 %v5131_v33, %v6872_v41  ;;  %v6870_v53 = vand.u32 4294901760, %v5149_v42  ;;  %4529 = vmatprep.subr.mxu1 %v1033_v47  ;;  %v119_v57 = vsel %vm96_vm0, %v38_v43, 0  ;;  %v122_v58 = vsel %vm96_vm0, %v39_v44, 0 }
  0x1a   :  { %4433 = vmatprep.mubr.f32.mxu0 %v362_v46  ;;  %v392_v56 = vand.u32 4294901760, %v391_v49  ;;  %v125_v59 = vsel %vm96_vm0, %v40_v45, 0  ;;  %4530 = vmatpush3.xpose.msra.mxu1 %v1033_v47  ;;  %v402_v60 = vand.u32 4294901760, %v401_v51  ;;  %v5167_v63 = vand.u32 4294901760, %v119_v57 }
  0x1b   :  { %4434 = vmatmul.mubr.f32.vlgmr.msra.gmra.mxu0 %v372_v48  ;;  %v412_v61 = vand.u32 4294901760, %v411_v52  ;;  %v421_v62 = vsub.f32 %v5149_v42, %v6870_v53  ;;  %v5169_v2 = vand.u32 4294901760, %v122_v58  ;;  %v5171_v3 = vand.u32 4294901760, %v125_v59  ;;  %4725 = vmatprep.subr.mxu1 %v5087_v9 }
  0x1c   :  { %7050 = vst [vmem:[#allocation12_spill] sm:$0xff] %v5167_v63  ;;  %4628 = vmatpush3.xpose.msra.mxu0 %v1030_v20  ;;  %4436 = vmatprep.mubr.f32.mxu0 %v382_v50  ;;  %v128_v4 = vsel %vm96_vm0, %v41_v54, 0  ;;  %v131_v5 = vsel %vm96_vm0, %v42_v55, 0  ;;  %v5177_v7 = vsub.f32 %v119_v57, %v5167_v63  ;;  %v134_v17 = vsel %vm96_vm0, %v43_v0, 0  ;;  %v46_v54 = vld [vmem:[#allocation2 + $0x78] sm:$0xff]  ;;  %v47_v57 = vld [vmem:[#allocation2 + $0x80] sm:$0xff] }
  0x1d   :  { %7051 = vst [vmem:[#allocation13_spill] sm:$0xff] %v5169_v2  ;;  %7052 = vst [vmem:[#allocation14_spill] sm:$0xff] %v5171_v3  ;;  %v422_v6 = vand.u32 4294901760, %v421_v62  ;;  %v5179_v8 = vand.u32 4294901760, %v128_v4  ;;  %v5181_v12 = vand.u32 4294901760, %v131_v5  ;;  %4823 = vmatprep.subr.mxu0 %v5120_v28  ;;  %4532 = vmatmul.mubr.f32.vlgmr.msra.gmra.mxu1 %v5091_v11  ;;  %v5186_v14 = vsub.f32 %v122_v58, %v5169_v2  ;;  %v48_v62 = vld [vmem:[#allocation2 + $0x88] sm:$0xff] }
  0x1e   :  { %v5189_v16 = vsub.f32 %v125_v59, %v5171_v3  ;;  %v137_v18 = vsel %vm96_vm0, %v44_v1, 0  ;;  %4726 = vmatpush3.xpose.msra.mxu1 %v5087_v9  ;;  %v6869_v20 = vand.u32 4294901760, %v5177_v7  ;;  %v5201_v36 = vand.u32 4294901760, %v134_v17  ;;  %4534 = vmatprep.mubr.f32.mxu1 %v5094_v15  ;;  %v49_v0 = vld [vmem:[#allocation2 + $0x90] sm:$0xff]  ;;  %v67_v11 = vld [vmem:[#allocation2 + $0x120] sm:$0xff] }
  0x1f   :  { %7053 = vst [vmem:[#allocation15_spill] sm:$0xff] %v5179_v8  ;;  %7054 = vst [vmem:[#allocation16_spill] sm:$0xff] %v5181_v12  ;;  %4437 = vmatmul.mubr.f32.gmra.mxu0 %v392_v56  ;;  %v5196_v26 = vsub.f32 %v128_v4, %v5179_v8  ;;  %v5199_v35 = vsub.f32 %v131_v5, %v5181_v12  ;;  %v6868_v37 = vand.u32 4294901760, %v5186_v14  ;;  %v5206_v43 = vand.u32 4294901760, %v137_v18 }
  0x20   :  { %7055 = vst [vmem:[#allocation17_spill] sm:$0xff] %v5201_v36  ;;  %4439 = vmatprep.mubr.f32.mxu0 %v402_v60  ;;  %v6866_v39 = vand.u32 4294901760, %v5189_v16  ;;  %v140_v44 = vsel %vm96_vm0, %v45_v13, 0  ;;  %v431_v45 = vsub.f32 %v5177_v7, %v6869_v20  ;;  %v5215_v48 = vsub.f32 %v134_v17, %v5201_v36  ;;  %4921 = vmatprep.subr.mxu1 %v5087_v9  ;;  %v50_v17 = vld [vmem:[#allocation2 + $0x98] sm:$0xff] }
  0x21   :  { %7056 = vst [vmem:[#allocation18_spill] sm:$0xff] %v5206_v43  ;;  %v6865_v46 = vand.u32 4294901760, %v5196_v26  ;;  %v6864_v47 = vand.u32 4294901760, %v5199_v35  ;;  %4535 = vmatmul.mubr.f32.gmra.mxu1 %v5108_v22  ;;  %v441_v49 = vsub.f32 %v5186_v14, %v6868_v37  ;;  %v5226_v51 = vsub.f32 %v137_v18, %v5206_v43  ;;  %v51_v18 = vld [vmem:[#allocation2 + $0xa0] sm:$0xff]  ;;  %v53_v37 = vld [vmem:[#allocation2 + $0xb0] sm:$0xff] }
  0x22   :  { %v451_v50 = vsub.f32 %v5189_v16, %v6866_v39  ;;  %v5228_v52 = vand.u32 4294901760, %v140_v44  ;;  %4537 = vmatprep.mubr.f32.mxu1 %v5114_v24  ;;  %v432_v55 = vand.u32 4294901760, %v431_v45  ;;  %v6867_v59 = vand.u32 4294901760, %v5215_v48 }
  0x23   :  { %4440 = vmatmul.mubr.f32.gmra.mxu0 %v412_v61  ;;  %v461_v56 = vsub.f32 %v5196_v26, %v6865_v46  ;;  %v442_v58 = vand.u32 4294901760, %v441_v49  ;;  %v471_v61 = vsub.f32 %v5199_v35, %v6864_v47  ;;  %v143_v1 = vsel %vm96_vm0, %v46_v54, 0  ;;  %v52_v46 = vld [vmem:[#allocation2 + $0xa8] sm:$0xff] }
  0x24   :  { %7057 = vst [vmem:[#allocation19_spill] sm:$0xff] %v5228_v52  ;;  %4442 = vmatprep.mubr.f32.mxu0 %v422_v6  ;;  %v5236_v60 = vsub.f32 %v140_v44, %v5228_v52  ;;  %v452_v4 = vand.u32 4294901760, %v451_v50  ;;  %v6871_v5 = vand.u32 4294901760, %v5226_v51  ;;  %v5244_v6 = vand.u32 4294901760, %v143_v1 }
  0x25   :  { %4538 = vmatmul.mubr.f32.gmra.mxu1 %v5116_v25  ;;  %v146_v13 = vsel %vm96_vm0, %v47_v57, 0  ;;  %v462_v44 = vand.u32 4294901760, %v461_v56  ;;  %v149_v49 = vsel %vm96_vm0, %v48_v62, 0  ;;  %v152_v54 = vsel %vm96_vm0, %v49_v0, 0  ;;  %v62_v25 = vld [vmem:[#allocation2 + $0xf8] sm:$0xff] }
  0x26   :  { %7058 = vst [vmem:[#allocation20_spill] sm:$0xff] %v5244_v6  ;;  %4540 = vmatprep.mubr.f32.mxu1 %v5133_v34  ;;  %v5248_v45 = vand.u32 4294901760, %v146_v13  ;;  %v481_v50 = vsub.f32 %v5215_v48, %v6867_v59  ;;  %v6874_v47 = vand.u32 4294901760, %v5236_v60  ;;  %v5257_v57 = vsub.f32 %v143_v1, %v5244_v6 }
  0x27   :  { %4443 = vmatmul.mubr.f32.gmra.mxu0 %v432_v55  ;;  %v5259_v55 = vand.u32 4294901760, %v149_v49  ;;  %v5264_v39 = vand.u32 4294901760, %v152_v54  ;;  %v155_v62 = vsel %vm96_vm0, %v50_v17, 0  ;;  %v472_v0 = vand.u32 4294901760, %v471_v61 }
  0x28   :  { %7059 = vst [vmem:[#allocation21_spill] sm:$0xff] %v5248_v45  ;;  %4445 = vmatprep.mubr.f32.mxu0 %v442_v58  ;;  %v5262_v56 = vsub.f32 %v146_v13, %v5248_v45  ;;  %v158_v58 = vsel %vm96_vm0, %v51_v18, 0  ;;  %v6875_v59 = vand.u32 4294901760, %v5257_v57  ;;  %v491_v13 = vsub.f32 %v5226_v51, %v6871_v5 }
  0x29   :  { %7060 = vst [vmem:[#allocation22_spill] sm:$0xff] %v5259_v55  ;;  %7061 = vst [vmem:[#allocation23_spill] sm:$0xff] %v5264_v39  ;;  %4541 = vmatmul.mubr.f32.gmra.mxu1 %v5167_v63  ;;  %v5271_v1 = vsub.f32 %v149_v49, %v5259_v55  ;;  %v5278_v20 = vand.u32 4294901760, %v155_v62  ;;  %v161_v18 = vsel %vm96_vm0, %v52_v46, 0  ;;  %v482_v61 = vand.u32 4294901760, %v481_v50  ;;  %v57_v46 = vld [vmem:[#allocation2 + $0xd0] sm:$0xff] }
  0x2a   :  { %4543 = vmatprep.mubr.f32.mxu1 %v5169_v2  ;;  %v6880_v17 = vand.u32 4294901760, %v5262_v56  ;;  %v501_v49 = vsub.f32 %v5236_v60, %v6874_v47  ;;  %v5287_v53 = vand.u32 4294901760, %v158_v58  ;;  %v511_v5 = vsub.f32 %v5257_v57, %v6875_v59  ;;  %v60_v2 = vld [vmem:[#allocation2 + $0xe8] sm:$0xff] }
  0x2b   :  { %4446 = vmatmul.mubr.f32.gmra.mxu0 %v452_v4  ;;  %7062 = vst [vmem:[#allocation24_spill] sm:$0xff] %v5278_v20  ;;  %v5285_v4 = vsub.f32 %v152_v54, %v5264_v39  ;;  %v164_v41 = vsel %vm96_vm0, %v53_v37, 0  ;;  %v492_v54 = vand.u32 4294901760, %v491_v13  ;;  %v5302_v47 = vsub.f32 %v155_v62, %v5278_v20  ;;  %v55_v37 = vld [vmem:[#allocation2 + $0xc0] sm:$0xff]  ;;  %v56_v13 = vld [vmem:[#allocation2 + $0xc8] sm:$0xff] }
  0x2c   :  { %4448 = vmatprep.mubr.f32.mxu0 %v462_v44  ;;  %7063 = vst [vmem:[#allocation25_spill] sm:$0xff] %v5287_v53  ;;  %v5295_v44 = vand.u32 4294901760, %v161_v18  ;;  %v521_v50 = vsub.f32 %v5262_v56, %v6880_v17  ;;  %v5304_v59 = vand.u32 4294901760, %v164_v41  ;;  %v502_v38 = vand.u32 4294901760, %v501_v49 }
  0x2d   :  { %4544 = vmatmul.mubr.f32.gmra.mxu1 %v5171_v3  ;;  %v5308_v29 = vsub.f32 %v158_v58, %v5287_v53  ;;  %v512_v27 = vand.u32 4294901760, %v511_v5  ;;  %v7066_v62 = vand.u32 4294901760, %v5271_v1  ;;  %v170_v49 = vsel %vm96_vm0, %v55_v37, 0  ;;  %v58_v37 = vld [vmem:[#allocation2 + $0xd8] sm:$0xff] }
  0x2e   :  { %7064 = vst [vmem:[#allocation26_spill] sm:$0xff] %v5295_v44  ;;  %4546 = vmatprep.mubr.f32.mxu1 %v5179_v8  ;;  %7065 = vst [vmem:[#allocation27_spill] sm:$0xff] %v5304_v59  ;;  %v5316_v8 = vsub.f32 %v161_v18, %v5295_v44  ;;  %v5324_v58 = vsub.f32 %v164_v41, %v5304_v59  ;;  %v173_v31 = vsel %vm96_vm0, %v56_v13, 0  ;;  %v5331_v3 = vand.u32 4294901760, %v170_v49  ;;  %v59_v13 = vld [vmem:[#allocation2 + $0xe0] sm:$0xff] }
  0x2f   :  { %4449 = vmatmul.mubr.f32.gmra.mxu0 %v472_v0  ;;  %v167_v0 = vsel %vm96_vm0, %v54_v40, 0  ;;  %v531_v17 = vsub.f32 %v5271_v1, %v7066_v62  ;;  %v522_v40 = vand.u32 4294901760, %v521_v50  ;;  %v7068_v62 = vand.u32 4294901760, %v5285_v4 }
  0x30   :  { %4451 = vmatprep.mubr.f32.mxu0 %v482_v61  ;;  %v5318_v61 = vand.u32 4294901760, %v167_v0  ;;  %7069 = vst [vmem:[#allocation29_spill] sm:$0xff] %v5331_v3  ;;  %v185_v34 = vsel %vm96_vm0, %v60_v2, 0 }
  0x31   :  { %4547 = vmatmul.mubr.f32.gmra.mxu1 %v5181_v12  ;;  %v541_v18 = vsub.f32 %v5285_v4, %v7068_v62  ;;  %v532_v50 = vand.u32 4294901760, %v531_v17  ;;  %v7071_v62 = vand.u32 4294901760, %v5302_v47  ;;  %v179_v17 = vsel %vm96_vm0, %v58_v37, 0 }
  0x32   :  { %7067 = vst [vmem:[#allocation28_spill] sm:$0xff] %v5318_v61  ;;  %4549 = vmatprep.mubr.f32.mxu1 %v5201_v36  ;;  %v5337_v5 = vsub.f32 %v167_v0, %v5318_v61  ;;  %v7073_v0 = vand.u32 4294901760, %v5308_v29 }
  0x33   :  { %4452 = vmatmul.mubr.f32.gmra.mxu0 %v492_v54  ;;  %v176_v54 = vsel %vm96_vm0, %v57_v46, 0  ;;  %v551_v12 = vsub.f32 %v5302_v47, %v7071_v62  ;;  %v542_v41 = vand.u32 4294901760, %v541_v18  ;;  %v7074_v62 = vand.u32 4294901760, %v5316_v8 }
  0x34   :  { %4454 = vmatprep.mubr.f32.mxu0 %v502_v38  ;;  %v5339_v38 = vand.u32 4294901760, %v173_v31  ;;  %v5346_v36 = vand.u32 4294901760, %v176_v54  ;;  %v5364_v18 = vand.u32 4294901760, %v179_v17 }
  0x35   :  { %4550 = vmatmul.mubr.f32.gmra.mxu1 %v5206_v43  ;;  %v561_v43 = vsub.f32 %v5308_v29, %v7073_v0  ;;  %v571_v46 = vsub.f32 %v5316_v8, %v7074_v62  ;;  %v61_v0 = vld [vmem:[#allocation2 + $0xf0] sm:$0xff] }
  0x36   :  { %7070 = vst [vmem:[#allocation30_spill] sm:$0xff] %v5339_v38  ;;  %4552 = vmatprep.mubr.f32.mxu1 %v5228_v52  ;;  %7072 = vst [vmem:[#allocation31_spill] sm:$0xff] %v5346_v36  ;;  %v182_v52 = vsel %vm96_vm0, %v59_v13, 0  ;;  %v7076_v13 = vand.u32 4294901760, %v5324_v58  ;;  %v5371_v63 = vsub.f32 %v176_v54, %v5346_v36 }
  0x37   :  { %4455 = vmatmul.mubr.f32.gmra.mxu0 %v512_v27  ;;  %v5353_v27 = vsub.f32 %v170_v49, %v5331_v3  ;;  %7075 = vst [vmem:[#allocation32_spill] sm:$0xff] %v5364_v18  ;;  %v552_v49 = vand.u32 4294901760, %v551_v12  ;;  %v562_v62 = vand.u32 4294901760, %v561_v43  ;;  %v572_v12 = vand.u32 4294901760, %v571_v46 }
  0x38   :  { %4457 = vmatprep.mubr.f32.mxu0 %v522_v40  ;;  %v5362_v40 = vsub.f32 %v173_v31, %v5339_v38  ;;  %v5374_v31 = vand.u32 4294901760, %v182_v52  ;;  %v5384_v43 = vsub.f32 %v179_v17, %v5364_v18 }
  0x39   :  { %4553 = vmatmul.mubr.f32.gmra.mxu1 %v5244_v6  ;;  %v581_v6 = vsub.f32 %v5324_v58, %v7076_v13  ;;  %v7078_v13 = vand.u32 4294901760, %v5337_v5  ;;  %v7081_v46 = vand.u32 4294901760, %v5353_v27 }
  0x3a   :  { %4555 = vmatprep.mubr.f32.mxu1 %v5248_v45  ;;  %7077 = vst [vmem:[#allocation33_spill] sm:$0xff] %v5374_v31  ;;  %v63_v45 = vld [vmem:[#allocation2 + $0x100] sm:$0xff]  ;;  %7079 = vst [vmem:[#allocation34_spill] sm:$0xff] %v5384_v43  ;;  %v7084_v37 = vand.u32 4294901760, %v5362_v40 }
  0x3b   :  { %4458 = vmatmul.mubr.f32.gmra.mxu0 %v532_v50  ;;  %v188_v50 = vsel %vm96_vm0, %v61_v0, 0  ;;  %v591_v54 = vsub.f32 %v5337_v5, %v7078_v13  ;;  %v582_v2 = vand.u32 4294901760, %v581_v6  ;;  %v5388_v0 = vand.u32 4294901760, %v185_v34 }
  0x3c   :  { %4460 = vmatprep.mubr.f32.mxu0 %v542_v41  ;;  %v601_v13 = vsub.f32 %v5353_v27, %v7081_v46  ;;  %v5395_v41 = vsub.f32 %v182_v52, %v5374_v31  ;;  %v5397_v17 = vand.u32 4294901760, %v188_v50  ;;  %v65_v46 = vld [vmem:[#allocation2 + $0x110] sm:$0xff]  ;;  %v7086_v52 = vand.u32 4294901760, %v5371_v63 }
  0x3d   :  { %4556 = vmatmul.mubr.f32.gmra.mxu1 %v5259_v55  ;;  %7080 = vst [vmem:[#allocation35_spill] sm:$0xff] %v5388_v0  ;;  %v191_v55 = vsel %vm96_vm0, %v62_v25, 0  ;;  %v592_v6 = vand.u32 4294901760, %v591_v54  ;;  %v611_v25 = vsub.f32 %v5362_v40, %v7084_v37  ;;  %v5412_v22 = vsub.f32 %v185_v34, %v5388_v0 }
  0x3e   :  { %4558 = vmatprep.mubr.f32.mxu1 %v5264_v39  ;;  %7082 = vst [vmem:[#allocation36_spill] sm:$0xff] %v5395_v41  ;;  %7083 = vst [vmem:[#allocation37_spill] sm:$0xff] %v5397_v17  ;;  %v64_v39 = vld [vmem:[#allocation2 + $0x108] sm:$0xff]  ;;  %v5405_v24 = vand.u32 4294901760, %v191_v55  ;;  %v602_v37 = vand.u32 4294901760, %v601_v13  ;;  %v5419_v15 = vsub.f32 %v188_v50, %v5397_v17  ;;  %v7090_v34 = vand.u32 4294901760, %v5384_v43 }
  0x3f   :  { %4461 = vmatmul.mubr.f32.gmra.mxu0 %v552_v49  ;;  %v194_v49 = vsel %vm96_vm0, %v63_v45, 0  ;;  %v621_v45 = vsub.f32 %v5371_v63, %v7086_v52  ;;  %7087 = vst [vmem:[#allocation39_spill] sm:$0xff] %v5412_v22  ;;  %v612_v52 = vand.u32 4294901760, %v611_v25 }
  0x40   :  { %4463 = vmatprep.mubr.f32.mxu0 %v562_v62  ;;  %7085 = vst [vmem:[#allocation38_spill] sm:$0xff] %v5405_v24  ;;  %v5414_v54 = vand.u32 4294901760, %v194_v49  ;;  %v6927_v62 = vand.u32 4294901760, %v5395_v41  ;;  %7089 = vst [vmem:[#allocation41_spill] sm:$0xff] %v5419_v15  ;;  %v631_v10 = vsub.f32 %v5384_v43, %v7090_v34  ;;  %v70_v43 = vld [vmem:[#allocation2 + $0x138] sm:$0xff] }
  0x41   :  { %4559 = vmatmul.mubr.f32.gmra.mxu1 %v5278_v20  ;;  %v197_v20 = vsel %vm96_vm0, %v64_v39, 0  ;;  %v5427_v39 = vsub.f32 %v191_v55, %v5405_v24  ;;  %v622_v50 = vand.u32 4294901760, %v621_v45 }
  0x42   :  { %4561 = vmatprep.mubr.f32.mxu1 %v5287_v53  ;;  %7088 = vst [vmem:[#allocation40_spill] sm:$0xff] %v5414_v54  ;;  %v200_v53 = vsel %vm96_vm0, %v65_v46, 0  ;;  %v5434_v46 = vsub.f32 %v194_v49, %v5414_v54  ;;  %v641_v34 = vsub.f32 %v5395_v41, %v6927_v62  ;;  %v632_v45 = vand.u32 4294901760, %v631_v10 }
  0x43   :  { %4464 = vmatmul.mubr.f32.gmra.mxu0 %v572_v12  ;;  %v66_v12 = vld [vmem:[#allocation2 + $0x118] sm:$0xff]  ;;  %7091 = vst [vmem:[#allocation42_spill] sm:$0xff] %v5427_v39  ;;  %v7097_v62 = vand.u32 4294901760, %v5412_v22 }
  0x44   :  { %4466 = vmatprep.mubr.f32.mxu0 %v582_v2  ;;  %v5429_v2 = vand.u32 4294901760, %v197_v20  ;;  %7093 = vst [vmem:[#allocation44_spill] sm:$0xff] %v5434_v46  ;;  %v203_v25 = vsel %vm96_vm0, %v66_v12, 0  ;;  %v69_v12 = vld [vmem:[#allocation2 + $0x130] sm:$0xff]  ;;  %v642_v49 = vand.u32 4294901760, %v641_v34 }
  0x45   :  { %4562 = vmatmul.mubr.f32.gmra.mxu1 %v5295_v44  ;;  %v5441_v44 = vand.u32 4294901760, %v200_v53  ;;  %v651_v55 = vsub.f32 %v5412_v22, %v7097_v62  ;;  %v7101_v62 = vand.u32 4294901760, %v5427_v39  ;;  %v72_v22 = vld [vmem:[#allocation2 + $0x148] sm:$0xff] }
  0x46   :  { %7092 = vst [vmem:[#allocation43_spill] sm:$0xff] %v5429_v2  ;;  %4564 = vmatprep.mubr.f32.mxu1 %v5304_v59  ;;  %v68_v59 = vld [vmem:[#allocation2 + $0x128] sm:$0xff]  ;;  %v5447_v13 = vsub.f32 %v197_v20, %v5429_v2  ;;  %v7099_v20 = vand.u32 4294901760, %v5419_v15 }
  0x47   :  { %4467 = vmatmul.mubr.f32.gmra.mxu0 %v592_v6  ;;  %7094 = vst [vmem:[#allocation45_spill] sm:$0xff] %v5441_v44  ;;  %v206_v6 = vsel %vm96_vm0, %v67_v11, 0  ;;  %v209_v10 = vsel %vm96_vm0, %v68_v59, 0  ;;  %v671_v11 = vsub.f32 %v5427_v39, %v7101_v62  ;;  %v215_v39 = vsel %vm96_vm0, %v70_v43, 0 }
  0x48   :  { %4469 = vmatprep.mubr.f32.mxu0 %v602_v37  ;;  %7095 = vst [vmem:[#allocation46_spill] sm:$0xff] %v5447_v13  ;;  %v5449_v37 = vand.u32 4294901760, %v203_v25  ;;  %v5456_v41 = vand.u32 4294901760, %v206_v6  ;;  %v5474_v34 = vand.u32 4294901760, %v209_v10 }
  0x49   :  { %4565 = vmatmul.mubr.f32.gmra.mxu1 %v5318_v61  ;;  %v661_v61 = vsub.f32 %v5419_v15, %v7099_v20  ;;  %v71_v20 = vld [vmem:[#allocation2 + $0x140] sm:$0xff] }
  0x4a   :  { %7096 = vst [vmem:[#allocation47_spill] sm:$0xff] %v5449_v37  ;;  %4567 = vmatprep.mubr.f32.mxu1 %v5331_v3  ;;  %7098 = vst [vmem:[#allocation48_spill] sm:$0xff] %v5456_v41  ;;  %v212_v3 = vsel %vm96_vm0, %v69_v12, 0  ;;  %v7104_v12 = vand.u32 4294901760, %v5434_v46  ;;  %v5481_v15 = vsub.f32 %v206_v6, %v5456_v41 }
  0x4b   :  { %4470 = vmatmul.mubr.f32.gmra.mxu0 %v612_v52  ;;  %v5463_v52 = vsub.f32 %v200_v53, %v5441_v44  ;;  %7103 = vst [vmem:[#allocation51_spill] sm:$0xff] %v5474_v34  ;;  %v652_v53 = vand.u32 4294901760, %v651_v55  ;;  %v662_v62 = vand.u32 4294901760, %v661_v61  ;;  %v672_v55 = vand.u32 4294901760, %v671_v11 }
  0x4c   :  { %4472 = vmatprep.mubr.f32.mxu0 %v622_v50  ;;  %v5472_v50 = vsub.f32 %v203_v25, %v5449_v37  ;;  %7105 = vst [vmem:[#allocation52_spill] sm:$0xff] %v5481_v15  ;;  %v5484_v25 = vand.u32 4294901760, %v212_v3  ;;  %v5494_v61 = vsub.f32 %v209_v10, %v5474_v34 }
  0x4d   :  { %7100 = vst [vmem:[#allocation49_spill] sm:$0xff] %v5463_v52  ;;  %4568 = vmatmul.mubr.f32.gmra.mxu1 %v5339_v38  ;;  %v681_v38 = vsub.f32 %v5434_v46, %v7104_v12  ;;  %v7107_v12 = vand.u32 4294901760, %v5447_v13  ;;  %v7110_v11 = vand.u32 4294901760, %v5463_v52  ;;  %v77_v46 = vld [vmem:[#allocation2 + $0x170] sm:$0xff] }
  0x4e   :  { %7102 = vst [vmem:[#allocation50_spill] sm:$0xff] %v5472_v50  ;;  %4570 = vmatprep.mubr.f32.mxu1 %v5346_v36  ;;  %7106 = vst [vmem:[#allocation53_spill] sm:$0xff] %v5484_v25  ;;  %v73_v36 = vld [vmem:[#allocation2 + $0x150] sm:$0xff]  ;;  %v7113_v59 = vand.u32 4294901760, %v5472_v50 }
  0x4f   :  { %4473 = vmatmul.mubr.f32.gmra.mxu0 %v632_v45  ;;  %v218_v45 = vsel %vm96_vm0, %v71_v20, 0  ;;  %v691_v6 = vsub.f32 %v5447_v13, %v7107_v12  ;;  %7108 = vst [vmem:[#allocation54_spill] sm:$0xff] %v5494_v61  ;;  %v682_v43 = vand.u32 4294901760, %v681_v38  ;;  %v5498_v20 = vand.u32 4294901760, %v215_v39 }
  0x50   :  { %4475 = vmatprep.mubr.f32.mxu0 %v642_v49  ;;  %v701_v12 = vsub.f32 %v5463_v52, %v7110_v11  ;;  %v5505_v49 = vsub.f32 %v212_v3, %v5484_v25  ;;  %v5507_v10 = vand.u32 4294901760, %v218_v45  ;;  %v75_v11 = vld [vmem:[#allocation2 + $0x160] sm:$0xff]  ;;  %v7115_v3 = vand.u32 4294901760, %v5481_v15 }
  0x51   :  { %4571 = vmatmul.mubr.f32.gmra.mxu1 %v5364_v18  ;;  %7109 = vst [vmem:[#allocation55_spill] sm:$0xff] %v5498_v20  ;;  %v221_v18 = vsel %vm96_vm0, %v72_v22, 0  ;;  %v692_v38 = vand.u32 4294901760, %v691_v6  ;;  %v711_v22 = vsub.f32 %v5472_v50, %v7113_v59  ;;  %v5522_v52 = vsub.f32 %v215_v39, %v5498_v20 }
  0x52   :  { %4573 = vmatprep.mubr.f32.mxu1 %v5374_v31  ;;  %7111 = vst [vmem:[#allocation56_spill] sm:$0xff] %v5505_v49  ;;  %7112 = vst [vmem:[#allocation57_spill] sm:$0xff] %v5507_v10  ;;  %v74_v31 = vld [vmem:[#allocation2 + $0x158] sm:$0xff]  ;;  %v5515_v13 = vand.u32 4294901760, %v221_v18  ;;  %v702_v59 = vand.u32 4294901760, %v701_v12  ;;  %v5529_v50 = vsub.f32 %v218_v45, %v5507_v10  ;;  %v7119_v39 = vand.u32 4294901760, %v5494_v61 }
  0x53   :  { %4476 = vmatmul.mubr.f32.gmra.mxu0 %v652_v53  ;;  %v224_v53 = vsel %vm96_vm0, %v73_v36, 0  ;;  %v721_v36 = vsub.f32 %v5481_v15, %v7115_v3  ;;  %7116 = vst [vmem:[#allocation59_spill] sm:$0xff] %v5522_v52  ;;  %v712_v3 = vand.u32 4294901760, %v711_v22 }
  0x54   :  { %4478 = vmatprep.mubr.f32.mxu0 %v662_v62  ;;  %7114 = vst [vmem:[#allocation58_spill] sm:$0xff] %v5515_v13  ;;  %v5524_v6 = vand.u32 4294901760, %v224_v53  ;;  %v6968_v62 = vand.u32 4294901760, %v5505_v49  ;;  %7118 = vst [vmem:[#allocation61_spill] sm:$0xff] %v5529_v50  ;;  %v731_v15 = vsub.f32 %v5494_v61, %v7119_v39 }
  0x55   :  { %4574 = vmatmul.mubr.f32.gmra.mxu1 %v5388_v0  ;;  %v227_v0 = vsel %vm96_vm0, %v74_v31, 0  ;;  %v5537_v31 = vsub.f32 %v221_v18, %v5515_v13  ;;  %v722_v45 = vand.u32 4294901760, %v721_v36 }
  0x56   :  { %4576 = vmatprep.mubr.f32.mxu1 %v5397_v17  ;;  %7117 = vst [vmem:[#allocation60_spill] sm:$0xff] %v5524_v6  ;;  %v230_v17 = vsel %vm96_vm0, %v75_v11, 0  ;;  %v5544_v11 = vsub.f32 %v224_v53, %v5524_v6  ;;  %v741_v39 = vsub.f32 %v5505_v49, %v6968_v62  ;;  %v732_v36 = vand.u32 4294901760, %v731_v15 }
  0x57   :  { %4479 = vmatmul.mubr.f32.gmra.mxu0 %v672_v55  ;;  %v76_v55 = vld [vmem:[#allocation2 + $0x168] sm:$0xff]  ;;  %7120 = vst [vmem:[#allocation62_spill] sm:$0xff] %v5537_v31  ;;  %v7126_v62 = vand.u32 4294901760, %v5522_v52 }
  0x58   :  { %4481 = vmatprep.mubr.f32.mxu0 %v682_v43  ;;  %v5539_v43 = vand.u32 4294901760, %v227_v0  ;;  %7122 = vst [vmem:[#allocation64_spill] sm:$0xff] %v5544_v11  ;;  %v233_v22 = vsel %vm96_vm0, %v76_v55, 0  ;;  %v79_v55 = vld [vmem:[#allocation2 + $0x180] sm:$0xff]  ;;  %v742_v53 = vand.u32 4294901760, %v741_v39 }
  0x59   :  { %4577 = vmatmul.mubr.f32.gmra.mxu1 %v5405_v24  ;;  %v5551_v24 = vand.u32 4294901760, %v230_v17  ;;  %v751_v18 = vsub.f32 %v5522_v52, %v7126_v62  ;;  %v242_v61 = vsel %vm96_vm0, %v79_v55, 0  ;;  %v7130_v62 = vand.u32 4294901760, %v5537_v31  ;;  %v82_v52 = vld [vmem:[#allocation2 + $0x198] sm:$0xff] }
  0x5a   :  { %7121 = vst [vmem:[#allocation63_spill] sm:$0xff] %v5539_v43  ;;  %4579 = vmatprep.mubr.f32.mxu1 %v5414_v54  ;;  %v78_v54 = vld [vmem:[#allocation2 + $0x178] sm:$0xff]  ;;  %v5557_v12 = vsub.f32 %v227_v0, %v5539_v43  ;;  %v7128_v0 = vand.u32 4294901760, %v5529_v50  ;;  %v7133_v55 = vand.u32 4294901760, %v5544_v11 }
  0x5b   :  { %4482 = vmatmul.mubr.f32.gmra.mxu0 %v692_v38  ;;  %7123 = vst [vmem:[#allocation65_spill] sm:$0xff] %v5551_v24  ;;  %v236_v38 = vsel %vm96_vm0, %v77_v46, 0  ;;  %v239_v15 = vsel %vm96_vm0, %v78_v54, 0  ;;  %v771_v46 = vsub.f32 %v5537_v31, %v7130_v62  ;;  %v5595_v31 = vand.u32 4294901760, %v242_v61 }
  0x5c   :  { %4484 = vmatprep.mubr.f32.mxu0 %v702_v59  ;;  %7124 = vst [vmem:[#allocation66_spill] sm:$0xff] %v5557_v12  ;;  %v5559_v59 = vand.u32 4294901760, %v233_v22  ;;  %v5566_v49 = vand.u32 4294901760, %v236_v38  ;;  %v5584_v39 = vand.u32 4294901760, %v239_v15 }
  0x5d   :  { %4580 = vmatmul.mubr.f32.gmra.mxu1 %v5429_v2  ;;  %v761_v2 = vsub.f32 %v5529_v50, %v7128_v0  ;;  %v81_v0 = vld [vmem:[#allocation2 + $0x190] sm:$0xff]  ;;  %7135 = vst [vmem:[#allocation73_spill] sm:$0xff] %v5595_v31 }
  0x5e   :  { %7125 = vst [vmem:[#allocation67_spill] sm:$0xff] %v5559_v59  ;;  %4582 = vmatprep.mubr.f32.mxu1 %v5441_v44  ;;  %7127 = vst [vmem:[#allocation68_spill] sm:$0xff] %v5566_v49  ;;  %v80_v44 = vld [vmem:[#allocation2 + $0x188] sm:$0xff]  ;;  %v5591_v50 = vsub.f32 %v236_v38, %v5566_v49  ;;  %v5614_v38 = vsub.f32 %v242_v61, %v5595_v31 }
  0x5f   :  { %4485 = vmatmul.mubr.f32.gmra.mxu0 %v712_v3  ;;  %v5573_v3 = vsub.f32 %v230_v17, %v5551_v24  ;;  %7132 = vst [vmem:[#allocation71_spill] sm:$0xff] %v5584_v39  ;;  %v752_v17 = vand.u32 4294901760, %v751_v18  ;;  %v245_v62 = vsel %vm96_vm0, %v80_v44, 0  ;;  %v762_v54 = vand.u32 4294901760, %v761_v2  ;;  %v83_v2 = vld [vmem:[#allocation2 + $0x1a0] sm:$0xff] }
  0x60   :  { %4487 = vmatprep.mubr.f32.mxu0 %v722_v45  ;;  %v5582_v45 = vsub.f32 %v233_v22, %v5559_v59  ;;  %7134 = vst [vmem:[#allocation72_spill] sm:$0xff] %v5591_v50  ;;  %v7136_v18 = vand.u32 4294901760, %v5557_v12  ;;  %v5606_v44 = vand.u32 4294901760, %v245_v62  ;;  %v7001_v22 = vand.u32 4294901760, %v5591_v50  ;;  %7139 = vst [vmem:[#allocation75_spill] sm:$0xff] %v5614_v38 }
  0x61   :  { %7129 = vst [vmem:[#allocation69_spill] sm:$0xff] %v5573_v3  ;;  %4583 = vmatmul.mubr.f32.gmra.mxu1 %v5449_v37  ;;  %v781_v37 = vsub.f32 %v5544_v11, %v7133_v55  ;;  %v84_v11 = vld [vmem:[#allocation2 + $0x1a8] sm:$0xff] }
  0x62   :  { %7131 = vst [vmem:[#allocation70_spill] sm:$0xff] %v5582_v45  ;;  %4585 = vmatprep.mubr.f32.mxu1 %v5456_v41  ;;  %v791_v55 = vsub.f32 %v5557_v12, %v7136_v18  ;;  %v5604_v41 = vsub.f32 %v239_v15, %v5584_v39  ;;  %v251_v12 = vsel %vm96_vm0, %v82_v52, 0  ;;  %v5626_v61 = vsub.f32 %v245_v62, %v5606_v44 }
  0x63   :  { %4488 = vmatmul.mubr.f32.gmra.mxu0 %v732_v36  ;;  %v248_v36 = vsel %vm96_vm0, %v81_v0, 0  ;;  %v782_v0 = vand.u32 4294901760, %v781_v37  ;;  %v821_v52 = vsub.f32 %v5591_v50, %v7001_v22 }
  0x64   :  { %4490 = vmatprep.mubr.f32.mxu0 %v742_v53  ;;  %7137 = vst [vmem:[#allocation74_spill] sm:$0xff] %v5604_v41  ;;  %v772_v53 = vand.u32 4294901760, %v771_v46  ;;  %v5616_v15 = vand.u32 4294901760, %v248_v36  ;;  %v792_v37 = vand.u32 4294901760, %v791_v55  ;;  %v7141_v46 = vand.u32 4294901760, %v5582_v45 }
  0x65   :  { %4586 = vmatmul.mubr.f32.gmra.mxu1 %v5474_v34  ;;  %v7138_v34 = vand.u32 4294901760, %v5573_v3  ;;  %v257_v55 = vsel %vm96_vm0, %v84_v11, 0  ;;  %v7144_v50 = vand.u32 4294901760, %v5604_v41 }
  0x66   :  { %4588 = vmatprep.mubr.f32.mxu1 %v5484_v25  ;;  %7140 = vst [vmem:[#allocation76_spill] sm:$0xff] %v5616_v15  ;;  %v254_v25 = vsel %vm96_vm0, %v83_v2, 0  ;;  %v5632_v2 = vand.u32 4294901760, %v251_v12  ;;  %v5638_v62 = vsub.f32 %v248_v36, %v5616_v15  ;;  %v822_v36 = vand.u32 4294901760, %v821_v52  ;;  %v88_v52 = vld [vmem:[#allocation2 + $0x1c8] sm:$0xff] }
  0x67   :  { %4491 = vmatmul.mubr.f32.gmra.mxu0 %v752_v17  ;;  %v801_v18 = vsub.f32 %v5573_v3, %v7138_v34  ;;  %v85_v17 = vld [vmem:[#allocation2 + $0x1b0] sm:$0xff]  ;;  %v831_v11 = vsub.f32 %v5604_v41, %v7144_v50  ;;  %v5646_v3 = vand.u32 4294901760, %v257_v55 }
  0x68   :  { %4493 = vmatprep.mubr.f32.mxu0 %v762_v54  ;;  %v811_v54 = vsub.f32 %v5582_v45, %v7141_v46  ;;  %7142 = vst [vmem:[#allocation77_spill] sm:$0xff] %v5638_v62  ;;  %v87_v45 = vld [vmem:[#allocation2 + $0x1c0] sm:$0xff] }
  0x69   :  { %4589 = vmatmul.mubr.f32.gmra.mxu1 %v5498_v20  ;;  %v260_v20 = vsel %vm96_vm0, %v85_v17, 0  ;;  %v802_v46 = vand.u32 4294901760, %v801_v18  ;;  %v5653_v17 = vsub.f32 %v251_v12, %v5632_v2  ;;  %v5666_v12 = vsub.f32 %v257_v55, %v5646_v3  ;;  %v89_v18 = vld [vmem:[#allocation2 + $0x1d0] sm:$0xff] }
  0x6a   :  { %4591 = vmatprep.mubr.f32.mxu1 %v5507_v10  ;;  %v86_v10 = vld [vmem:[#allocation2 + $0x1b8] sm:$0xff]  ;;  %v812_v22 = vand.u32 4294901760, %v811_v54  ;;  %v7146_v54 = vand.u32 4294901760, %v5614_v38 }
  0x6b   :  { %4494 = vmatmul.mubr.f32.gmra.mxu0 %v772_v53  ;;  %v5640_v53 = vand.u32 4294901760, %v254_v25  ;;  %7145 = vst [vmem:[#allocation79_spill] sm:$0xff] %v5653_v17  ;;  %v263_v34 = vsel %vm96_vm0, %v86_v10, 0  ;;  %7148 = vst [vmem:[#allocation81_spill] sm:$0xff] %v5666_v12 }
  0x6c   :  { %4496 = vmatprep.mubr.f32.mxu0 %v782_v0  ;;  %v5648_v0 = vand.u32 4294901760, %v260_v20  ;;  %v841_v50 = vsub.f32 %v5614_v38, %v7146_v54  ;;  %v832_v54 = vand.u32 4294901760, %v831_v11  ;;  %v272_v11 = vsel %vm96_vm0, %v89_v18, 0 }
  0x6d   :  { %7143 = vst [vmem:[#allocation78_spill] sm:$0xff] %v5640_v53  ;;  %4592 = vmatmul.mubr.f32.gmra.mxu1 %v5515_v13  ;;  %v5661_v41 = vsub.f32 %v254_v25, %v5640_v53  ;;  %v7150_v25 = vand.u32 4294901760, %v5626_v61  ;;  %v7152_v38 = vand.u32 4294901760, %v5653_v17 }
  0x6e   :  { %4594 = vmatprep.mubr.f32.mxu1 %v5524_v6  ;;  %v5669_v10 = vsub.f32 %v260_v20, %v5648_v0  ;;  %v842_v55 = vand.u32 4294901760, %v841_v50  ;;  %v7151_v20 = vand.u32 4294901760, %v5638_v62  ;;  %v91_v50 = vld [vmem:[#allocation2 + $0x1e0] sm:$0xff] }
  0x6f   :  { %4497 = vmatmul.mubr.f32.gmra.mxu0 %v792_v37  ;;  %7147 = vst [vmem:[#allocation80_spill] sm:$0xff] %v5661_v41  ;;  %v266_v37 = vsel %vm96_vm0, %v87_v45, 0  ;;  %v851_v45 = vsub.f32 %v5626_v61, %v7150_v25  ;;  %v7153_v13 = vand.u32 4294901760, %v5661_v41 }
  0x70   :  { %4499 = vmatprep.mubr.f32.mxu0 %v802_v46  ;;  %7149 = vst [vmem:[#allocation82_spill] sm:$0xff] %v5669_v10  ;;  %v5671_v46 = vand.u32 4294901760, %v263_v34  ;;  %v861_v6 = vsub.f32 %v5638_v62, %v7151_v20  ;;  %v5704_v62 = vand.u32 4294901760, %v272_v11 }
  0x71   :  { %4595 = vmatmul.mubr.f32.gmra.mxu1 %v5539_v43  ;;  %v5678_v43 = vand.u32 4294901760, %v266_v37  ;;  %v852_v20 = vand.u32 4294901760, %v851_v45  ;;  %v278_v45 = vsel %vm96_vm0, %v91_v50, 0 }
  0x72   :  { %4597 = vmatprep.mubr.f32.mxu1 %v5551_v24  ;;  %v90_v24 = vld [vmem:[#allocation2 + $0x1d8] sm:$0xff]  ;;  %v862_v25 = vand.u32 4294901760, %v861_v6 }
  0x73   :  { %4500 = vmatmul.mubr.f32.gmra.mxu0 %v812_v22  ;;  %v269_v22 = vsel %vm96_vm0, %v88_v52, 0  ;;  %v871_v52 = vsub.f32 %v5653_v17, %v7152_v38  ;;  %v5697_v18 = vsub.f32 %v266_v37, %v5678_v43  ;;  %v7154_v38 = vand.u32 4294901760, %v5666_v12 }
  0x74   :  { %4502 = vmatprep.mubr.f32.mxu0 %v822_v36  ;;  %v5690_v36 = vsub.f32 %v263_v34, %v5671_v46  ;;  %v881_v34 = vsub.f32 %v5661_v41, %v7153_v13  ;;  %v93_v13 = vld [vmem:[#allocation2 + $0x1f0] sm:$0xff] }
  0x75   :  { %4598 = vmatmul.mubr.f32.gmra.mxu1 %v5559_v59  ;;  %v5699_v59 = vand.u32 4294901760, %v269_v22  ;;  %v891_v37 = vsub.f32 %v5666_v12, %v7154_v38  ;;  %v5724_v12 = vsub.f32 %v272_v11, %v5704_v62  ;;  %v7157_v11 = vand.u32 4294901760, %v5697_v18 }
  0x76   :  { %4600 = vmatprep.mubr.f32.mxu1 %v5566_v49  ;;  %v92_v49 = vld [vmem:[#allocation2 + $0x1e8] sm:$0xff]  ;;  %v882_v38 = vand.u32 4294901760, %v881_v34 }
  0x77   :  { %4503 = vmatmul.mubr.f32.gmra.mxu0 %v832_v54  ;;  %v275_v54 = vsel %vm96_vm0, %v90_v24, 0  ;;  %v872_v24 = vand.u32 4294901760, %v871_v52  ;;  %v5719_v41 = vsub.f32 %v269_v22, %v5699_v59  ;;  %v281_v17 = vsel %vm96_vm0, %v92_v49, 0 }
  0x78   :  { %4505 = vmatprep.mubr.f32.mxu0 %v842_v55  ;;  %v7155_v55 = vand.u32 4294901760, %v5669_v10  ;;  %v892_v52 = vand.u32 4294901760, %v891_v37  ;;  %v7156_v22 = vand.u32 4294901760, %v5690_v36 }
  0x79   :  { %4601 = vmatmul.mubr.f32.gmra.mxu1 %v5584_v39  ;;  %v5721_v39 = vand.u32 4294901760, %v275_v54  ;;  %v7040_v49 = vand.u32 4294901760, %v5719_v41 }
  0x7a   :  { %v901_v6 = vsub.f32 %v5669_v10, %v7155_v55  ;;  %4603 = vmatprep.mubr.f32.mxu1 %v5595_v31  ;;  %v5726_v55 = vand.u32 4294901760, %v278_v45  ;;  %v94_v31 = vld [vmem:[#allocation2 + $0x1f8] sm:$0xff]  ;;  %v911_v10 = vsub.f32 %v5690_v36, %v7156_v22 }
  0x7b   :  { %4506 = vmatmul.mubr.f32.gmra.mxu0 %v852_v20  ;;  %v284_v20 = vsel %vm96_vm0, %v93_v13, 0  ;;  %v5740_v34 = vsub.f32 %v275_v54, %v5721_v39  ;;  %v5742_v13 = vand.u32 4294901760, %v281_v17  ;;  %v287_v22 = vsel %vm96_vm0, %v94_v31, 0 }
  0x7c   :  { %4508 = vmatprep.mubr.f32.mxu0 %v862_v25  ;;  %v902_v50 = vand.u32 4294901760, %v901_v6  ;;  %v921_v25 = vsub.f32 %v5697_v18, %v7157_v11  ;;  %v5746_v6 = vsub.f32 %v278_v45, %v5726_v55  ;;  %v912_v11 = vand.u32 4294901760, %v911_v10 }
  0x7d   :  { %4604 = vmatmul.mubr.f32.gmra.mxu1 %v5606_v44  ;;  %v931_v54 = vsub.f32 %v5719_v41, %v7040_v49  ;;  %v5758_v37 = vsub.f32 %v281_v17, %v5742_v13  ;;  %v5760_v45 = vand.u32 4294901760, %v287_v22  ;;  %v7158_v31 = vand.u32 4294901760, %v5724_v12 }
  0x7e   :  { %4606 = vmatprep.mubr.f32.mxu1 %v5616_v15  ;;  %v922_v15 = vand.u32 4294901760, %v921_v25 }
  0x7f   :  { %4509 = vmatmul.mubr.f32.gmra.mxu0 %v872_v24  ;;  %v5748_v24 = vand.u32 4294901760, %v284_v20  ;;  %v941_v10 = vsub.f32 %v5724_v12, %v7158_v31  ;;  %v932_v17 = vand.u32 4294901760, %v931_v54  ;;  %v7042_v25 = vand.u32 4294901760, %v5758_v37 }
  0x80   :  { %4511 = vmatprep.mubr.f32.mxu0 %v882_v38  ;;  %v7041_v38 = vand.u32 4294901760, %v5740_v34  ;;  %v5776_v49 = vsub.f32 %v287_v22, %v5760_v45 }
  0x81   :  { %4607 = vmatmul.mubr.f32.gmra.mxu1 %v5632_v2  ;;  %v942_v31 = vand.u32 4294901760, %v941_v10 }
  0x82   :  { %4609 = vmatprep.mubr.f32.mxu1 %v5640_v53  ;;  %v5767_v53 = vsub.f32 %v284_v20, %v5748_v24  ;;  %v990_v22 = vand.u32 4294901760, %v5776_v49 }
  0x83   :  { %4512 = vmatmul.mubr.f32.gmra.mxu0 %v892_v52  ;;  %v960_v52 = vand.u32 4294901760, %v5746_v6 }
  0x84   :  { %4514 = vmatprep.mubr.f32.mxu0 %v902_v50  ;;  %v951_v50 = vsub.f32 %v5740_v34, %v7041_v38  ;;  %v971_v38 = vsub.f32 %v5758_v37, %v7042_v25 }
  0x85   :  { %4610 = vmatmul.mubr.f32.gmra.mxu1 %v5646_v3  ;;  %v961_v20 = vsub.f32 %v5746_v6, %v960_v52 }
  0x86   :  { %4612 = vmatprep.mubr.f32.mxu1 %v5648_v0  ;;  %v952_v54 = vand.u32 4294901760, %v951_v50  ;;  %v991_v50 = vsub.f32 %v5776_v49, %v990_v22 }
  0x87   :  { %4515 = vmatmul.mubr.f32.gmra.mxu0 %v912_v11  ;;  %v980_v11 = vand.u32 4294901760, %v5767_v53 }
  0x88   :  { %4517 = vmatprep.mubr.f32.mxu0 %v922_v15  ;;  %v962_v15 = vand.u32 4294901760, %v961_v20  ;;  %v7161_v20 = vand.u32 4294901760, %v5112_v23 }
  0x89   :  { %4613 = vmatmul.mubr.f32.gmra.mxu1 %v5671_v46  ;;  %v981_v10 = vsub.f32 %v5767_v53, %v980_v11 }
  0x8a   :  { %4615 = vmatprep.mubr.f32.mxu1 %v5678_v43 }
  0x8b   :  { %4518 = vmatmul.mubr.f32.gmra.mxu0 %v932_v17  ;;  %v972_v17 = vand.u32 4294901760, %v971_v38  ;;  %v982_v25 = vand.u32 4294901760, %v981_v10  ;;  %v7159_v38 = vand.u32 4294901760, %v5101_v19  ;;  %v7191_v10 = vld [vmem:[#allocation41_spill] sm:$0xff] }
  0x8c   :  { %4520 = vmatprep.mubr.f32.mxu0 %v942_v31  ;;  %v992_v31 = vand.u32 4294901760, %v991_v50  ;;  %v7195_v50 = vld [vmem:[#allocation44_spill] sm:$0xff] }
  0x8d   :  { %4616 = vmatmul.mubr.f32.gmra.mxu1 %v5699_v59 }
  0x8e   :  { %4618 = vmatprep.mubr.f32.mxu1 %v5704_v62 }
  0x8f   :  { %4521 = vmatmul.mubr.f32.gmra.mxu0 %v952_v54  ;;  %v7162_v54 = vand.u32 4294901760, %v5124_v30 }
  0x90   :  { %4523 = vmatprep.mubr.f32.mxu0 %v962_v15  ;;  %v7189_v15 = vld [vmem:[#allocation39_spill] sm:$0xff] }
  0x91   :  { %4619 = vmatmul.mubr.f32.gmra.mxu1 %v5721_v39 }
  0x92   :  { %4621 = vmatprep.mubr.f32.mxu1 %v5726_v55 }
  0x93   :  { %4524 = vmatmul.mubr.f32.gmra.mxu0 %v972_v17  ;;  %v7193_v17 = vld [vmem:[#allocation42_spill] sm:$0xff] }
  0x94   :  { %4526 = vmatprep.mubr.f32.mxu0 %v982_v25  ;;  %v7160_v25 = vand.u32 4294901760, %v5105_v21 }
  0x95   :  { %4622 = vmatmul.mubr.f32.gmra.mxu1 %v5742_v13 }
  0x96   :  { %4624 = vmatprep.mubr.f32.mxu1 %v5748_v24 }
  0x97   :  { %4527 = vmatmul.mubr.f32.gmra.mxu0 %v992_v31  ;;  %v7196_v31 = vand.u32 4294901760, %v7193_v17 }
  0x98   :  { %4629 = vmatprep.mubr.f32.mxu0 %v5101_v19  ;;  %v7163_v19 = vand.u32 4294901760, %v5128_v32 }
  0x99   :  { %4625 = vmatmul.mubr.f32.gmra.mxu1 %v5760_v45 }
  0x9a   :  { %4727 = vmatprep.mubr.f32.mxu1 %v7159_v38 }
  0x9b   :  { %4630 = vmatmul.mubr.f32.vlgmr.msra.gmra.mxu0 %v5105_v21  ;;  %v7164_v21 = vand.u32 4294901760, %v5131_v33 }
  0x9c   :  { %4824 = vmatpush3.xpose.msra.mxu0 %v5120_v28  ;;  %4632 = vmatprep.mubr.f32.mxu0 %v5112_v23  ;;  %v7166_v23 = vand.u32 4294901760, %v5177_v7  ;;  %v7167_v28 = vand.u32 4294901760, %v5186_v14 }
  0x9d   :  { %4728 = vmatmul.mubr.f32.vlgmr.msra.gmra.mxu1 %v7160_v25  ;;  %v7197_v25 = vld [vmem:[#allocation46_spill] sm:$0xff] }
  0x9e   :  { %4922 = vmatpush3.xpose.msra.mxu1 %v5087_v9  ;;  %4730 = vmatprep.mubr.f32.mxu1 %v7161_v20  ;;  %v7165_v9 = vand.u32 4294901760, %v5149_v42  ;;  %v7198_v20 = vand.u32 4294901760, %v7195_v50 }
  0x9f   :  { %4633 = vmatmul.mubr.f32.gmra.mxu0 %v5124_v30  ;;  %v7168_v30 = vand.u32 4294901760, %v5189_v16 }
  0xa0   :  { %4635 = vmatprep.mubr.f32.mxu0 %v5128_v32  ;;  %v7169_v32 = vand.u32 4294901760, %v5196_v26 }
  0xa1   :  { %4731 = vmatmul.mubr.f32.gmra.mxu1 %v7162_v54  ;;  %v7199_v54 = vld [vmem:[#allocation49_spill] sm:$0xff] }
  0xa2   :  { %4733 = vmatprep.mubr.f32.mxu1 %v7163_v19  ;;  %v5051_v19 = vmov 0  }
  0xa3   :  { %4636 = vmatmul.mubr.f32.gmra.mxu0 %v5131_v33  ;;  %v7170_v33 = vand.u32 4294901760, %v5199_v35  ;;  %5024 = vset.pattern.permute.xlu0 %v5051_v19 }
  0xa4   :  { %4638 = vmatprep.mubr.f32.mxu0 %v5149_v42  ;;  %v7171_v42 = vand.u32 4294901760, %v5215_v48  ;;  %5025 = vset.pattern.permute.xlu1 %v5051_v19 }
  0xa5   :  { %4734 = vmatmul.mubr.f32.gmra.mxu1 %v7164_v21  ;;  %v3447_v21 = vld [vmem:[%s6862_s3] sm:$0xff] }
  0xa6   :  { %4736 = vmatprep.mubr.f32.mxu1 %v7165_v9  ;;  %3454 = vperm.xlu0 %5024, %v3447_v21  }
  0xa7   :  { %4639 = vmatmul.mubr.f32.gmra.mxu0 %v5177_v7  ;;  %v7172_v7 = vand.u32 4294901760, %v5226_v51 }
  0xa8   :  { %4641 = vmatprep.mubr.f32.mxu0 %v5186_v14  ;;  %v7173_v14 = vand.u32 4294901760, %v5236_v60 }
  0xa9   :  { %4737 = vmatmul.mubr.f32.gmra.mxu1 %v7166_v23 }
  0xaa   :  { %4739 = vmatprep.mubr.f32.mxu1 %v7167_v28  ;;  %v7200_v28 = vand.u32 4294901760, %v7197_v25 }
  0xab   :  { %4642 = vmatmul.mubr.f32.gmra.mxu0 %v5189_v16  ;;  %v7174_v16 = vand.u32 4294901760, %v5257_v57 }
  0xac   :  { %4644 = vmatprep.mubr.f32.mxu0 %v5196_v26  ;;  %v7175_v26 = vand.u32 4294901760, %v5262_v56 }
  0xad   :  { %4740 = vmatmul.mubr.f32.gmra.mxu1 %v7168_v30 }
  0xae   :  { %4742 = vmatprep.mubr.f32.mxu1 %v7169_v32 }
  0xaf   :  { %4645 = vmatmul.mubr.f32.gmra.mxu0 %v5199_v35  ;;  %v7176_v35 = vand.u32 4294901760, %v5271_v1 }
  0xb0   :  { %4647 = vmatprep.mubr.f32.mxu0 %v5215_v48  ;;  %v7177_v48 = vand.u32 4294901760, %v5285_v4 }
  0xb1   :  { %4743 = vmatmul.mubr.f32.gmra.mxu1 %v7170_v33  ;;  %v7201_v33 = vld [vmem:[#allocation50_spill] sm:$0xff] }
  0xb2   :  { %4745 = vmatprep.mubr.f32.mxu1 %v7171_v42  ;;  %v7202_v42 = vand.u32 4294901760, %v7199_v54 }
  0xb3   :  { %4648 = vmatmul.mubr.f32.gmra.mxu0 %v5226_v51  ;;  %v7178_v51 = vand.u32 4294901760, %v5302_v47 }
  0xb4   :  { %4650 = vmatprep.mubr.f32.mxu0 %v5236_v60  ;;  %v7179_v60 = vand.u32 4294901760, %v5308_v29 }
  0xb5   :  { %4746 = vmatmul.mubr.f32.gmra.mxu1 %v7172_v7 }
  0xb6   :  { %4748 = vmatprep.mubr.f32.mxu1 %v7173_v14  ;;  %v7203_v14 = vld [vmem:[#allocation52_spill] sm:$0xff] }
  0xb7   :  { %4651 = vmatmul.mubr.f32.gmra.mxu0 %v5257_v57  ;;  %v7180_v57 = vand.u32 4294901760, %v5316_v8 }
  0xb8   :  { %4653 = vmatprep.mubr.f32.mxu0 %v5262_v56  ;;  %v7181_v56 = vand.u32 4294901760, %v5324_v58 }
  0xb9   :  { %4749 = vmatmul.mubr.f32.gmra.mxu1 %v7174_v16 }
  0xba   :  { %4751 = vmatprep.mubr.f32.mxu1 %v7175_v26 }
  0xbb   :  { %4654 = vmatmul.mubr.f32.gmra.mxu0 %v5271_v1  ;;  %v7185_v1 = vld [vmem:[#allocation34_spill] sm:$0xff] }
  0xbc   :  { %4656 = vmatprep.mubr.f32.mxu0 %v5285_v4  ;;  %v7186_v4 = vand.u32 4294901760, %v5371_v63 }
  0xbd   :  { %4752 = vmatmul.mubr.f32.gmra.mxu1 %v7176_v35 }
  0xbe   :  { %4754 = vmatprep.mubr.f32.mxu1 %v7177_v48  ;;  %v7204_v48 = vand.u32 4294901760, %v7201_v33 }
  0xbf   :  { %4657 = vmatmul.mubr.f32.gmra.mxu0 %v5302_v47  ;;  %v7182_v47 = vand.u32 4294901760, %v5337_v5 }
  0xc0   :  { %4659 = vmatprep.mubr.f32.mxu0 %v5308_v29  ;;  %v7183_v29 = vand.u32 4294901760, %v5353_v27 }
  0xc1   :  { %4755 = vmatmul.mubr.f32.gmra.mxu1 %v7178_v51 }
  0xc2   :  { %4757 = vmatprep.mubr.f32.mxu1 %v7179_v60 }
  0xc3   :  { %4660 = vmatmul.mubr.f32.gmra.mxu0 %v5316_v8  ;;  %v7184_v8 = vand.u32 4294901760, %v5362_v40 }
  0xc4   :  { %4662 = vmatprep.mubr.f32.mxu0 %v5324_v58  ;;  %v7187_v58 = vld [vmem:[#allocation36_spill] sm:$0xff] }
  0xc5   :  { %4758 = vmatmul.mubr.f32.gmra.mxu1 %v7180_v57  ;;  %v7205_v57 = vld [vmem:[#allocation54_spill] sm:$0xff] }
  0xc6   :  { %4760 = vmatprep.mubr.f32.mxu1 %v7181_v56  ;;  %v7206_v56 = vand.u32 4294901760, %v7203_v14 }
  0xc7   :  { %4663 = vmatmul.mubr.f32.gmra.mxu0 %v5337_v5  ;;  %v7188_v5 = vand.u32 4294901760, %v7185_v1 }
  0xc8   :  { %4665 = vmatprep.mubr.f32.mxu0 %v5353_v27  ;;  %v7190_v27 = vand.u32 4294901760, %v7187_v58 }
  0xc9   :  { %4761 = vmatmul.mubr.f32.gmra.mxu1 %v7182_v47 }
  0xca   :  { %4763 = vmatprep.mubr.f32.mxu1 %v7183_v29  ;;  %v7207_v29 = vld [vmem:[#allocation56_spill] sm:$0xff] }
  0xcb   :  { %4666 = vmatmul.mubr.f32.gmra.mxu0 %v5362_v40  ;;  %v7192_v40 = vand.u32 4294901760, %v7189_v15 }
  0xcc   :  { %4668 = vmatprep.mubr.f32.mxu0 %v5371_v63  ;;  %v7194_v63 = vand.u32 4294901760, %v7191_v10 }
  0xcd   :  { %4764 = vmatmul.mubr.f32.gmra.mxu1 %v7184_v8 }
  0xce   :  { %4766 = vmatprep.mubr.f32.mxu1 %v7186_v4 }
  0xcf   :  { %4669 = vmatmul.mubr.f32.gmra.mxu0 %v7185_v1 }
  0xd0   :  { %4671 = vmatprep.mubr.f32.mxu0 %v7187_v58  ;;  %v7208_v58 = vand.u32 4294901760, %v7205_v57 }
  0xd1   :  { %4767 = vmatmul.mubr.f32.gmra.mxu1 %v7188_v5 }
  0xd2   :  { %4769 = vmatprep.mubr.f32.mxu1 %v7190_v27  ;;  %v7209_v27 = vld [vmem:[#allocation59_spill] sm:$0xff] }
  0xd3   :  { %4672 = vmatmul.mubr.f32.gmra.mxu0 %v7189_v15 }
  0xd4   :  { %4674 = vmatprep.mubr.f32.mxu0 %v7191_v10  ;;  %v7210_v10 = vand.u32 4294901760, %v7207_v29 }
  0xd5   :  { %4770 = vmatmul.mubr.f32.gmra.mxu1 %v7192_v40 }
  0xd6   :  { %4772 = vmatprep.mubr.f32.mxu1 %v7194_v63 }
  0xd7   :  { %4675 = vmatmul.mubr.f32.gmra.mxu0 %v7193_v17  ;;  %v7211_v17 = vld [vmem:[#allocation61_spill] sm:$0xff] }
  0xd8   :  { %4677 = vmatprep.mubr.f32.mxu0 %v7195_v50  ;;  %v7214_v19 = vand.u32 4294901760, %v7211_v17 }
  0xd9   :  { %4773 = vmatmul.mubr.f32.gmra.mxu1 %v7196_v31 }
  0xda   :  { %4775 = vmatprep.mubr.f32.mxu1 %v7198_v20 }
  0xdb   :  { %v4435_v38 = vpop.f32.mrf.mxu0  ;;  %4678 = vmatmul.mubr.f32.gmra.mxu0 %v7197_v25 }
  0xdc   :  { %4680 = vmatprep.mubr.f32.mxu0 %v7199_v54  ;;  %v7213_v54 = vld [vmem:[#allocation62_spill] sm:$0xff] }
  0xdd   :  { %v364_v9 = vpop.f32.mrf.mxu0  ;;  %v4533_v23 = vpop.f32.mrf.mxu1  ;;  %4776 = vmatmul.mubr.f32.gmra.mxu1 %v7200_v28 }
  0xde   :  { %v5909_v30 = vadd.f32 %v4533_v23, %v4435_v38  ;;  %4778 = vmatprep.mubr.f32.mxu1 %v7202_v42  ;;  %v7212_v38 = vand.u32 4294901760, %v7209_v27 }
  0xdf   :  { %v4438_v32 = vpop.f32.mrf.mxu0  ;;  %4681 = vmatmul.mubr.f32.gmra.mxu0 %v7201_v33  ;;  %v1070_v7 = vpop.f32.mrf.mxu1  ;;  %v7216_v33 = vand.u32 4294901760, %v7213_v54 }
  0xe0   :  { %4683 = vmatprep.mubr.f32.mxu0 %v7203_v14  ;;  %v5915_v16 = vadd.f32 %v1070_v7, %v364_v9  ;;  %v7215_v9 = vld [vmem:[#allocation64_spill] sm:$0xff]  ;;  %v7217_v14 = vld [vmem:[#allocation66_spill] sm:$0xff] }
  0xe1   :  { %v384_v26 = vpop.f32.mrf.mxu0  ;;  %v4536_v35 = vpop.f32.mrf.mxu1  ;;  %4779 = vmatmul.mubr.f32.gmra.mxu1 %v7204_v48  ;;  %v7219_v48 = vld [vmem:[#allocation69_spill] sm:$0xff] }
  0xe2   :  { %v5919_v51 = vadd.f32 %v4536_v35, %v4438_v32  ;;  %4781 = vmatprep.mubr.f32.mxu1 %v7206_v56 }
  0xe3   :  { %v4441_v60 = vpop.f32.mrf.mxu0  ;;  %4684 = vmatmul.mubr.f32.gmra.mxu0 %v7205_v57  ;;  %v1082_v47 = vpop.f32.mrf.mxu1 }
  0xe4   :  { %4686 = vmatprep.mubr.f32.mxu0 %v7207_v29  ;;  %v5925_v8 = vadd.f32 %v1082_v47, %v384_v26  ;;  %v7218_v26 = vand.u32 4294901760, %v7215_v9  ;;  %v7220_v47 = vand.u32 4294901760, %v7217_v14 }
  0xe5   :  { %v404_v1 = vpop.f32.mrf.mxu0  ;;  %v4539_v4 = vpop.f32.mrf.mxu1  ;;  %4782 = vmatmul.mubr.f32.gmra.mxu1 %v7208_v58  ;;  %v7222_v58 = vand.u32 4294901760, %v7219_v48 }
  0xe6   :  { %v5929_v5 = vadd.f32 %v4539_v4, %v4441_v60  ;;  %4784 = vmatprep.mubr.f32.mxu1 %v7210_v10  ;;  %v7221_v4 = vld [vmem:[#allocation70_spill] sm:$0xff] }
  0xe7   :  { %v4444_v15 = vpop.f32.mrf.mxu0  ;;  %4687 = vmatmul.mubr.f32.gmra.mxu0 %v7209_v27  ;;  %v1094_v40 = vpop.f32.mrf.mxu1  ;;  %v7223_v27 = vld [vmem:[#allocation72_spill] sm:$0xff] }
  0xe8   :  { %4689 = vmatprep.mubr.f32.mxu0 %v7211_v17  ;;  %v5935_v63 = vadd.f32 %v1094_v40, %v404_v1 }
  0xe9   :  { %v424_v50 = vpop.f32.mrf.mxu0  ;;  %v4542_v31 = vpop.f32.mrf.mxu1  ;;  %4785 = vmatmul.mubr.f32.gmra.mxu1 %v7212_v38 }
  0xea   :  { %v5939_v25 = vadd.f32 %v4542_v31, %v4444_v15  ;;  %4787 = vmatprep.mubr.f32.mxu1 %v7214_v19 }
  0xeb   :  { %v4447_v20 = vpop.f32.mrf.mxu0  ;;  %4690 = vmatmul.mubr.f32.gmra.mxu0 %v7213_v54  ;;  %v1106_v21 = vpop.f32.mrf.mxu1  ;;  %v7226_v54 = vand.u32 4294901760, %v7223_v27 }
  0xec   :  { %4692 = vmatprep.mubr.f32.mxu0 %v7215_v9  ;;  %v5945_v23 = vadd.f32 %v1106_v21, %v424_v50  ;;  %v7224_v50 = vand.u32 4294901760, %v7221_v4  ;;  %v7227_v21 = vld [vmem:[#allocation75_spill] sm:$0xff] }
  0xed   :  { %v444_v28 = vpop.f32.mrf.mxu0  ;;  %v4545_v32 = vpop.f32.mrf.mxu1  ;;  %4788 = vmatmul.mubr.f32.gmra.mxu1 %v7216_v33 }
  0xee   :  { %v5949_v42 = vadd.f32 %v4545_v32, %v4447_v20  ;;  %4790 = vmatprep.mubr.f32.mxu1 %v7218_v26  ;;  %v7225_v20 = vld [vmem:[#allocation74_spill] sm:$0xff]  ;;  %v7229_v26 = vand.u32 4294901760, %v7227_v21 }
  0xef   :  { %v4450_v7 = vpop.f32.mrf.mxu0  ;;  %4693 = vmatmul.mubr.f32.gmra.mxu0 %v7217_v14  ;;  %v1118_v35 = vpop.f32.mrf.mxu1  ;;  %v7228_v33 = vand.u32 4294901760, %v7225_v20 }
  0xf0   :  { %4695 = vmatprep.mubr.f32.mxu0 %v7219_v48  ;;  %v5955_v60 = vadd.f32 %v1118_v35, %v444_v28  ;;  %v7230_v48 = vld [vmem:[#allocation77_spill] sm:$0xff] }
  0xf1   :  { %v464_v57 = vpop.f32.mrf.mxu0  ;;  %v4548_v56 = vpop.f32.mrf.mxu1  ;;  %4791 = vmatmul.mubr.f32.gmra.mxu1 %v7220_v47 }
  0xf2   :  { %v5959_v29 = vadd.f32 %v4548_v56, %v4450_v7  ;;  %4793 = vmatprep.mubr.f32.mxu1 %v7222_v58 }
  0xf3   :  { %v4453_v1 = vpop.f32.mrf.mxu0  ;;  %4696 = vmatmul.mubr.f32.gmra.mxu0 %v7221_v4  ;;  %v1130_v15 = vpop.f32.mrf.mxu1  ;;  %v7231_v4 = vand.u32 4294901760, %v5626_v61 }
  0xf4   :  { %4698 = vmatprep.mubr.f32.mxu0 %v7223_v27  ;;  %v5965_v10 = vadd.f32 %v1130_v15, %v464_v57  ;;  %v3448_v57 = vld [vmem:[%s6862_s3 + $0x8] sm:$0xff]  ;;  %v7232_v27 = vld [vmem:[#allocation79_spill] sm:$0xff] }
  0xf5   :  { %v484_v40 = vpop.f32.mrf.mxu0  ;;  %v4551_v17 = vpop.f32.mrf.mxu1  ;;  %4794 = vmatmul.mubr.f32.gmra.mxu1 %v7224_v50  ;;  %3459 = vperm.xlu0 %5024, %v3448_v57   ;;  %v7234_v50 = vld [vmem:[#allocation80_spill] sm:$0xff] }
  0xf6   :  { %v5969_v31 = vadd.f32 %v4551_v17, %v4453_v1  ;;  %4796 = vmatprep.mubr.f32.mxu1 %v7226_v54 }
  0xf7   :  { %v4456_v38 = vpop.f32.mrf.mxu0  ;;  %4699 = vmatmul.mubr.f32.gmra.mxu0 %v7225_v20  ;;  %v1142_v19 = vpop.f32.mrf.mxu1 }
  0xf8   :  { %4701 = vmatprep.mubr.f32.mxu0 %v7227_v21  ;;  %v5975_v9 = vadd.f32 %v1142_v19, %v484_v40  ;;  %v7233_v40 = vand.u32 4294901760, %v7230_v48  ;;  %v7235_v19 = vand.u32 4294901760, %v7232_v27 }
  0xf9   :  { %v504_v28 = vpop.f32.mrf.mxu0  ;;  %v4554_v32 = vpop.f32.mrf.mxu1  ;;  %4797 = vmatmul.mubr.f32.gmra.mxu1 %v7228_v33 }
  0xfa   :  { %v5979_v7 = vadd.f32 %v4554_v32, %v4456_v38  ;;  %4799 = vmatprep.mubr.f32.mxu1 %v7229_v26  ;;  %v7237_v32 = vand.u32 4294901760, %v7234_v50 }
  0xfb   :  { %v4459_v14 = vpop.f32.mrf.mxu0  ;;  %4702 = vmatmul.mubr.f32.gmra.mxu0 %v5626_v61  ;;  %v1154_v35 = vpop.f32.mrf.mxu1 }
  0xfc   :  { %4704 = vmatprep.mubr.f32.mxu0 %v7230_v48  ;;  %v5988_v56 = vadd.f32 %v1154_v35, %v504_v28  ;;  %v7236_v28 = vld [vmem:[#allocation81_spill] sm:$0xff] }
  0xfd   :  { %v524_v47 = vpop.f32.mrf.mxu0  ;;  %v4557_v1 = vpop.f32.mrf.mxu1  ;;  %4800 = vmatmul.mubr.f32.gmra.mxu1 %v7231_v4  ;;  %v7239_v57 = vand.u32 4294901760, %v7236_v28 }
  0xfe   :  { %v5992_v58 = vadd.f32 %v4557_v1, %v4459_v14  ;;  %4802 = vmatprep.mubr.f32.mxu1 %v7233_v40  ;;  %v7238_v14 = vld [vmem:[#allocation82_spill] sm:$0xff] }
  0xff   :  { %v4462_v15 = vpop.f32.mrf.mxu0  ;;  %4705 = vmatmul.mubr.f32.gmra.mxu0 %v7232_v27  ;;  %v1166_v17 = vpop.f32.mrf.mxu1  ;;  %v7240_v4 = vand.u32 4294901760, %v7238_v14 }
 0x100   :  { %4707 = vmatprep.mubr.f32.mxu0 %v7234_v50  ;;  %v5998_v38 = vadd.f32 %v1166_v17, %v524_v47  ;;  %v7241_v50 = vand.u32 4294901760, %v5690_v36 }
 0x101   :  { %v544_v20 = vpop.f32.mrf.mxu0  ;;  %v4560_v54 = vpop.f32.mrf.mxu1  ;;  %4803 = vmatmul.mubr.f32.gmra.mxu1 %v7235_v19  ;;  %v7242_v19 = vand.u32 4294901760, %v5697_v18 }
 0x102   :  { %v6002_v61 = vadd.f32 %v4560_v54, %v4462_v15  ;;  %4805 = vmatprep.mubr.f32.mxu1 %v7237_v32 }
 0x103   :  { %v4465_v21 = vpop.f32.mrf.mxu0  ;;  %4708 = vmatmul.mubr.f32.gmra.mxu0 %v7236_v28  ;;  %v1178_v33 = vpop.f32.mrf.mxu1 }
 0x104   :  { %4710 = vmatprep.mubr.f32.mxu0 %v7238_v14  ;;  %v6008_v26 = vadd.f32 %v1178_v33, %v544_v20  ;;  %v7243_v14 = vand.u32 4294901760, %v5719_v41 }
 0x105   :  { %v564_v35 = vpop.f32.mrf.mxu0  ;;  %v4563_v48 = vpop.f32.mrf.mxu1  ;;  %4806 = vmatmul.mubr.f32.gmra.mxu1 %v7239_v57 }
 0x106   :  { %v6012_v47 = vadd.f32 %v4563_v48, %v4465_v21  ;;  %4808 = vmatprep.mubr.f32.mxu1 %v7240_v4  ;;  %v7244_v48 = vand.u32 4294901760, %v5724_v12 }
 0x107   :  { %v4468_v1 = vpop.f32.mrf.mxu0  ;;  %4711 = vmatmul.mubr.f32.gmra.mxu0 %v5690_v36  ;;  %v1190_v15 = vpop.f32.mrf.mxu1 }
 0x108   :  { %4713 = vmatprep.mubr.f32.mxu0 %v5697_v18  ;;  %v6018_v27 = vadd.f32 %v1190_v15, %v564_v35  ;;  %v7245_v15 = vand.u32 4294901760, %v5740_v34 }
 0x109   :  { %v584_v40 = vpop.f32.mrf.mxu0  ;;  %v4566_v17 = vpop.f32.mrf.mxu1  ;;  %4809 = vmatmul.mubr.f32.gmra.mxu1 %v7241_v50 }
 0x10a   :  { %v6022_v20 = vadd.f32 %v4566_v17, %v4468_v1  ;;  %4811 = vmatprep.mubr.f32.mxu1 %v7242_v19  ;;  %v7246_v19 = vand.u32 4294901760, %v5758_v37 }
 0x10b   :  { %v4471_v54 = vpop.f32.mrf.mxu0  ;;  %4714 = vmatmul.mubr.f32.gmra.mxu0 %v5719_v41  ;;  %v1202_v21 = vpop.f32.mrf.mxu1 }
 0x10c   :  { %4716 = vmatprep.mubr.f32.mxu0 %v5724_v12  ;;  %v6028_v28 = vadd.f32 %v1202_v21, %v584_v40 }
 0x10d   :  { %v604_v32 = vpop.f32.mrf.mxu0  ;;  %v4569_v33 = vpop.f32.mrf.mxu1  ;;  %4812 = vmatmul.mubr.f32.gmra.mxu1 %v7243_v14 }
 0x10e   :  { %v6032_v36 = vadd.f32 %v4569_v33, %v4471_v54  ;;  %4814 = vmatprep.mubr.f32.mxu1 %v7244_v48  ;;  %v7248_v48 = vld [vmem:[#allocation6_spill] sm:$0xff] }
 0x10f   :  { %v4474_v35 = vpop.f32.mrf.mxu0  ;;  %4717 = vmatmul.mubr.f32.gmra.mxu0 %v5740_v34  ;;  %v1214_v18 = vpop.f32.mrf.mxu1 }
 0x110   :  { %4719 = vmatprep.mubr.f32.mxu0 %v5746_v6  ;;  %v6038_v57 = vadd.f32 %v1214_v18, %v604_v32 }
 0x111   :  { %v624_v1 = vpop.f32.mrf.mxu0  ;;  %v4572_v4 = vpop.f32.mrf.mxu1  ;;  %4815 = vmatmul.mubr.f32.gmra.mxu1 %v7245_v15 }
 0x112   :  { %v6042_v41 = vadd.f32 %v4572_v4, %v4474_v35  ;;  %4817 = vmatprep.mubr.f32.mxu1 %v960_v52  ;;  %v7247_v52 = vld [vmem:[#allocation5_spill] sm:$0xff] }
 0x113   :  { %v4477_v40 = vpop.f32.mrf.mxu0  ;;  %4720 = vmatmul.mubr.f32.gmra.mxu0 %v5758_v37  ;;  %v1226_v12 = vpop.f32.mrf.mxu1 }
 0x114   :  { %4722 = vmatprep.mubr.f32.mxu0 %v5767_v53  ;;  %v6048_v17 = vadd.f32 %v1226_v12, %v624_v1  ;;  %v7249_v53 = vld [vmem:[#allocation7_spill] sm:$0xff] }
 0x115   :  { %v644_v50 = vpop.f32.mrf.mxu0  ;;  %v4575_v54 = vpop.f32.mrf.mxu1  ;;  %4818 = vmatmul.mubr.f32.gmra.mxu1 %v7246_v19 }
 0x116   :  { %v6052_v34 = vadd.f32 %v4575_v54, %v4477_v40  ;;  %4820 = vmatprep.mubr.f32.mxu1 %v980_v11  ;;  %v3449_v11 = vld [vmem:[%s6862_s3 + $0x10] sm:$0xff]  ;;  %v7250_v40 = vld [vmem:[#allocation8_spill] sm:$0xff] }
 0x117   :  { %v4480_v21 = vpop.f32.mrf.mxu0  ;;  %4723 = vmatmul.mubr.f32.gmra.mxu0 %v5776_v49  ;;  %v1238_v6 = vpop.f32.mrf.mxu1  ;;  %3464 = vperm.xlu1 %5025, %v3449_v11  }
 0x118   :  { %4825 = vmatprep.mubr.f32.mxu0 %v7247_v52  ;;  %v6058_v32 = vadd.f32 %v1238_v6, %v644_v50  ;;  %v7251_v50 = vld [vmem:[#allocation9_spill] sm:$0xff] }
 0x119   :  { %v664_v33 = vpop.f32.mrf.mxu0  ;;  %v4578_v14 = vpop.f32.mrf.mxu1  ;;  %4821 = vmatmul.mubr.f32.gmra.mxu1 %v990_v22 }
 0x11a   :  { %v6062_v37 = vadd.f32 %v4578_v14, %v4480_v21  ;;  %4923 = vmatprep.mubr.f32.mxu1 %v7247_v52 }
 0x11b   :  { %v4483_v35 = vpop.f32.mrf.mxu0  ;;  %4826 = vmatmul.mubr.f32.vlgmr.msra.gmra.mxu0 %v7248_v48  ;;  %v1250_v18 = vpop.f32.mrf.mxu1 }
 0x11c   :  { %4828 = vmatprep.mubr.f32.mxu0 %v7249_v53  ;;  %v6070_v1 = vadd.f32 %v1250_v18, %v664_v33  ;;  %v7252_v33 = vld [vmem:[#allocation10_spill] sm:$0xff] }
 0x11d   :  { %v684_v4 = vpop.f32.mrf.mxu0  ;;  %v4581_v49 = vpop.f32.mrf.mxu1  ;;  %4924 = vmatmul.mubr.f32.vlgmr.msra.gmra.mxu1 %v7248_v48 }
 0x11e   :  { %v6073_v22 = vadd.f32 %v4581_v49, %v4483_v35  ;;  %4926 = vmatprep.mubr.f32.mxu1 %v7249_v53  ;;  %v7253_v35 = vld [vmem:[#allocation11_spill] sm:$0xff]  ;;  %v7256_v49 = vld [vmem:[#allocation12_spill] sm:$0xff] }
 0x11f   :  { %v4486_v15 = vpop.f32.mrf.mxu0  ;;  %4829 = vmatmul.mubr.f32.gmra.mxu0 %v7250_v40  ;;  %v1262_v12 = vpop.f32.mrf.mxu1 }
 0x120   :  { %4831 = vmatprep.mubr.f32.mxu0 %v7251_v50  ;;  %v6078_v54 = vadd.f32 %v1262_v12, %v684_v4 }
 0x121   :  { %v704_v19 = vpop.f32.mrf.mxu0  ;;  %v4584_v21 = vpop.f32.mrf.mxu1  ;;  %4927 = vmatmul.mubr.f32.gmra.mxu1 %v7250_v40  ;;  %v7257_v40 = vld [vmem:[#allocation13_spill] sm:$0xff] }
 0x122   :  { %v6081_v6 = vadd.f32 %v4584_v21, %v4486_v15  ;;  %4929 = vmatprep.mubr.f32.mxu1 %v7251_v50 }
 0x123   :  { %v4489_v52 = vpop.f32.mrf.mxu0  ;;  %4832 = vmatmul.mubr.f32.gmra.mxu0 %v7252_v33  ;;  %v1274_v14 = vpop.f32.mrf.mxu1 }
 0x124   :  { %4834 = vmatprep.mubr.f32.mxu0 %v7253_v35  ;;  %v6086_v48 = vadd.f32 %v1274_v14, %v704_v19 }
 0x125   :  { %v724_v18 = vpop.f32.mrf.mxu0  ;;  %v4587_v53 = vpop.f32.mrf.mxu1  ;;  %4930 = vmatmul.mubr.f32.gmra.mxu1 %v7252_v33  ;;  %v7260_v33 = vld [vmem:[#allocation14_spill] sm:$0xff] }
 0x126   :  { %7254 = vst [vmem:[#allocation34_spill] sm:$0xff] %v6086_v48  ;;  %v6089_v11 = vadd.f32 %v4587_v53, %v4489_v52  ;;  %4932 = vmatprep.mubr.f32.mxu1 %v7253_v35  ;;  %v7261_v53 = vld [vmem:[#allocation15_spill] sm:$0xff] }
 0x127   :  { %v4492_v4 = vpop.f32.mrf.mxu0  ;;  %4835 = vmatmul.mubr.f32.gmra.mxu0 %v7256_v49  ;;  %v1286_v15 = vpop.f32.mrf.mxu1 }
 0x128   :  { %7255 = vst [vmem:[#allocation36_spill] sm:$0xff] %v6089_v11  ;;  %4837 = vmatprep.mubr.f32.mxu0 %v7257_v40  ;;  %v6094_v12 = vadd.f32 %v1286_v15, %v724_v18 }
 0x129   :  { %v744_v50 = vpop.f32.mrf.mxu0  ;;  %v4590_v21 = vpop.f32.mrf.mxu1  ;;  %4933 = vmatmul.mubr.f32.gmra.mxu1 %v7256_v49  ;;  %v7264_v49 = vld [vmem:[#allocation16_spill] sm:$0xff] }
 0x12a   :  { %7258 = vst [vmem:[#allocation39_spill] sm:$0xff] %v6094_v12  ;;  %v6097_v19 = vadd.f32 %v4590_v21, %v4492_v4  ;;  %4935 = vmatprep.mubr.f32.mxu1 %v7257_v40  ;;  %v7265_v21 = vld [vmem:[#allocation17_spill] sm:$0xff] }
 0x12b   :  { %v4495_v14 = vpop.f32.mrf.mxu0  ;;  %4838 = vmatmul.mubr.f32.gmra.mxu0 %v7260_v33  ;;  %v1298_v52 = vpop.f32.mrf.mxu1 }
 0x12c   :  { %7259 = vst [vmem:[#allocation41_spill] sm:$0xff] %v6097_v19  ;;  %4840 = vmatprep.mubr.f32.mxu0 %v7261_v53  ;;  %v6102_v35 = vadd.f32 %v1298_v52, %v744_v50 }
 0x12d   :  { %v764_v11 = vpop.f32.mrf.mxu0  ;;  %v4593_v48 = vpop.f32.mrf.mxu1  ;;  %4936 = vmatmul.mubr.f32.gmra.mxu1 %v7260_v33  ;;  %v7268_v33 = vld [vmem:[#allocation18_spill] sm:$0xff] }
 0x12e   :  { %7262 = vst [vmem:[#allocation42_spill] sm:$0xff] %v6102_v35  ;;  %v6105_v18 = vadd.f32 %v4593_v48, %v4495_v14  ;;  %4938 = vmatprep.mubr.f32.mxu1 %v7261_v53  ;;  %v7269_v14 = vld [vmem:[#allocation19_spill] sm:$0xff] }
 0x12f   :  { %v4498_v15 = vpop.f32.mrf.mxu0  ;;  %4841 = vmatmul.mubr.f32.gmra.mxu0 %v7264_v49  ;;  %v1310_v4 = vpop.f32.mrf.mxu1 }
 0x130   :  { %7263 = vst [vmem:[#allocation44_spill] sm:$0xff] %v6105_v18  ;;  %4843 = vmatprep.mubr.f32.mxu0 %v7265_v21  ;;  %v6110_v40 = vadd.f32 %v1310_v4, %v764_v11 }
 0x131   :  { %v784_v19 = vpop.f32.mrf.mxu0  ;;  %v4596_v12 = vpop.f32.mrf.mxu1  ;;  %4939 = vmatmul.mubr.f32.gmra.mxu1 %v7264_v49  ;;  %v7272_v49 = vld [vmem:[#allocation20_spill] sm:$0xff] }
 0x132   :  { %7266 = vst [vmem:[#allocation46_spill] sm:$0xff] %v6110_v40  ;;  %v6113_v50 = vadd.f32 %v4596_v12, %v4498_v15  ;;  %4941 = vmatprep.mubr.f32.mxu1 %v7265_v21  ;;  %v7273_v15 = vld [vmem:[#allocation21_spill] sm:$0xff] }
 0x133   :  { %v4501_v52 = vpop.f32.mrf.mxu0  ;;  %4844 = vmatmul.mubr.f32.gmra.mxu0 %v7268_v33  ;;  %v1322_v48 = vpop.f32.mrf.mxu1 }
 0x134   :  { %7267 = vst [vmem:[#allocation49_spill] sm:$0xff] %v6113_v50  ;;  %4846 = vmatprep.mubr.f32.mxu0 %v7269_v14  ;;  %v6118_v53 = vadd.f32 %v1322_v48, %v784_v19 }
 0x135   :  { %v804_v18 = vpop.f32.mrf.mxu0  ;;  %v4599_v35 = vpop.f32.mrf.mxu1  ;;  %4942 = vmatmul.mubr.f32.gmra.mxu1 %v7268_v33  ;;  %v7276_v33 = vld [vmem:[#allocation22_spill] sm:$0xff] }
 0x136   :  { %7270 = vst [vmem:[#allocation50_spill] sm:$0xff] %v6118_v53  ;;  %v6121_v11 = vadd.f32 %v4599_v35, %v4501_v52  ;;  %4944 = vmatprep.mubr.f32.mxu1 %v7269_v14  ;;  %v7277_v52 = vld [vmem:[#allocation23_spill] sm:$0xff]  ;;  %v3450_v14 = vld [vmem:[%s6862_s3 + $0x18] sm:$0xff] }
 0x137   :  { %v4504_v4 = vpop.f32.mrf.mxu0  ;;  %4847 = vmatmul.mubr.f32.gmra.mxu0 %v7272_v49  ;;  %v1334_v12 = vpop.f32.mrf.mxu1  ;;  %3469 = vperm.xlu1 %5025, %v3450_v14  }
 0x138   :  { %7271 = vst [vmem:[#allocation52_spill] sm:$0xff] %v6121_v11  ;;  %4849 = vmatprep.mubr.f32.mxu0 %v7273_v15  ;;  %v6126_v21 = vadd.f32 %v1334_v12, %v804_v18 }
 0x139   :  { %v824_v50 = vpop.f32.mrf.mxu0  ;;  %v4602_v40 = vpop.f32.mrf.mxu1  ;;  %4945 = vmatmul.mubr.f32.gmra.mxu1 %v7272_v49  ;;  %v7280_v49 = vld [vmem:[#allocation24_spill] sm:$0xff] }
 0x13a   :  { %7274 = vst [vmem:[#allocation54_spill] sm:$0xff] %v6126_v21  ;;  %v6129_v19 = vadd.f32 %v4602_v40, %v4504_v4  ;;  %4947 = vmatprep.mubr.f32.mxu1 %v7273_v15 }
 0x13b   :  { %v4507_v48 = vpop.f32.mrf.mxu0  ;;  %4850 = vmatmul.mubr.f32.gmra.mxu0 %v7276_v33  ;;  %v1346_v35 = vpop.f32.mrf.mxu1 }
 0x13c   :  { %7275 = vst [vmem:[#allocation56_spill] sm:$0xff] %v6129_v19  ;;  %4852 = vmatprep.mubr.f32.mxu0 %v7277_v52  ;;  %v6137_v18 = vadd.f32 %v1346_v35, %v824_v50  ;;  %v7281_v19 = vld [vmem:[#allocation25_spill] sm:$0xff] }
 0x13d   :  { %v844_v12 = vpop.f32.mrf.mxu0  ;;  %v4605_v21 = vpop.f32.mrf.mxu1  ;;  %4948 = vmatmul.mubr.f32.gmra.mxu1 %v7276_v33  ;;  %v7284_v33 = vld [vmem:[#allocation26_spill] sm:$0xff] }
 0x13e   :  { %7278 = vst [vmem:[#allocation59_spill] sm:$0xff] %v6137_v18  ;;  %v6140_v40 = vadd.f32 %v4605_v21, %v4507_v48  ;;  %4950 = vmatprep.mubr.f32.mxu1 %v7277_v52  ;;  %v7285_v48 = vld [vmem:[#allocation27_spill] sm:$0xff] }
 0x13f   :  { %v4510_v4 = vpop.f32.mrf.mxu0  ;;  %4853 = vmatmul.mubr.f32.gmra.mxu0 %v7280_v49  ;;  %v1358_v15 = vpop.f32.mrf.mxu1 }
 0x140   :  { %7279 = vst [vmem:[#allocation61_spill] sm:$0xff] %v6140_v40  ;;  %4855 = vmatprep.mubr.f32.mxu0 %v7281_v19  ;;  %v6145_v11 = vadd.f32 %v1358_v15, %v844_v12 }
 0x141   :  { %v864_v53 = vpop.f32.mrf.mxu0  ;;  %v4608_v50 = vpop.f32.mrf.mxu1  ;;  %4951 = vmatmul.mubr.f32.gmra.mxu1 %v7280_v49  ;;  %v7288_v49 = vld [vmem:[#allocation28_spill] sm:$0xff] }
 0x142   :  { %7282 = vst [vmem:[#allocation62_spill] sm:$0xff] %v6145_v11  ;;  %v6148_v35 = vadd.f32 %v4608_v50, %v4510_v4  ;;  %4953 = vmatprep.mubr.f32.mxu1 %v7281_v19  ;;  %v7289_v50 = vld [vmem:[#allocation29_spill] sm:$0xff] }
 0x143   :  { %v4513_v14 = vpop.f32.mrf.mxu0  ;;  %4856 = vmatmul.mubr.f32.gmra.mxu0 %v7284_v33  ;;  %v1370_v21 = vpop.f32.mrf.mxu1 }
 0x144   :  { %7283 = vst [vmem:[#allocation64_spill] sm:$0xff] %v6148_v35  ;;  %4858 = vmatprep.mubr.f32.mxu0 %v7285_v48  ;;  %v6153_v52 = vadd.f32 %v1370_v21, %v864_v53 }
 0x145   :  { %v884_v40 = vpop.f32.mrf.mxu0  ;;  %v4611_v18 = vpop.f32.mrf.mxu1  ;;  %4954 = vmatmul.mubr.f32.gmra.mxu1 %v7284_v33  ;;  %v7292_v33 = vld [vmem:[#allocation30_spill] sm:$0xff] }
 0x146   :  { %7286 = vst [vmem:[#allocation66_spill] sm:$0xff] %v6153_v52  ;;  %v6156_v12 = vadd.f32 %v4611_v18, %v4513_v14  ;;  %4956 = vmatprep.mubr.f32.mxu1 %v7285_v48  ;;  %v7293_v14 = vld [vmem:[#allocation31_spill] sm:$0xff] }
 0x147   :  { %v4516_v15 = vpop.f32.mrf.mxu0  ;;  %4859 = vmatmul.mubr.f32.gmra.mxu0 %v7288_v49  ;;  %v1382_v4 = vpop.f32.mrf.mxu1 }
 0x148   :  { %7287 = vst [vmem:[#allocation69_spill] sm:$0xff] %v6156_v12  ;;  %4861 = vmatprep.mubr.f32.mxu0 %v7289_v50  ;;  %v6161_v19 = vadd.f32 %v1382_v4, %v884_v40 }
 0x149   :  { %v904_v35 = vpop.f32.mrf.mxu0  ;;  %v4614_v11 = vpop.f32.mrf.mxu1  ;;  %4957 = vmatmul.mubr.f32.gmra.mxu1 %v7288_v49  ;;  %v7296_v49 = vld [vmem:[#allocation32_spill] sm:$0xff] }
 0x14a   :  { %7290 = vst [vmem:[#allocation70_spill] sm:$0xff] %v6161_v19  ;;  %v6164_v53 = vadd.f32 %v4614_v11, %v4516_v15  ;;  %4959 = vmatprep.mubr.f32.mxu1 %v7289_v50  ;;  %v7297_v15 = vld [vmem:[#allocation33_spill] sm:$0xff] }
 0x14b   :  { %v4519_v21 = vpop.f32.mrf.mxu0  ;;  %4862 = vmatmul.mubr.f32.gmra.mxu0 %v7292_v33  ;;  %v1394_v18 = vpop.f32.mrf.mxu1 }
 0x14c   :  { %7291 = vst [vmem:[#allocation72_spill] sm:$0xff] %v6164_v53  ;;  %4864 = vmatprep.mubr.f32.mxu0 %v7293_v14  ;;  %v6169_v48 = vadd.f32 %v1394_v18, %v904_v35 }
 0x14d   :  { %v924_v12 = vpop.f32.mrf.mxu0  ;;  %v4617_v52 = vpop.f32.mrf.mxu1  ;;  %4960 = vmatmul.mubr.f32.gmra.mxu1 %v7292_v33  ;;  %v7300_v33 = vld [vmem:[#allocation35_spill] sm:$0xff] }
 0x14e   :  { %7294 = vst [vmem:[#allocation74_spill] sm:$0xff] %v6169_v48  ;;  %v6172_v40 = vadd.f32 %v4617_v52, %v4519_v21  ;;  %4962 = vmatprep.mubr.f32.mxu1 %v7293_v14  ;;  %v7301_v21 = vld [vmem:[#allocation37_spill] sm:$0xff] }
 0x14f   :  { %v4522_v4 = vpop.f32.mrf.mxu0  ;;  %4865 = vmatmul.mubr.f32.gmra.mxu0 %v7296_v49  ;;  %v1406_v11 = vpop.f32.mrf.mxu1 }
 0x150   :  { %7295 = vst [vmem:[#allocation75_spill] sm:$0xff] %v6172_v40  ;;  %4867 = vmatprep.mubr.f32.mxu0 %v7297_v15  ;;  %v6177_v50 = vadd.f32 %v1406_v11, %v924_v12 }
 0x151   :  { %v944_v53 = vpop.f32.mrf.mxu0  ;;  %v4620_v19 = vpop.f32.mrf.mxu1  ;;  %4963 = vmatmul.mubr.f32.gmra.mxu1 %v7296_v49  ;;  %v7303_v49 = vld [vmem:[#allocation38_spill] sm:$0xff] }
 0x152   :  { %7298 = vst [vmem:[#allocation77_spill] sm:$0xff] %v6177_v50  ;;  %v6180_v35 = vadd.f32 %v4620_v19, %v4522_v4  ;;  %4965 = vmatprep.mubr.f32.mxu1 %v7297_v15  ;;  %v7304_v4 = vld [vmem:[#allocation40_spill] sm:$0xff] }
 0x153   :  { %v4525_v18 = vpop.f32.mrf.mxu0  ;;  %4868 = vmatmul.mubr.f32.gmra.mxu0 %v7300_v33  ;;  %v1418_v52 = vpop.f32.mrf.mxu1 }
 0x154   :  { %7299 = vst [vmem:[#allocation79_spill] sm:$0xff] %v6180_v35  ;;  %4870 = vmatprep.mubr.f32.mxu0 %v7301_v21  ;;  %v6185_v14 = vadd.f32 %v1418_v52, %v944_v53 }
 0x155   :  { %v964_v40 = vpop.f32.mrf.mxu0  ;;  %v4623_v48 = vpop.f32.mrf.mxu1  ;;  %4966 = vmatmul.mubr.f32.gmra.mxu1 %v7300_v33  ;;  %v7306_v33 = vld [vmem:[#allocation43_spill] sm:$0xff] }
 0x156   :  { %v6188_v12 = vadd.f32 %v4623_v48, %v4525_v18  ;;  %4968 = vmatprep.mubr.f32.mxu1 %v7301_v21  ;;  %v7307_v21 = vld [vmem:[#allocation45_spill] sm:$0xff] }
 0x157   :  { %v4528_v11 = vpop.f32.mrf.mxu0  ;;  %4871 = vmatmul.mubr.f32.gmra.mxu0 %v7303_v49  ;;  %v1430_v19 = vpop.f32.mrf.mxu1 }
 0x158   :  { %7302 = vst [vmem:[#allocation80_spill] sm:$0xff] %v6188_v12  ;;  %4873 = vmatprep.mubr.f32.mxu0 %v7304_v4  ;;  %v6193_v15 = vadd.f32 %v1430_v19, %v964_v40 }
 0x159   :  { %v984_v35 = vpop.f32.mrf.mxu0  ;;  %v4626_v50 = vpop.f32.mrf.mxu1  ;;  %4969 = vmatmul.mubr.f32.gmra.mxu1 %v7303_v49  ;;  %v7308_v49 = vld [vmem:[#allocation47_spill] sm:$0xff] }
 0x15a   :  { %7305 = vst [vmem:[#allocation81_spill] sm:$0xff] %v6193_v15  ;;  %v6196_v53 = vadd.f32 %v4626_v50, %v4528_v11  ;;  %4971 = vmatprep.mubr.f32.mxu1 %v7304_v4 }
 0x15b   :  { %v4631_v52 = vpop.f32.mrf.mxu0  ;;  %4874 = vmatmul.mubr.f32.gmra.mxu0 %v7306_v33  ;;  %v1442_v18 = vpop.f32.mrf.mxu1 }
 0x15c   :  { %v1530_v48 = vadd.f32 %v4631_v52, %v5909_v30  ;;  %4876 = vmatprep.mubr.f32.mxu0 %v7307_v21  ;;  %v6202_v12 = vadd.f32 %v1442_v18, %v984_v35  ;;  %v7309_v52 = vld [vmem:[#allocation48_spill] sm:$0xff] }
 0x15d   :  { %v1522_v40 = vpop.f32.mrf.mxu0  ;;  %v4729_v15 = vpop.f32.mrf.mxu1  ;;  %4972 = vmatmul.mubr.f32.gmra.mxu1 %v7306_v33 }
 0x15e   :  { %v1523_v19 = vadd.f32 %v1522_v40, %v5915_v16  ;;  %v6206_v50 = vadd.f32 %v4729_v15, %v1530_v48  ;;  %4974 = vmatprep.mubr.f32.mxu1 %v7307_v21  ;;  %v7310_v48 = vld [vmem:[#allocation51_spill] sm:$0xff] }
 0x15f   :  { %v4634_v11 = vpop.f32.mrf.mxu0  ;;  %4877 = vmatmul.mubr.f32.gmra.mxu0 %v7308_v49  ;;  %v2037_v4 = vpop.f32.mrf.mxu1 }
 0x160   :  { %v1544_v30 = vadd.f32 %v4634_v11, %v5919_v51  ;;  %4879 = vmatprep.mubr.f32.mxu0 %v7309_v52  ;;  %v6212_v35 = vadd.f32 %v2037_v4, %v1523_v19  ;;  %v7311_v11 = vld [vmem:[#allocation53_spill] sm:$0xff] }
 0x161   :  { %v1536_v18 = vpop.f32.mrf.mxu0  ;;  %v4732_v40 = vpop.f32.mrf.mxu1  ;;  %4975 = vmatmul.mubr.f32.gmra.mxu1 %v7308_v49 }
 0x162   :  { %v1537_v16 = vadd.f32 %v1536_v18, %v5925_v8  ;;  %v6216_v15 = vadd.f32 %v4732_v40, %v1544_v30  ;;  %4977 = vmatprep.mubr.f32.mxu1 %v7309_v52  ;;  %v7312_v40 = vld [vmem:[#allocation55_spill] sm:$0xff] }
 0x163   :  { %v4637_v33 = vpop.f32.mrf.mxu0  ;;  %4880 = vmatmul.mubr.f32.gmra.mxu0 %v7310_v48  ;;  %v2053_v21 = vpop.f32.mrf.mxu1 }
 0x164   :  { %v1558_v51 = vadd.f32 %v4637_v33, %v5929_v5  ;;  %4882 = vmatprep.mubr.f32.mxu0 %v7311_v11  ;;  %v6222_v19 = vadd.f32 %v2053_v21, %v1537_v16  ;;  %v7313_v33 = vld [vmem:[#allocation57_spill] sm:$0xff] }
 0x165   :  { %v1550_v4 = vpop.f32.mrf.mxu0  ;;  %v4735_v18 = vpop.f32.mrf.mxu1  ;;  %4978 = vmatmul.mubr.f32.gmra.mxu1 %v7310_v48 }
 0x166   :  { %v1551_v8 = vadd.f32 %v1550_v4, %v5935_v63  ;;  %v6226_v49 = vadd.f32 %v4735_v18, %v1558_v51  ;;  %4980 = vmatprep.mubr.f32.mxu1 %v7311_v11  ;;  %v7314_v18 = vld [vmem:[#allocation58_spill] sm:$0xff] }
 0x167   :  { %v4640_v30 = vpop.f32.mrf.mxu0  ;;  %4883 = vmatmul.mubr.f32.gmra.mxu0 %v7312_v40  ;;  %v2069_v52 = vpop.f32.mrf.mxu1 }
 0x168   :  { %v1572_v5 = vadd.f32 %v4640_v30, %v5939_v25  ;;  %4885 = vmatprep.mubr.f32.mxu0 %v7313_v33  ;;  %v6232_v16 = vadd.f32 %v2069_v52, %v1551_v8  ;;  %v7315_v30 = vld [vmem:[#allocation60_spill] sm:$0xff] }
 0x169   :  { %v1564_v21 = vpop.f32.mrf.mxu0  ;;  %v4738_v4 = vpop.f32.mrf.mxu1  ;;  %4981 = vmatmul.mubr.f32.gmra.mxu1 %v7312_v40 }
 0x16a   :  { %v1565_v63 = vadd.f32 %v1564_v21, %v5945_v23  ;;  %v6236_v48 = vadd.f32 %v4738_v4, %v1572_v5  ;;  %4983 = vmatprep.mubr.f32.mxu1 %v7313_v33  ;;  %v7316_v4 = vld [vmem:[#allocation63_spill] sm:$0xff] }
 0x16b   :  { %v4643_v51 = vpop.f32.mrf.mxu0  ;;  %4886 = vmatmul.mubr.f32.gmra.mxu0 %v7314_v18  ;;  %v2085_v11 = vpop.f32.mrf.mxu1 }
 0x16c   :  { %v1586_v25 = vadd.f32 %v4643_v51, %v5949_v42  ;;  %4888 = vmatprep.mubr.f32.mxu0 %v7315_v30  ;;  %v6242_v8 = vadd.f32 %v2085_v11, %v1565_v63  ;;  %v7317_v51 = vld [vmem:[#allocation65_spill] sm:$0xff] }
 0x16d   :  { %v1578_v52 = vpop.f32.mrf.mxu0  ;;  %v4741_v21 = vpop.f32.mrf.mxu1  ;;  %4984 = vmatmul.mubr.f32.gmra.mxu1 %v7314_v18 }
 0x16e   :  { %v1579_v23 = vadd.f32 %v1578_v52, %v5955_v60  ;;  %v6246_v40 = vadd.f32 %v4741_v21, %v1586_v25  ;;  %4986 = vmatprep.mubr.f32.mxu1 %v7315_v30  ;;  %v7318_v21 = vld [vmem:[#allocation67_spill] sm:$0xff] }
 0x16f   :  { %v4646_v5 = vpop.f32.mrf.mxu0  ;;  %4889 = vmatmul.mubr.f32.gmra.mxu0 %v7316_v4  ;;  %v2101_v33 = vpop.f32.mrf.mxu1 }
 0x170   :  { %v1600_v42 = vadd.f32 %v4646_v5, %v5959_v29  ;;  %4891 = vmatprep.mubr.f32.mxu0 %v7317_v51  ;;  %v6252_v63 = vadd.f32 %v2101_v33, %v1579_v23  ;;  %v7319_v5 = vld [vmem:[#allocation68_spill] sm:$0xff] }
 0x171   :  { %v1592_v11 = vpop.f32.mrf.mxu0  ;;  %v4744_v52 = vpop.f32.mrf.mxu1  ;;  %4987 = vmatmul.mubr.f32.gmra.mxu1 %v7316_v4 }
 0x172   :  { %v1593_v60 = vadd.f32 %v1592_v11, %v5965_v10  ;;  %v6256_v18 = vadd.f32 %v4744_v52, %v1600_v42  ;;  %4989 = vmatprep.mubr.f32.mxu1 %v7317_v51  ;;  %v7320_v52 = vld [vmem:[#allocation71_spill] sm:$0xff] }
 0x173   :  { %v4649_v25 = vpop.f32.mrf.mxu0  ;;  %4892 = vmatmul.mubr.f32.gmra.mxu0 %v7318_v21  ;;  %v2117_v30 = vpop.f32.mrf.mxu1 }
 0x174   :  { %v1614_v29 = vadd.f32 %v4649_v25, %v5969_v31  ;;  %4894 = vmatprep.mubr.f32.mxu0 %v7319_v5  ;;  %v6262_v23 = vadd.f32 %v2117_v30, %v1593_v60  ;;  %v7321_v25 = vld [vmem:[#allocation73_spill] sm:$0xff] }
 0x175   :  { %v1606_v33 = vpop.f32.mrf.mxu0  ;;  %v4747_v11 = vpop.f32.mrf.mxu1  ;;  %4990 = vmatmul.mubr.f32.gmra.mxu1 %v7318_v21 }
 0x176   :  { %v1607_v10 = vadd.f32 %v1606_v33, %v5975_v9  ;;  %v6266_v4 = vadd.f32 %v4747_v11, %v1614_v29  ;;  %4992 = vmatprep.mubr.f32.mxu1 %v7319_v5  ;;  %v7322_v11 = vld [vmem:[#allocation76_spill] sm:$0xff] }
 0x177   :  { %v4652_v42 = vpop.f32.mrf.mxu0  ;;  %4895 = vmatmul.mubr.f32.gmra.mxu0 %v7320_v52  ;;  %v2133_v51 = vpop.f32.mrf.mxu1 }
 0x178   :  { %v1628_v31 = vadd.f32 %v4652_v42, %v5979_v7  ;;  %4897 = vmatprep.mubr.f32.mxu0 %v7321_v25  ;;  %v6272_v60 = vadd.f32 %v2133_v51, %v1607_v10 }
 0x179   :  { %v1620_v30 = vpop.f32.mrf.mxu0  ;;  %v4750_v33 = vpop.f32.mrf.mxu1  ;;  %4993 = vmatmul.mubr.f32.gmra.mxu1 %v7320_v52 }
 0x17a   :  { %v1621_v9 = vadd.f32 %v1620_v30, %v5988_v56  ;;  %v6276_v21 = vadd.f32 %v4750_v33, %v1628_v31  ;;  %4995 = vmatprep.mubr.f32.mxu1 %v7321_v25  ;;  %v7323_v30 = vld [vmem:[#allocation78_spill] sm:$0xff] }
 0x17b   :  { %v4655_v29 = vpop.f32.mrf.mxu0  ;;  %4898 = vmatmul.mubr.f32.gmra.mxu0 %v5606_v44  ;;  %v2149_v5 = vpop.f32.mrf.mxu1 }
 0x17c   :  { %v1642_v7 = vadd.f32 %v4655_v29, %v5992_v58  ;;  %4900 = vmatprep.mubr.f32.mxu0 %v7322_v11  ;;  %v6282_v10 = vadd.f32 %v2149_v5, %v1621_v9 }
 0x17d   :  { %v1634_v42 = vpop.f32.mrf.mxu0  ;;  %v4753_v51 = vpop.f32.mrf.mxu1  ;;  %4996 = vmatmul.mubr.f32.gmra.mxu1 %v5606_v44 }
 0x17e   :  { %v1635_v56 = vadd.f32 %v1634_v42, %v5998_v38  ;;  %v6286_v52 = vadd.f32 %v4753_v51, %v1642_v7  ;;  %4998 = vmatprep.mubr.f32.mxu1 %v7322_v11 }
 0x17f   :  { %v4658_v31 = vpop.f32.mrf.mxu0  ;;  %4901 = vmatmul.mubr.f32.gmra.mxu0 %v5632_v2  ;;  %v2165_v25 = vpop.f32.mrf.mxu1 }
 0x180   :  { %v1656_v58 = vadd.f32 %v4658_v31, %v6002_v61  ;;  %4903 = vmatprep.mubr.f32.mxu0 %v7323_v30  ;;  %v6292_v9 = vadd.f32 %v2165_v25, %v1635_v56 }
 0x181   :  { %v1648_v33 = vpop.f32.mrf.mxu0  ;;  %v4756_v29 = vpop.f32.mrf.mxu1  ;;  %4999 = vmatmul.mubr.f32.gmra.mxu1 %v5632_v2 }
 0x182   :  { %v1649_v38 = vadd.f32 %v1648_v33, %v6008_v26  ;;  %v6296_v44 = vadd.f32 %v4756_v29, %v1656_v58  ;;  %5001 = vmatprep.mubr.f32.mxu1 %v7323_v30 }
 0x183   :  { %v4661_v7 = vpop.f32.mrf.mxu0  ;;  %4904 = vmatmul.mubr.f32.gmra.mxu0 %v5646_v3  ;;  %v2181_v5 = vpop.f32.mrf.mxu1 }
 0x184   :  { %v1670_v61 = vadd.f32 %v4661_v7, %v6012_v47  ;;  %4906 = vmatprep.mubr.f32.mxu0 %v5648_v0  ;;  %v6302_v11 = vadd.f32 %v2181_v5, %v1649_v38 }
 0x185   :  { %v1662_v42 = vpop.f32.mrf.mxu0  ;;  %v4759_v56 = vpop.f32.mrf.mxu1  ;;  %5002 = vmatmul.mubr.f32.gmra.mxu1 %v5646_v3 }
 0x186   :  { %v1663_v26 = vadd.f32 %v1662_v42, %v6018_v27  ;;  %v6306_v2 = vadd.f32 %v4759_v56, %v1670_v61  ;;  %5004 = vmatprep.mubr.f32.mxu1 %v5648_v0 }
 0x187   :  { %v4664_v51 = vpop.f32.mrf.mxu0  ;;  %4907 = vmatmul.mubr.f32.gmra.mxu0 %v5671_v46  ;;  %v2197_v31 = vpop.f32.mrf.mxu1 }
 0x188   :  { %v1684_v47 = vadd.f32 %v4664_v51, %v6022_v20  ;;  %4909 = vmatprep.mubr.f32.mxu0 %v5678_v43  ;;  %v6312_v58 = vadd.f32 %v2197_v31, %v1663_v26 }
 0x189   :  { %v1676_v25 = vpop.f32.mrf.mxu0  ;;  %v4762_v30 = vpop.f32.mrf.mxu1  ;;  %5005 = vmatmul.mubr.f32.gmra.mxu1 %v5671_v46 }
 0x18a   :  { %v1677_v27 = vadd.f32 %v1676_v25, %v6028_v28  ;;  %v6316_v3 = vadd.f32 %v4762_v30, %v1684_v47  ;;  %5007 = vmatprep.mubr.f32.mxu1 %v5678_v43 }
 0x18b   :  { %v4667_v33 = vpop.f32.mrf.mxu0  ;;  %4910 = vmatmul.mubr.f32.gmra.mxu0 %v5699_v59  ;;  %v2213_v20 = vpop.f32.mrf.mxu1 }
 0x18c   :  { %v1698_v0 = vadd.f32 %v4667_v33, %v6032_v36  ;;  %4912 = vmatprep.mubr.f32.mxu0 %v5704_v62  ;;  %v6322_v38 = vadd.f32 %v2213_v20, %v1677_v27 }
 0x18d   :  { %v1690_v29 = vpop.f32.mrf.mxu0  ;;  %v4765_v7 = vpop.f32.mrf.mxu1  ;;  %5008 = vmatmul.mubr.f32.gmra.mxu1 %v5699_v59 }
 0x18e   :  { %v1691_v28 = vadd.f32 %v1690_v29, %v6038_v57  ;;  %v6326_v46 = vadd.f32 %v4765_v7, %v1698_v0  ;;  %5010 = vmatprep.mubr.f32.mxu1 %v5704_v62 }
 0x18f   :  { %v4670_v61 = vpop.f32.mrf.mxu0  ;;  %4913 = vmatmul.mubr.f32.gmra.mxu0 %v5721_v39  ;;  %v2229_v36 = vpop.f32.mrf.mxu1 }
 0x190   :  { %v1712_v43 = vadd.f32 %v4670_v61, %v6042_v41  ;;  %4915 = vmatprep.mubr.f32.mxu0 %v5726_v55  ;;  %v6332_v5 = vadd.f32 %v2229_v36, %v1691_v28 }
 0x191   :  { %v1704_v42 = vpop.f32.mrf.mxu0  ;;  %v4768_v26 = vpop.f32.mrf.mxu1  ;;  %5011 = vmatmul.mubr.f32.gmra.mxu1 %v5721_v39 }
 0x192   :  { %v1705_v57 = vadd.f32 %v1704_v42, %v6048_v17  ;;  %v6336_v59 = vadd.f32 %v4768_v26, %v1712_v43  ;;  %5013 = vmatprep.mubr.f32.mxu1 %v5726_v55 }
 0x193   :  { %v4673_v56 = vpop.f32.mrf.mxu0  ;;  %4916 = vmatmul.mubr.f32.gmra.mxu0 %v5742_v13  ;;  %v2245_v41 = vpop.f32.mrf.mxu1 }
 0x194   :  { %v1726_v62 = vadd.f32 %v4673_v56, %v6052_v34  ;;  %4918 = vmatprep.mubr.f32.mxu0 %v5748_v24  ;;  %v6342_v51 = vadd.f32 %v2245_v41, %v1705_v57  ;;  %v7324_v57 = vld [vmem:[#allocation34_spill] sm:$0xff]  ;;  %v7325_v41 = vld [vmem:[#allocation36_spill] sm:$0xff] }
 0x195   :  { %v1718_v47 = vpop.f32.mrf.mxu0  ;;  %v4771_v31 = vpop.f32.mrf.mxu1  ;;  %5014 = vmatmul.mubr.f32.gmra.mxu1 %v5742_v13 }
 0x196   :  { %v1719_v17 = vadd.f32 %v1718_v47, %v6058_v32  ;;  %v6346_v39 = vadd.f32 %v4771_v31, %v1726_v62  ;;  %5016 = vmatprep.mubr.f32.mxu1 %v5748_v24 }
 0x197   :  { %v4676_v25 = vpop.f32.mrf.mxu0  ;;  %4919 = vmatmul.mubr.f32.gmra.mxu0 %v5760_v45  ;;  %v2261_v34 = vpop.f32.mrf.mxu1 }
 0x198   :  { %v1740_v55 = vadd.f32 %v4676_v25, %v6062_v37  ;;  %v6351_v27 = vadd.f32 %v2261_v34, %v1719_v17  ;;  %v7326_v25 = vld [vmem:[#allocation39_spill] sm:$0xff] }
 0x199   :  { %v1732_v30 = vpop.f32.mrf.mxu0  ;;  %v4774_v0 = vpop.f32.mrf.mxu1  ;;  %5017 = vmatmul.mubr.f32.gmra.mxu1 %v5760_v45 }
 0x19a   :  { %v1733_v33 = vadd.f32 %v1732_v30, %v6070_v1  ;;  %v6355_v32 = vadd.f32 %v4774_v0, %v1740_v55 }
 0x19b   :  { %v4679_v13 = vpop.f32.mrf.mxu0  ;;  %v2277_v29 = vpop.f32.mrf.mxu1 }
 0x19c   :  { %v1754_v20 = vadd.f32 %v4679_v13, %v6073_v22  ;;  %v6358_v28 = vadd.f32 %v2277_v29, %v1733_v33  ;;  %v7327_v33 = vld [vmem:[#allocation41_spill] sm:$0xff] }
 0x19d   :  { %v1746_v24 = vpop.f32.mrf.mxu0  ;;  %v4777_v7 = vpop.f32.mrf.mxu1 }
 0x19e   :  { %v1747_v37 = vadd.f32 %v1746_v24, %v6078_v54  ;;  %v6361_v61 = vadd.f32 %v4777_v7, %v1754_v20  ;;  %v7328_v24 = vld [vmem:[#allocation42_spill] sm:$0xff] }
 0x19f   :  { %v4682_v43 = vpop.f32.mrf.mxu0  ;;  %v2293_v36 = vpop.f32.mrf.mxu1 }
 0x1a0   :  { %v1768_v1 = vadd.f32 %v4682_v43, %v6081_v6  ;;  %v6364_v42 = vadd.f32 %v2293_v36, %v1747_v37  ;;  %v7329_v36 = vld [vmem:[#allocation44_spill] sm:$0xff] }
 0x1a1   :  { %v1760_v45 = vpop.f32.mrf.mxu0  ;;  %v4780_v56 = vpop.f32.mrf.mxu1 }
 0x1a2   :  { %v1761_v26 = vadd.f32 %v1760_v45, %v7324_v57  ;;  %v6367_v22 = vadd.f32 %v4780_v56, %v1768_v1 }
 0x1a3   :  { %v4685_v62 = vpop.f32.mrf.mxu0  ;;  %v2309_v17 = vpop.f32.mrf.mxu1 }
 0x1a4   :  { %v1782_v47 = vadd.f32 %v4685_v62, %v7325_v41  ;;  %v6370_v54 = vadd.f32 %v2309_v17, %v1761_v26  ;;  %v7330_v62 = vld [vmem:[#allocation46_spill] sm:$0xff] }
 0x1a5   :  { %v1774_v31 = vpop.f32.mrf.mxu0  ;;  %v4783_v34 = vpop.f32.mrf.mxu1 }
 0x1a6   :  { %v1775_v55 = vadd.f32 %v1774_v31, %v7326_v25  ;;  %v6373_v6 = vadd.f32 %v4783_v34, %v1782_v47  ;;  %v7332_v25 = vld [vmem:[#allocation49_spill] sm:$0xff] }
 0x1a7   :  { %v4688_v30 = vpop.f32.mrf.mxu0  ;;  %v2325_v13 = vpop.f32.mrf.mxu1 }
 0x1a8   :  { %v1796_v0 = vadd.f32 %v4688_v30, %v7327_v33  ;;  %v6376_v20 = vadd.f32 %v2325_v13, %v1775_v55 }
 0x1a9   :  { %v1788_v29 = vpop.f32.mrf.mxu0  ;;  %v4786_v7 = vpop.f32.mrf.mxu1 }
 0x1aa   :  { %v1789_v37 = vadd.f32 %v1788_v29, %v7328_v24  ;;  %v6379_v43 = vadd.f32 %v4786_v7, %v1796_v0  ;;  %v7334_v0 = vld [vmem:[#allocation50_spill] sm:$0xff]  ;;  %v7336_v7 = vld [vmem:[#allocation52_spill] sm:$0xff] }
 0x1ab   :  { %v4691_v1 = vpop.f32.mrf.mxu0  ;;  %v2341_v57 = vpop.f32.mrf.mxu1 }
 0x1ac   :  { %v1810_v45 = vadd.f32 %v4691_v1, %v7329_v36  ;;  %v6382_v26 = vadd.f32 %v2341_v57, %v1789_v37 }
 0x1ad   :  { %v1802_v56 = vpop.f32.mrf.mxu0  ;;  %v4789_v47 = vpop.f32.mrf.mxu1 }
 0x1ae   :  { %v1803_v41 = vadd.f32 %v1802_v56, %v7330_v62  ;;  %v6385_v17 = vadd.f32 %v4789_v47, %v1810_v45  ;;  %v7338_v56 = vld [vmem:[#allocation54_spill] sm:$0xff] }
 0x1af   :  { %v4694_v31 = vpop.f32.mrf.mxu0  ;;  %v2357_v34 = vpop.f32.mrf.mxu1 }
 0x1b0   :  { %7331 = vst [vmem:[#allocation82_spill] sm:$0xff] %v6385_v17  ;;  %v1824_v55 = vadd.f32 %v4694_v31, %v7332_v25  ;;  %v6388_v30 = vadd.f32 %v2357_v34, %v1803_v41  ;;  %v7340_v25 = vld [vmem:[#allocation56_spill] sm:$0xff] }
 0x1b1   :  { %v1816_v33 = vpop.f32.mrf.mxu0  ;;  %v4792_v29 = vpop.f32.mrf.mxu1  ;;  %v7367_v17 = vld [vmem:[#allocation80_spill] sm:$0xff] }
 0x1b2   :  { %7333 = vst [vmem:[#allocation5_spill] sm:$0xff] %v6388_v30  ;;  %v1817_v13 = vadd.f32 %v1816_v33, %v7334_v0  ;;  %v6391_v24 = vadd.f32 %v4792_v29, %v1824_v55  ;;  %v7342_v0 = vld [vmem:[#allocation59_spill] sm:$0xff] }
 0x1b3   :  { %v4697_v37 = vpop.f32.mrf.mxu0  ;;  %v2373_v36 = vpop.f32.mrf.mxu1 }
 0x1b4   :  { %7335 = vst [vmem:[#allocation6_spill] sm:$0xff] %v6391_v24  ;;  %v1838_v1 = vadd.f32 %v4697_v37, %v7336_v7  ;;  %v6394_v57 = vadd.f32 %v2373_v36, %v1817_v13  ;;  %v7344_v7 = vld [vmem:[#allocation61_spill] sm:$0xff] }
 0x1b5   :  { %v1830_v45 = vpop.f32.mrf.mxu0  ;;  %v4795_v47 = vpop.f32.mrf.mxu1 }
 0x1b6   :  { %7337 = vst [vmem:[#allocation7_spill] sm:$0xff] %v6394_v57  ;;  %v1831_v62 = vadd.f32 %v1830_v45, %v7338_v56  ;;  %v6397_v31 = vadd.f32 %v4795_v47, %v1838_v1  ;;  %v7346_v56 = vld [vmem:[#allocation62_spill] sm:$0xff] }
 0x1b7   :  { %v4700_v41 = vpop.f32.mrf.mxu0  ;;  %v2389_v30 = vpop.f32.mrf.mxu1 }
 0x1b8   :  { %7339 = vst [vmem:[#allocation8_spill] sm:$0xff] %v6397_v31  ;;  %v1852_v34 = vadd.f32 %v4700_v41, %v7340_v25  ;;  %v6400_v33 = vadd.f32 %v2389_v30, %v1831_v62  ;;  %v7348_v62 = vld [vmem:[#allocation64_spill] sm:$0xff] }
 0x1b9   :  { %v1844_v55 = vpop.f32.mrf.mxu0  ;;  %v4798_v24 = vpop.f32.mrf.mxu1 }
 0x1ba   :  { %7341 = vst [vmem:[#allocation9_spill] sm:$0xff] %v6400_v33  ;;  %v1845_v29 = vadd.f32 %v1844_v55, %v7342_v0  ;;  %v6403_v37 = vadd.f32 %v4798_v24, %v1852_v34  ;;  %v7350_v34 = vld [vmem:[#allocation66_spill] sm:$0xff] }
 0x1bb   :  { %v4703_v13 = vpop.f32.mrf.mxu0  ;;  %v2405_v57 = vpop.f32.mrf.mxu1 }
 0x1bc   :  { %7343 = vst [vmem:[#allocation10_spill] sm:$0xff] %v6403_v37  ;;  %v1866_v36 = vadd.f32 %v4703_v13, %v7344_v7  ;;  %v6406_v45 = vadd.f32 %v2405_v57, %v1845_v29  ;;  %v7352_v29 = vld [vmem:[#allocation69_spill] sm:$0xff] }
 0x1bd   :  { %v1858_v1 = vpop.f32.mrf.mxu0  ;;  %v4801_v31 = vpop.f32.mrf.mxu1 }
 0x1be   :  { %7345 = vst [vmem:[#allocation11_spill] sm:$0xff] %v6406_v45  ;;  %v1859_v47 = vadd.f32 %v1858_v1, %v7346_v56  ;;  %v6409_v41 = vadd.f32 %v4801_v31, %v1866_v36  ;;  %v7354_v36 = vld [vmem:[#allocation70_spill] sm:$0xff] }
 0x1bf   :  { %v4706_v30 = vpop.f32.mrf.mxu0  ;;  %v2421_v33 = vpop.f32.mrf.mxu1 }
 0x1c0   :  { %7347 = vst [vmem:[#allocation12_spill] sm:$0xff] %v6409_v41  ;;  %v1880_v25 = vadd.f32 %v4706_v30, %v7348_v62  ;;  %v6412_v55 = vadd.f32 %v2421_v33, %v1859_v47  ;;  %v7356_v47 = vld [vmem:[#allocation72_spill] sm:$0xff] }
 0x1c1   :  { %v1872_v24 = vpop.f32.mrf.mxu0  ;;  %v4804_v37 = vpop.f32.mrf.mxu1 }
 0x1c2   :  { %7349 = vst [vmem:[#allocation13_spill] sm:$0xff] %v6412_v55  ;;  %v1873_v0 = vadd.f32 %v1872_v24, %v7350_v34  ;;  %v6415_v13 = vadd.f32 %v4804_v37, %v1880_v25  ;;  %v5052_v25 = vmov 1966171168  }
 0x1c3   :  { %v4709_v57 = vpop.f32.mrf.mxu0  ;;  %v2437_v45 = vpop.f32.mrf.mxu1  ;;  %v3488_v34 = vunpack.c.l.s4 %v5052_v25  ;;  %v6436_v25 = vld [vmem:[%s6861_s2] ss:$0 sm:$0xff] }
 0x1c4   :  { %7351 = vst [vmem:[#allocation14_spill] sm:$0xff] %v6415_v13  ;;  %v1894_v7 = vadd.f32 %v4709_v57, %v7352_v29  ;;  %v6418_v1 = vadd.f32 %v2437_v45, %v1873_v0  ;;  %v3490_v13 = vlaneseq  ;;  %v7358_v57 = vld [vmem:[#allocation74_spill] sm:$0xff] }
 0x1c5   :  { %v1886_v31 = vpop.f32.mrf.mxu0  ;;  %v4807_v41 = vpop.f32.mrf.mxu1 }
 0x1c6   :  { %7353 = vst [vmem:[#allocation15_spill] sm:$0xff] %v6418_v1  ;;  %v1887_v56 = vadd.f32 %v1886_v31, %v7354_v36  ;;  %v6421_v30 = vadd.f32 %v4807_v41, %v1894_v7  ;;  %v7360_v31 = vld [vmem:[#allocation75_spill] sm:$0xff] }
 0x1c7   :  { %v4712_v33 = vpop.f32.mrf.mxu0  ;;  %v2453_v55 = vpop.f32.mrf.mxu1 }
 0x1c8   :  { %7355 = vst [vmem:[#allocation16_spill] sm:$0xff] %v6421_v30  ;;  %v1908_v62 = vadd.f32 %v4712_v33, %v7356_v47  ;;  %v6424_v24 = vadd.f32 %v2453_v55, %v1887_v56  ;;  %v3489_v33 = vunpack.c.0.s8 %v3488_v34  ;;  %v3491_v47 = vshrl.u32 %v3490_v13, 7  ;;  %v7362_v55 = vld [vmem:[#allocation77_spill] sm:$0xff] }
 0x1c9   :  { %v1900_v37 = vpop.f32.mrf.mxu0  ;;  %v4810_v45 = vpop.f32.mrf.mxu1 }
 0x1ca   :  { %7357 = vst [vmem:[#allocation17_spill] sm:$0xff] %v6424_v24  ;;  %v1901_v29 = vadd.f32 %v1900_v37, %v7358_v57  ;;  %v6427_v0 = vadd.f32 %v4810_v45, %v1908_v62  ;;  %v3455_v37 = vpop.permute.xlu0 %3454  ;;  %v7364_v45 = vld [vmem:[#allocation79_spill] sm:$0xff]  ;;  %v6443_v34 = vsub.s32 %v3489_v33, %v3491_v47 }
 0x1cb   :  { %v4715_v1 = vpop.f32.mrf.mxu0  ;;  %v2469_v41 = vpop.f32.mrf.mxu1  ;;  %v3478_v13 = vadd.f32 %v6436_v25, %v3455_v37 }
 0x1cc   :  { %7359 = vst [vmem:[#allocation18_spill] sm:$0xff] %v6427_v0  ;;  %v1922_v36 = vadd.f32 %v4715_v1, %v7360_v31  ;;  %v6430_v7 = vadd.f32 %v2469_v41, %v1901_v29 }
 0x1cd   :  { %v1914_v30 = vpop.f32.mrf.mxu0  ;;  %v4813_v24 = vpop.f32.mrf.mxu1 }
 0x1ce   :  { %7361 = vst [vmem:[#allocation19_spill] sm:$0xff] %v6430_v7  ;;  %v1915_v56 = vadd.f32 %v1914_v30, %v7362_v55  ;;  %v6438_v62 = vadd.f32 %v4813_v24, %v1922_v36 }
 0x1cf   :  { %v4718_v57 = vpop.f32.mrf.mxu0  ;;  %v2485_v31 = vpop.f32.mrf.mxu1 }
 0x1d0   :  { %7363 = vst [vmem:[#allocation20_spill] sm:$0xff] %v6438_v62  ;;  %v1936_v1 = vadd.f32 %v4718_v57, %v7364_v45  ;;  %v6441_v29 = vadd.f32 %v2485_v31, %v1915_v56  ;;  %v3493_v56 = vrot.slane %v3478_v13, %v6443_v34  ;;  %v7369_v45 = vld [vmem:[#allocation81_spill] sm:$0xff] }
 0x1d1   :  { %v1928_v41 = vpop.f32.mrf.mxu0  ;;  %v4816_v55 = vpop.f32.mrf.mxu1 }
 0x1d2   :  { %7365 = vst [vmem:[#allocation21_spill] sm:$0xff] %v6441_v29  ;;  %v1929_v30 = vadd.f32 %v1928_v41, %v6185_v14  ;;  %v6447_v7 = vadd.f32 %v4816_v55, %v1936_v1  ;;  %v3501_v1 = vcombine.high %v3493_v56, %v3493_v56  ;;  %v3509_v55 = vrot.slane %v3493_v56, %v6443_v34 }
 0x1d3   :  { %v4721_v0 = vpop.f32.mrf.mxu0  ;;  %v2501_v36 = vpop.f32.mrf.mxu1 }
 0x1d4   :  { %7366 = vst [vmem:[#allocation22_spill] sm:$0xff] %v6447_v7  ;;  %v1950_v24 = vadd.f32 %v4721_v0, %v7367_v17  ;;  %v6450_v62 = vadd.f32 %v2501_v36, %v1929_v30  ;;  %v6460_v0 = vsub.s32 0, %v3491_v47  ;;  %v3523_v56 = vrot.slane %v3501_v1, %v6443_v34 }
 0x1d5   :  { %v1942_v57 = vpop.f32.mrf.mxu0  ;;  %v4819_v33 = vpop.f32.mrf.mxu1 }
 0x1d6   :  { %7368 = vst [vmem:[#allocation23_spill] sm:$0xff] %v6450_v62  ;;  %v1943_v31 = vadd.f32 %v1942_v57, %v7369_v45  ;;  %v6454_v29 = vadd.f32 %v4819_v33, %v1950_v24 }
 0x1d7   :  { %v4724_v37 = vpop.f32.mrf.mxu0  ;;  %v2517_v41 = vpop.f32.mrf.mxu1 }
 0x1d8   :  { %7370 = vst [vmem:[#allocation24_spill] sm:$0xff] %v6454_v29  ;;  %v1964_v14 = vadd.f32 %v4724_v37, %v6196_v53  ;;  %v6458_v7 = vadd.f32 %v2517_v41, %v1943_v31  ;;  %v3685_v37 = vrot.slane %v3509_v55, %v6460_v0 }
 0x1d9   :  { %v1956_v17 = vpop.f32.mrf.mxu0  ;;  %v4822_v36 = vpop.f32.mrf.mxu1 }
 0x1da   :  { %7371 = vst [vmem:[#allocation25_spill] sm:$0xff] %v6458_v7  ;;  %v1957_v30 = vadd.f32 %v1956_v17, %v6202_v12  ;;  %v6463_v62 = vadd.f32 %v4822_v36, %v1964_v14  ;;  %v3486_v12 = vcombine.high %v3478_v13, %v3478_v13 }
 0x1db   :  { %v4827_v57 = vpop.f32.mrf.mxu0  ;;  %v2533_v45 = vpop.f32.mrf.mxu1 }
 0x1dc   :  { %7372 = vst [vmem:[#allocation26_spill] sm:$0xff] %v6463_v62  ;;  %v2622_v24 = vadd.f32 %v4827_v57, %v6206_v50  ;;  %v6466_v33 = vadd.f32 %v2533_v45, %v1957_v30  ;;  %v3689_v30 = vrot.slane %v3523_v56, %v6460_v0  ;;  %v3531_v57 = vcombine.high %v3509_v55, %v3509_v55 }
 0x1dd   :  { %v2615_v53 = vpop.f32.mrf.mxu0  ;;  %v4925_v47 = vpop.f32.mrf.mxu1 }
 0x1de   :  { %7373 = vst [vmem:[#allocation27_spill] sm:$0xff] %v6466_v33  ;;  %v2616_v31 = vadd.f32 %v2615_v53, %v6212_v35  ;;  %v3072_v41 = vadd.f32 %v4925_v47, %v2622_v24  ;;  %v3500_v24 = vrot.slane %v3486_v12, %v6443_v34 }
 0x1df   :  { %v4830_v7 = vpop.f32.mrf.mxu0  ;;  %v3065_v17 = vpop.f32.mrf.mxu1 }
 0x1e0   :  { %v2634_v14 = vadd.f32 %v4830_v7, %v6216_v15  ;;  %v3843_v36 = vadd.f32 %v3685_v37, %v3072_v41  ;;  %v3066_v62 = vadd.f32 %v3065_v17, %v2616_v31  ;;  %v3533_v7 = vcombine.high %v3523_v56, %v3523_v56 }
 0x1e1   :  { %v2627_v50 = vpop.f32.mrf.mxu0  ;;  %v4928_v33 = vpop.f32.mrf.mxu1  ;;  %v3693_v41 = vrot.slane %v3531_v57, %v6460_v0 }
 0x1e2   :  { %v2628_v45 = vadd.f32 %v2627_v50, %v6222_v19  ;;  %v3907_v1 = vmax.f32 %v3843_v36, 0.0  ;;  %v3842_v29 = vadd.f32 %v3685_v37, %v3066_v62  ;;  %v3084_v35 = vadd.f32 %v4928_v33, %v2634_v14 }
 0x1e3   :  { %v4833_v53 = vpop.f32.mrf.mxu0  ;;  %v3077_v15 = vpop.f32.mrf.mxu1  ;;  %v3502_v14 = vcombine.high %v3500_v24, %v3500_v24  ;;  %v3697_v36 = vrot.slane %v3533_v7, %v6460_v0 }
 0x1e4   :  { %v2646_v13 = vadd.f32 %v4833_v53, %v6226_v49  ;;  %3972 = vst.msk [vmem:[%s6863_s4 + $0x8] sm:$0xff] %vm3970_vm1, %v3907_v1  ;;  %v3906_v55 = vmax.f32 %v3842_v29, 0.0  ;;  %v3845_v31 = vadd.f32 %v3689_v30, %v3084_v35  ;;  %v3078_v47 = vadd.f32 %v3077_v15, %v2628_v45 }
 0x1e5   :  { %v2639_v19 = vpop.f32.mrf.mxu0  ;;  %v4931_v33 = vpop.f32.mrf.mxu1  ;;  %v3516_v1 = vrot.slane %v3500_v24, %v6443_v34 }
 0x1e6   :  { %v2640_v62 = vadd.f32 %v2639_v19, %v6232_v16  ;;  %3971 = vst.msk [vmem:[%s6863_s4] sm:$0xff] %vm3970_vm1, %v3906_v55  ;;  %v3909_v49 = vmax.f32 %v3845_v31, 0.0  ;;  %v3844_v37 = vadd.f32 %v3689_v30, %v3078_v47  ;;  %v3096_v56 = vadd.f32 %v4931_v33, %v2646_v13 }
 0x1e7   :  { %v4836_v12 = vpop.f32.mrf.mxu0  ;;  %v3089_v17 = vpop.f32.mrf.mxu1  ;;  %v3530_v31 = vrot.slane %v3502_v14, %v6443_v34 }
 0x1e8   :  { %v2658_v29 = vadd.f32 %v4836_v12, %v6236_v48  ;;  %3974 = vst.msk [vmem:[%s6863_s4 + $0x18] sm:$0xff] %vm3970_vm1, %v3909_v49  ;;  %v3908_v16 = vmax.f32 %v3844_v37, 0.0  ;;  %v3847_v50 = vadd.f32 %v3693_v41, %v3096_v56  ;;  %v3090_v57 = vadd.f32 %v3089_v17, %v2640_v62  ;;  %v3460_v49 = vpop.permute.xlu0 %3459 }
 0x1e9   :  { %v2651_v45 = vpop.f32.mrf.mxu0  ;;  %v4934_v35 = vpop.f32.mrf.mxu1  ;;  %v3701_v62 = vrot.slane %v3516_v1, %v6460_v0  ;;  %v3705_v17 = vrot.slane %v3530_v31, %v6460_v0 }
 0x1ea   :  { %v2652_v30 = vadd.f32 %v2651_v45, %v6242_v8  ;;  %3973 = vst.msk [vmem:[%s6863_s4 + $0x10] sm:$0xff] %vm3970_vm1, %v3908_v16  ;;  %v3911_v48 = vmax.f32 %v3847_v50, 0.0  ;;  %v3846_v53 = vadd.f32 %v3693_v41, %v3090_v57  ;;  %v3108_v13 = vadd.f32 %v4934_v35, %v2658_v29 }
 0x1eb   :  { %v4839_v15 = vpop.f32.mrf.mxu0  ;;  %v3101_v55 = vpop.f32.mrf.mxu1  ;;  %v3532_v16 = vcombine.high %v3516_v1, %v3516_v1 }
 0x1ec   :  { %v2670_v7 = vadd.f32 %v4839_v15, %v6246_v40  ;;  %3976 = vst.msk [vmem:[%s6863_s4 + $0x28] sm:$0xff] %vm3970_vm1, %v3911_v48  ;;  %v3910_v8 = vmax.f32 %v3846_v53, 0.0  ;;  %v3849_v24 = vadd.f32 %v3697_v36, %v3108_v13  ;;  %v3102_v47 = vadd.f32 %v3101_v55, %v2652_v30 }
 0x1ed   :  { %v2663_v19 = vpop.f32.mrf.mxu0  ;;  %v4937_v33 = vpop.f32.mrf.mxu1  ;;  %v6517_v30 = vadd.f32 %v6436_v25, %v3460_v49  ;;  %v3534_v55 = vcombine.high %v3530_v31, %v3530_v31 }
 0x1ee   :  { %v2664_v41 = vadd.f32 %v2663_v19, %v6252_v63  ;;  %3975 = vst.msk [vmem:[%s6863_s4 + $0x20] sm:$0xff] %vm3970_vm1, %v3910_v8  ;;  %v3913_v40 = vmax.f32 %v3849_v24, 0.0  ;;  %v3848_v37 = vadd.f32 %v3697_v36, %v3102_v47  ;;  %v3120_v56 = vadd.f32 %v4937_v33, %v2670_v7 }
 0x1ef   :  { %v4842_v12 = vpop.f32.mrf.mxu0  ;;  %v3113_v29 = vpop.f32.mrf.mxu1  ;;  %v3709_v7 = vrot.slane %v3532_v16, %v6460_v0  ;;  %v3542_v19 = vrot.slane %v6517_v30, %v6443_v34 }
 0x1f0   :  { %v2682_v14 = vadd.f32 %v4842_v12, %v6256_v18  ;;  %3978 = vst.msk [vmem:[%s6863_s4 + $0x38] sm:$0xff] %vm3970_vm1, %v3913_v40  ;;  %v3912_v63 = vmax.f32 %v3848_v37, 0.0  ;;  %v3851_v50 = vadd.f32 %v3701_v62, %v3120_v56  ;;  %v3114_v57 = vadd.f32 %v3113_v29, %v2664_v41 }
 0x1f1   :  { %v2675_v45 = vpop.f32.mrf.mxu0  ;;  %v4940_v35 = vpop.f32.mrf.mxu1  ;;  %v3550_v37 = vcombine.high %v3542_v19, %v3542_v19  ;;  %v3713_v12 = vrot.slane %v3534_v55, %v6460_v0  ;;  %v3558_v29 = vrot.slane %v3542_v19, %v6443_v34 }
 0x1f2   :  { %v2676_v36 = vadd.f32 %v2675_v45, %v6262_v23  ;;  %3977 = vst.msk [vmem:[%s6863_s4 + $0x30] sm:$0xff] %vm3970_vm1, %v3912_v63  ;;  %v3915_v18 = vmax.f32 %v3851_v50, 0.0  ;;  %v3850_v1 = vadd.f32 %v3701_v62, %v3114_v57  ;;  %v3132_v48 = vadd.f32 %v4940_v35, %v2682_v14 }
 0x1f3   :  { %v4845_v53 = vpop.f32.mrf.mxu0  ;;  %v3125_v15 = vpop.f32.mrf.mxu1 }
 0x1f4   :  { %v2694_v13 = vadd.f32 %v4845_v53, %v6266_v4  ;;  %3980 = vst.msk [vmem:[%s6863_s4 + $0x48] sm:$0xff] %vm3970_vm1, %v3915_v18  ;;  %v3914_v23 = vmax.f32 %v3850_v1, 0.0  ;;  %v3853_v8 = vadd.f32 %v3705_v17, %v3132_v48  ;;  %v3126_v24 = vadd.f32 %v3125_v15, %v2676_v36 }
 0x1f5   :  { %v2687_v47 = vpop.f32.mrf.mxu0  ;;  %v4943_v41 = vpop.f32.mrf.mxu1  ;;  %v3572_v1 = vrot.slane %v3550_v37, %v6443_v34  ;;  %v3717_v15 = vrot.slane %v3558_v29, %v6460_v0 }
 0x1f6   :  { %v2688_v62 = vadd.f32 %v2687_v47, %v6272_v60  ;;  %3979 = vst.msk [vmem:[%s6863_s4 + $0x40] sm:$0xff] %vm3970_vm1, %v3914_v23  ;;  %v3917_v4 = vmax.f32 %v3853_v8, 0.0  ;;  %v3852_v31 = vadd.f32 %v3705_v17, %v3126_v24  ;;  %v3144_v33 = vadd.f32 %v4943_v41, %v2694_v13 }
 0x1f7   :  { %v4848_v49 = vpop.f32.mrf.mxu0  ;;  %v3137_v56 = vpop.f32.mrf.mxu1  ;;  %v3535_v47 = vcombine.high %v6517_v30, %v6517_v30  ;;  %v3721_v41 = vrot.slane %v3572_v1, %v6460_v0 }
 0x1f8   :  { %v2706_v40 = vadd.f32 %v4848_v49, %v6276_v21  ;;  %3982 = vst.msk [vmem:[%s6863_s4 + $0x58] sm:$0xff] %vm3970_vm1, %v3917_v4  ;;  %v3916_v60 = vmax.f32 %v3852_v31, 0.0  ;;  %v3855_v14 = vadd.f32 %v3709_v7, %v3144_v33  ;;  %v3138_v16 = vadd.f32 %v3137_v56, %v2688_v62 }
 0x1f9   :  { %v2699_v63 = vpop.f32.mrf.mxu0  ;;  %v4946_v50 = vpop.f32.mrf.mxu1  ;;  %v3580_v49 = vcombine.high %v3558_v29, %v3558_v29 }
 0x1fa   :  { %v2700_v17 = vadd.f32 %v2699_v63, %v6282_v10  ;;  %3981 = vst.msk [vmem:[%s6863_s4 + $0x50] sm:$0xff] %vm3970_vm1, %v3916_v60  ;;  %v3919_v21 = vmax.f32 %v3855_v14, 0.0  ;;  %v3854_v57 = vadd.f32 %v3709_v7, %v3138_v16  ;;  %v3156_v45 = vadd.f32 %v4946_v50, %v2706_v40 }
 0x1fb   :  { %v4851_v36 = vpop.f32.mrf.mxu0  ;;  %v3149_v18 = vpop.f32.mrf.mxu1  ;;  %v3549_v60 = vrot.slane %v3535_v47, %v6443_v34  ;;  %v3582_v63 = vcombine.high %v3572_v1, %v3572_v1 }
 0x1fc   :  { %v2718_v35 = vadd.f32 %v4851_v36, %v6286_v52  ;;  %3984 = vst.msk [vmem:[%s6863_s4 + $0x68] sm:$0xff] %vm3970_vm1, %v3919_v21  ;;  %v3918_v10 = vmax.f32 %v3854_v57, 0.0  ;;  %v3857_v48 = vadd.f32 %v3713_v12, %v3156_v45  ;;  %v3150_v53 = vadd.f32 %v3149_v18, %v2700_v17 }
 0x1fd   :  { %v2711_v13 = vpop.f32.mrf.mxu0  ;;  %v4949_v55 = vpop.f32.mrf.mxu1  ;;  %v3725_v21 = vrot.slane %v3580_v49, %v6460_v0  ;;  %v3551_v1 = vcombine.high %v3549_v60, %v3549_v60 }
 0x1fe   :  { %v2712_v7 = vadd.f32 %v2711_v13, %v6292_v9  ;;  %3983 = vst.msk [vmem:[%s6863_s4 + $0x60] sm:$0xff] %vm3970_vm1, %v3918_v10  ;;  %v3921_v52 = vmax.f32 %v3857_v48, 0.0  ;;  %v3856_v23 = vadd.f32 %v3713_v12, %v3150_v53  ;;  %v3168_v8 = vadd.f32 %v4949_v55, %v2718_v35 }
 0x1ff   :  { %v4854_v24 = vpop.f32.mrf.mxu0  ;;  %v3161_v62 = vpop.f32.mrf.mxu1  ;;  %v3729_v53 = vrot.slane %v3582_v63, %v6460_v0  ;;  %v3565_v55 = vrot.slane %v3549_v60, %v6443_v34 }
 0x200   :  { %v2730_v19 = vadd.f32 %v4854_v24, %v6296_v44  ;;  %3986 = vst.msk [vmem:[%s6863_s4 + $0x78] sm:$0xff] %vm3970_vm1, %v3921_v52  ;;  %v3920_v9 = vmax.f32 %v3856_v23, 0.0  ;;  %v3859_v4 = vadd.f32 %v3717_v15, %v3168_v8  ;;  %v3162_v31 = vadd.f32 %v3161_v62, %v2712_v7 }
 0x201   :  { %v2723_v33 = vpop.f32.mrf.mxu0  ;;  %v4952_v37 = vpop.f32.mrf.mxu1 }
 0x202   :  { %v2724_v40 = vadd.f32 %v2723_v33, %v6302_v11  ;;  %3985 = vst.msk [vmem:[%s6863_s4 + $0x70] sm:$0xff] %vm3970_vm1, %v3920_v9  ;;  %v3923_v44 = vmax.f32 %v3859_v4, 0.0  ;;  %v3858_v30 = vadd.f32 %v3717_v15, %v3162_v31  ;;  %v3180_v56 = vadd.f32 %v4952_v37, %v2730_v19  ;;  %v3465_v37 = vpop.permute.xlu1 %3464 }
 0x203   :  { %v4857_v12 = vpop.f32.mrf.mxu0  ;;  %v3173_v16 = vpop.f32.mrf.mxu1  ;;  %v3733_v33 = vrot.slane %v3565_v55, %v6460_v0 }
 0x204   :  { %v2742_v14 = vadd.f32 %v4857_v12, %v6306_v2  ;;  %3988 = vst.msk [vmem:[%s6863_s4 + $0x88] sm:$0xff] %vm3970_vm1, %v3923_v44  ;;  %v3922_v11 = vmax.f32 %v3858_v30, 0.0  ;;  %v3861_v29 = vadd.f32 %v3721_v41, %v3180_v56  ;;  %v3174_v17 = vadd.f32 %v3173_v16, %v2724_v40 }
 0x205   :  { %v2735_v50 = vpop.f32.mrf.mxu0  ;;  %v4955_v45 = vpop.f32.mrf.mxu1  ;;  %v3581_v16 = vcombine.high %v3565_v55, %v3565_v55 }
 0x206   :  { %v2736_v57 = vadd.f32 %v2735_v50, %v6312_v58  ;;  %3987 = vst.msk [vmem:[%s6863_s4 + $0x80] sm:$0xff] %vm3970_vm1, %v3922_v11  ;;  %v3925_v2 = vmax.f32 %v3861_v29, 0.0  ;;  %v3860_v36 = vadd.f32 %v3721_v41, %v3174_v17  ;;  %v3192_v35 = vadd.f32 %v4955_v45, %v2742_v14 }
 0x207   :  { %v4860_v18 = vpop.f32.mrf.mxu0  ;;  %v3185_v48 = vpop.f32.mrf.mxu1  ;;  %v3579_v41 = vrot.slane %v3551_v1, %v6443_v34  ;;  %v6617_v17 = vadd.f32 %v6436_v25, %v3465_v37 }
 0x208   :  { %v2754_v10 = vadd.f32 %v4860_v18, %v6316_v3  ;;  %3990 = vst.msk [vmem:[%s6863_s4 + $0x98] sm:$0xff] %vm3970_vm1, %v3925_v2  ;;  %v3924_v58 = vmax.f32 %v3860_v36, 0.0  ;;  %v3863_v13 = vadd.f32 %v3725_v21, %v3192_v35  ;;  %v3186_v15 = vadd.f32 %v3185_v48, %v2736_v57 }
 0x209   :  { %v2747_v7 = vpop.f32.mrf.mxu0  ;;  %v4958_v23 = vpop.f32.mrf.mxu1  ;;  %v3737_v14 = vrot.slane %v3579_v41, %v6460_v0  ;;  %v3741_v18 = vrot.slane %v3581_v16, %v6460_v0  ;;  %v3583_v1 = vcombine.high %v3579_v41, %v3579_v41 }
 0x20a   :  { %v2748_v52 = vadd.f32 %v2747_v7, %v6322_v38  ;;  %3989 = vst.msk [vmem:[%s6863_s4 + $0x90] sm:$0xff] %vm3970_vm1, %v3924_v58  ;;  %v3927_v3 = vmax.f32 %v3863_v13, 0.0  ;;  %v3862_v8 = vadd.f32 %v3725_v21, %v3186_v15  ;;  %v3204_v24 = vadd.f32 %v4958_v23, %v2754_v10 }
 0x20b   :  { %v4863_v47 = vpop.f32.mrf.mxu0  ;;  %v3197_v62 = vpop.f32.mrf.mxu1  ;;  %v3591_v58 = vrot.slane %v6617_v17, %v6443_v34 }
 0x20c   :  { %v2766_v19 = vadd.f32 %v4863_v47, %v6326_v46  ;;  %3992 = vst.msk [vmem:[%s6863_s4 + $0xa8] sm:$0xff] %vm3970_vm1, %v3927_v3  ;;  %v3926_v38 = vmax.f32 %v3862_v8, 0.0  ;;  %v3865_v9 = vadd.f32 %v3729_v53, %v3204_v24  ;;  %v3198_v4 = vadd.f32 %v3197_v62, %v2748_v52 }
 0x20d   :  { %v2759_v31 = vpop.f32.mrf.mxu0  ;;  %v4961_v40 = vpop.f32.mrf.mxu1  ;;  %v3599_v3 = vcombine.high %v3591_v58, %v3591_v58  ;;  %v3745_v24 = vrot.slane %v3583_v1, %v6460_v0 }
 0x20e   :  { %v2760_v49 = vadd.f32 %v2759_v31, %v6332_v5  ;;  %3991 = vst.msk [vmem:[%s6863_s4 + $0xa0] sm:$0xff] %vm3970_vm1, %v3926_v38  ;;  %v3929_v46 = vmax.f32 %v3865_v9, 0.0  ;;  %v3864_v44 = vadd.f32 %v3729_v53, %v3198_v4  ;;  %v3216_v30 = vadd.f32 %v4961_v40, %v2766_v19 }
 0x20f   :  { %v4866_v56 = vpop.f32.mrf.mxu0  ;;  %v3209_v60 = vpop.f32.mrf.mxu1  ;;  %v3607_v19 = vrot.slane %v3591_v58, %v6443_v34  ;;  %v3621_v37 = vrot.slane %v3599_v3, %v6443_v34 }
 0x210   :  { %v2778_v12 = vadd.f32 %v4866_v56, %v6336_v59  ;;  %3994 = vst.msk [vmem:[%s6863_s4 + $0xb8] sm:$0xff] %vm3970_vm1, %v3929_v46  ;;  %v3928_v5 = vmax.f32 %v3864_v44, 0.0  ;;  %v3867_v63 = vadd.f32 %v3733_v33, %v3216_v30  ;;  %v3210_v11 = vadd.f32 %v3209_v60, %v2760_v49 }
 0x211   :  { %v2771_v29 = vpop.f32.mrf.mxu0  ;;  %v4964_v21 = vpop.f32.mrf.mxu1  ;;  %v3749_v56 = vrot.slane %v3607_v19, %v6460_v0 }
 0x212   :  { %v2772_v50 = vadd.f32 %v2771_v29, %v6342_v51  ;;  %3993 = vst.msk [vmem:[%s6863_s4 + $0xb0] sm:$0xff] %vm3970_vm1, %v3928_v5  ;;  %v3931_v59 = vmax.f32 %v3867_v63, 0.0  ;;  %v3866_v57 = vadd.f32 %v3733_v33, %v3210_v11  ;;  %v3228_v45 = vadd.f32 %v4964_v21, %v2778_v12 }
 0x213   :  { %v4869_v2 = vpop.f32.mrf.mxu0  ;;  %v3221_v35 = vpop.f32.mrf.mxu1  ;;  %v3584_v63 = vcombine.high %v6617_v17, %v6617_v17 }
 0x214   :  { %v2790_v36 = vadd.f32 %v4869_v2, %v6346_v39  ;;  %3996 = vst.msk [vmem:[%s6863_s4 + $0xc8] sm:$0xff] %vm3970_vm1, %v3931_v59  ;;  %v3930_v51 = vmax.f32 %v3866_v57, 0.0  ;;  %v3869_v10 = vadd.f32 %v3737_v14, %v3228_v45  ;;  %v3222_v48 = vadd.f32 %v3221_v35, %v2772_v50 }
 0x215   :  { %v2783_v53 = vpop.f32.mrf.mxu0  ;;  %v4967_v15 = vpop.f32.mrf.mxu1  ;;  %v3753_v50 = vrot.slane %v3621_v37, %v6460_v0  ;;  %v3629_v45 = vcombine.high %v3607_v19, %v3607_v19  ;;  %v3598_v1 = vrot.slane %v3584_v63, %v6443_v34 }
 0x216   :  { %v2784_v13 = vadd.f32 %v2783_v53, %v6351_v27  ;;  %3995 = vst.msk [vmem:[%s6863_s4 + $0xc0] sm:$0xff] %vm3970_vm1, %v3930_v51  ;;  %v3933_v39 = vmax.f32 %v3869_v10, 0.0  ;;  %v3868_v7 = vadd.f32 %v3737_v14, %v3222_v48  ;;  %v3240_v55 = vadd.f32 %v4967_v15, %v2790_v36 }
 0x217   :  { %v4872_v52 = vpop.f32.mrf.mxu0  ;;  %v3233_v8 = vpop.f32.mrf.mxu1  ;;  %v3631_v48 = vcombine.high %v3621_v37, %v3621_v37  ;;  %v3757_v15 = vrot.slane %v3629_v45, %v6460_v0  ;;  %v3600_v3 = vcombine.high %v3598_v1, %v3598_v1 }
 0x218   :  { %v2802_v23 = vadd.f32 %v4872_v52, %v6355_v32  ;;  %3998 = vst.msk [vmem:[%s6863_s4 + $0xd8] sm:$0xff] %vm3970_vm1, %v3933_v39  ;;  %v3932_v27 = vmax.f32 %v3868_v7, 0.0  ;;  %v3871_v47 = vadd.f32 %v3741_v18, %v3240_v55  ;;  %v3234_v62 = vadd.f32 %v3233_v8, %v2784_v13 }
 0x219   :  { %v2795_v41 = vpop.f32.mrf.mxu0  ;;  %v4970_v9 = vpop.f32.mrf.mxu1  ;;  %v3628_v37 = vrot.slane %v3600_v3, %v6443_v34 }
 0x21a   :  { %v2796_v38 = vadd.f32 %v2795_v41, %v6358_v28  ;;  %3997 = vst.msk [vmem:[%s6863_s4 + $0xd0] sm:$0xff] %vm3970_vm1, %v3932_v27  ;;  %v3935_v32 = vmax.f32 %v3871_v47, 0.0  ;;  %v3870_v4 = vadd.f32 %v3741_v18, %v3234_v62  ;;  %v3252_v31 = vadd.f32 %v4970_v9, %v2802_v23 }
 0x21b   :  { %v4875_v33 = vpop.f32.mrf.mxu0  ;;  %v3245_v40 = vpop.f32.mrf.mxu1  ;;  %v3761_v27 = vrot.slane %v3631_v48, %v6460_v0  ;;  %v3614_v41 = vrot.slane %v3598_v1, %v6443_v34  ;;  %v7378_v48 = vld [vmem:[#allocation8_spill] sm:$0xff] }
 0x21c   :  { %v2814_v49 = vadd.f32 %v4875_v33, %v6361_v61  ;;  %4000 = vst.msk [vmem:[%s6863_s4 + $0xe8] sm:$0xff] %vm3970_vm1, %v3935_v32  ;;  %v3934_v28 = vmax.f32 %v3870_v4, 0.0  ;;  %v3873_v46 = vadd.f32 %v3745_v24, %v3252_v31  ;;  %v3246_v44 = vadd.f32 %v3245_v40, %v2796_v38  ;;  %v7374_v33 = vld [vmem:[#allocation82_spill] sm:$0xff] }
 0x21d   :  { %v2807_v30 = vpop.f32.mrf.mxu0  ;;  %v4973_v60 = vpop.f32.mrf.mxu1 }
 0x21e   :  { %v2808_v12 = vadd.f32 %v2807_v30, %v6364_v42  ;;  %3999 = vst.msk [vmem:[%s6863_s4 + $0xe0] sm:$0xff] %vm3970_vm1, %v3934_v28  ;;  %v3937_v61 = vmax.f32 %v3873_v46, 0.0  ;;  %v3872_v14 = vadd.f32 %v3745_v24, %v3246_v44  ;;  %v3264_v16 = vadd.f32 %v4973_v60, %v2814_v49 }
 0x21f   :  { %v4878_v5 = vpop.f32.mrf.mxu0  ;;  %v3257_v29 = vpop.f32.mrf.mxu1  ;;  %v3765_v30 = vrot.slane %v3614_v41, %v6460_v0 }
 0x220   :  { %v2826_v11 = vadd.f32 %v4878_v5, %v6367_v22  ;;  %4002 = vst.msk [vmem:[%s6863_s4 + $0xf8] sm:$0xff] %vm3970_vm1, %v3937_v61  ;;  %v3936_v42 = vmax.f32 %v3872_v14, 0.0  ;;  %v3875_v21 = vadd.f32 %v3749_v56, %v3264_v16  ;;  %v3258_v59 = vadd.f32 %v3257_v29, %v2808_v12  ;;  %v3470_v61 = vpop.permute.xlu1 %3469 }
 0x221   :  { %v2819_v57 = vpop.f32.mrf.mxu0  ;;  %v4976_v36 = vpop.f32.mrf.mxu1 }
 0x222   :  { %v2820_v2 = vadd.f32 %v2819_v57, %v6370_v54  ;;  %4001 = vst.msk [vmem:[%s6863_s4 + $0xf0] sm:$0xff] %vm3970_vm1, %v3936_v42  ;;  %v3939_v22 = vmax.f32 %v3875_v21, 0.0  ;;  %v3874_v17 = vadd.f32 %v3749_v56, %v3258_v59  ;;  %v3276_v35 = vadd.f32 %v4976_v36, %v2826_v11  ;;  %v7375_v56 = vld [vmem:[#allocation5_spill] sm:$0xff]  ;;  %v7376_v11 = vld [vmem:[#allocation6_spill] sm:$0xff] }
 0x223   :  { %v4881_v18 = vpop.f32.mrf.mxu0  ;;  %v3269_v10 = vpop.f32.mrf.mxu1  ;;  %v3769_v42 = vrot.slane %v3628_v37, %v6460_v0  ;;  %v3630_v21 = vcombine.high %v3614_v41, %v3614_v41  ;;  %v6717_v36 = vadd.f32 %v6436_v25, %v3470_v61 }
 0x224   :  { %v2838_v51 = vadd.f32 %v4881_v18, %v6373_v6  ;;  %4004 = vst.msk [vmem:[%s6863_s4 + $0x108] sm:$0xff] %vm3970_vm1, %v3939_v22  ;;  %v3938_v54 = vmax.f32 %v3874_v17, 0.0  ;;  %v3877_v53 = vadd.f32 %v3753_v50, %v3276_v35  ;;  %v3270_v58 = vadd.f32 %v3269_v10, %v2820_v2  ;;  %v7377_v22 = vld [vmem:[#allocation7_spill] sm:$0xff] }
 0x225   :  { %v2831_v13 = vpop.f32.mrf.mxu0  ;;  %v4979_v7 = vpop.f32.mrf.mxu1 }
 0x226   :  { %v2832_v39 = vadd.f32 %v2831_v13, %v6376_v20  ;;  %4003 = vst.msk [vmem:[%s6863_s4 + $0x100] sm:$0xff] %vm3970_vm1, %v3938_v54  ;;  %v3941_v6 = vmax.f32 %v3877_v53, 0.0  ;;  %v3876_v55 = vadd.f32 %v3753_v50, %v3270_v58  ;;  %v3288_v52 = vadd.f32 %v4979_v7, %v2838_v51 }
 0x227   :  { %v4884_v23 = vpop.f32.mrf.mxu0  ;;  %v3281_v24 = vpop.f32.mrf.mxu1  ;;  %v3773_v58 = vrot.slane %v3630_v21, %v6460_v0  ;;  %v3632_v13 = vcombine.high %v3628_v37, %v3628_v37 }
 0x228   :  { %v2850_v8 = vadd.f32 %v4884_v23, %v6379_v43  ;;  %4006 = vst.msk [vmem:[%s6863_s4 + $0x118] sm:$0xff] %vm3970_vm1, %v3941_v6  ;;  %v3940_v20 = vmax.f32 %v3876_v55, 0.0  ;;  %v3879_v47 = vadd.f32 %v3757_v15, %v3288_v52  ;;  %v3282_v19 = vadd.f32 %v3281_v24, %v2832_v39  ;;  %v7379_v55 = vld [vmem:[#allocation9_spill] sm:$0xff] }
 0x229   :  { %v2843_v62 = vpop.f32.mrf.mxu0  ;;  %v4982_v9 = vpop.f32.mrf.mxu1  ;;  %v3640_v6 = vrot.slane %v6717_v36, %v6443_v34  ;;  %v3777_v41 = vrot.slane %v3632_v13, %v6460_v0 }
 0x22a   :  { %v2844_v38 = vadd.f32 %v2843_v62, %v6382_v26  ;;  %4005 = vst.msk [vmem:[%s6863_s4 + $0x110] sm:$0xff] %vm3970_vm1, %v3940_v20  ;;  %v3943_v43 = vmax.f32 %v3879_v47, 0.0  ;;  %v3878_v32 = vadd.f32 %v3757_v15, %v3282_v19  ;;  %v3300_v4 = vadd.f32 %v4982_v9, %v2850_v8  ;;  %v7380_v20 = vld [vmem:[#allocation10_spill] sm:$0xff] }
 0x22b   :  { %v4887_v31 = vpop.f32.mrf.mxu0  ;;  %v3293_v40 = vpop.f32.mrf.mxu1  ;;  %v3648_v19 = vcombine.high %v3640_v6, %v3640_v6 }
 0x22c   :  { %v2862_v49 = vadd.f32 %v4887_v31, %v7374_v33  ;;  %4008 = vst.msk [vmem:[%s6863_s4 + $0x128] sm:$0xff] %vm3970_vm1, %v3943_v43  ;;  %v3942_v26 = vmax.f32 %v3878_v32, 0.0  ;;  %v3881_v28 = vadd.f32 %v3761_v27, %v3300_v4  ;;  %v3294_v46 = vadd.f32 %v3293_v40, %v2844_v38  ;;  %v7381_v31 = vld [vmem:[#allocation11_spill] sm:$0xff] }
 0x22d   :  { %v2855_v44 = vpop.f32.mrf.mxu0  ;;  %v4985_v60 = vpop.f32.mrf.mxu1  ;;  %v3656_v43 = vrot.slane %v3640_v6, %v6443_v34 }
 0x22e   :  { %v2856_v12 = vadd.f32 %v2855_v44, %v7375_v56  ;;  %4007 = vst.msk [vmem:[%s6863_s4 + $0x120] sm:$0xff] %vm3970_vm1, %v3942_v26  ;;  %v3945_v14 = vmax.f32 %v3881_v28, 0.0  ;;  %v3880_v16 = vadd.f32 %v3761_v27, %v3294_v46  ;;  %v3312_v5 = vadd.f32 %v4985_v60, %v2862_v49  ;;  %v7382_v46 = vld [vmem:[#allocation12_spill] sm:$0xff] }
 0x22f   :  { %v4890_v63 = vpop.f32.mrf.mxu0  ;;  %v3305_v50 = vpop.f32.mrf.mxu1  ;;  %v3670_v56 = vrot.slane %v3648_v19, %v6443_v34 }
 0x230   :  { %v2874_v29 = vadd.f32 %v4890_v63, %v7376_v11  ;;  %4010 = vst.msk [vmem:[%s6863_s4 + $0x138] sm:$0xff] %vm3970_vm1, %v3945_v14  ;;  %v3944_v59 = vmax.f32 %v3880_v16, 0.0  ;;  %v3883_v57 = vadd.f32 %v3765_v30, %v3312_v5  ;;  %v3306_v45 = vadd.f32 %v3305_v50, %v2856_v12  ;;  %v7383_v5 = vld [vmem:[#allocation13_spill] sm:$0xff] }
 0x231   :  { %v2867_v2 = vpop.f32.mrf.mxu0  ;;  %v4988_v35 = vpop.f32.mrf.mxu1  ;;  %v3781_v16 = vrot.slane %v3656_v43, %v6460_v0  ;;  %v3680_v6 = vcombine.high %v3670_v56, %v3670_v56 }
 0x232   :  { %v2868_v17 = vadd.f32 %v2867_v2, %v7377_v22  ;;  %4009 = vst.msk [vmem:[%s6863_s4 + $0x130] sm:$0xff] %vm3970_vm1, %v3944_v59  ;;  %v3947_v18 = vmax.f32 %v3883_v57, 0.0  ;;  %v3882_v1 = vadd.f32 %v3765_v30, %v3306_v45  ;;  %v3324_v51 = vadd.f32 %v4988_v35, %v2874_v29  ;;  %v7384_v57 = vld [vmem:[#allocation14_spill] sm:$0xff] }
 0x233   :  { %v4893_v10 = vpop.f32.mrf.mxu0  ;;  %v3317_v53 = vpop.f32.mrf.mxu1  ;;  %v3633_v59 = vcombine.high %v6717_v36, %v6717_v36  ;;  %v3785_v22 = vrot.slane %v3670_v56, %v6460_v0 }
 0x234   :  { %v2886_v54 = vadd.f32 %v4893_v10, %v7378_v48  ;;  %4012 = vst.msk [vmem:[%s6863_s4 + $0x148] sm:$0xff] %vm3970_vm1, %v3947_v18  ;;  %v3946_v25 = vmax.f32 %v3882_v1, 0.0  ;;  %v3885_v15 = vadd.f32 %v3769_v42, %v3324_v51  ;;  %v3318_v39 = vadd.f32 %v3317_v53, %v2868_v17  ;;  %v7385_v10 = vld [vmem:[#allocation15_spill] sm:$0xff] }
 0x235   :  { %v2879_v7 = vpop.f32.mrf.mxu0  ;;  %v4991_v23 = vpop.f32.mrf.mxu1  ;;  %v3678_v51 = vcombine.high %v3656_v43, %v3656_v43 }
 0x236   :  { %v2880_v52 = vadd.f32 %v2879_v7, %v7379_v55  ;;  %4011 = vst.msk [vmem:[%s6863_s4 + $0x140] sm:$0xff] %vm3970_vm1, %v3946_v25  ;;  %v3949_v3 = vmax.f32 %v3885_v15, 0.0  ;;  %v3884_v8 = vadd.f32 %v3769_v42, %v3318_v39  ;;  %v3336_v24 = vadd.f32 %v4991_v23, %v2886_v54  ;;  %v7386_v15 = vld [vmem:[#allocation16_spill] sm:$0xff] }
 0x237   :  { %v4896_v27 = vpop.f32.mrf.mxu0  ;;  %v3329_v62 = vpop.f32.mrf.mxu1  ;;  %v3647_v25 = vrot.slane %v3633_v59, %v6443_v34 }
 0x238   :  { %v2898_v47 = vadd.f32 %v4896_v27, %v7380_v20  ;;  %4014 = vst.msk [vmem:[%s6863_s4 + $0x158] sm:$0xff] %vm3970_vm1, %v3949_v3  ;;  %v3948_v38 = vmax.f32 %v3884_v8, 0.0  ;;  %v3887_v9 = vadd.f32 %v3773_v58, %v3336_v24  ;;  %v3330_v32 = vadd.f32 %v3329_v62, %v2880_v52  ;;  %v7387_v24 = vld [vmem:[#allocation17_spill] sm:$0xff] }
 0x239   :  { %v2891_v4 = vpop.f32.mrf.mxu0  ;;  %v4994_v49 = vpop.f32.mrf.mxu1  ;;  %v3789_v8 = vrot.slane %v3678_v51, %v6460_v0 }
 0x23a   :  { %v2892_v33 = vadd.f32 %v2891_v4, %v7381_v31  ;;  %4013 = vst.msk [vmem:[%s6863_s4 + $0x150] sm:$0xff] %vm3970_vm1, %v3948_v38  ;;  %v3951_v40 = vmax.f32 %v3887_v9, 0.0  ;;  %v3886_v37 = vadd.f32 %v3773_v58, %v3330_v32  ;;  %v3348_v26 = vadd.f32 %v4994_v49, %v2898_v47  ;;  %v7388_v9 = vld [vmem:[#allocation18_spill] sm:$0xff] }
 0x23b   :  { %v4899_v28 = vpop.f32.mrf.mxu0  ;;  %v3341_v30 = vpop.f32.mrf.mxu1  ;;  %v3649_v38 = vcombine.high %v3647_v25, %v3647_v25  ;;  %v3793_v4 = vrot.slane %v3680_v6, %v6460_v0 }
 0x23c   :  { %v2910_v44 = vadd.f32 %v4899_v28, %v7382_v46  ;;  %4016 = vst.msk [vmem:[%s6863_s4 + $0x168] sm:$0xff] %vm3970_vm1, %v3951_v40  ;;  %v3950_v12 = vmax.f32 %v3886_v37, 0.0  ;;  %v3889_v60 = vadd.f32 %v3777_v41, %v3348_v26  ;;  %v3342_v61 = vadd.f32 %v3341_v30, %v2892_v33  ;;  %v7389_v26 = vld [vmem:[#allocation19_spill] sm:$0xff] }
 0x23d   :  { %v2903_v14 = vpop.f32.mrf.mxu0  ;;  %v4997_v11 = vpop.f32.mrf.mxu1  ;;  %v3663_v37 = vrot.slane %v3647_v25, %v6443_v34 }
 0x23e   :  { %v2904_v63 = vadd.f32 %v2903_v14, %v7383_v5  ;;  %4015 = vst.msk [vmem:[%s6863_s4 + $0x160] sm:$0xff] %vm3970_vm1, %v3950_v12  ;;  %v3953_v29 = vmax.f32 %v3889_v60, 0.0  ;;  %v3888_v50 = vadd.f32 %v3777_v41, %v3342_v61  ;;  %v3360_v42 = vadd.f32 %v4997_v11, %v2910_v44  ;;  %v7390_v60 = vld [vmem:[#allocation20_spill] sm:$0xff] }
 0x23f   :  { %v4902_v21 = vpop.f32.mrf.mxu0  ;;  %v3353_v2 = vpop.f32.mrf.mxu1 }
 0x240   :  { %v2922_v45 = vadd.f32 %v4902_v21, %v7384_v57  ;;  %4018 = vst.msk [vmem:[%s6863_s4 + $0x178] sm:$0xff] %vm3970_vm1, %v3953_v29  ;;  %v3952_v17 = vmax.f32 %v3888_v50, 0.0  ;;  %v3891_v35 = vadd.f32 %v3781_v16, %v3360_v42  ;;  %v3354_v18 = vadd.f32 %v3353_v2, %v2904_v63  ;;  %v7391_v42 = vld [vmem:[#allocation21_spill] sm:$0xff] }
 0x241   :  { %v2915_v1 = vpop.f32.mrf.mxu0  ;;  %v5000_v54 = vpop.f32.mrf.mxu1  ;;  %v3797_v50 = vrot.slane %v3663_v37, %v6460_v0 }
 0x242   :  { %v2916_v48 = vadd.f32 %v2915_v1, %v7385_v10  ;;  %4017 = vst.msk [vmem:[%s6863_s4 + $0x170] sm:$0xff] %vm3970_vm1, %v3952_v17  ;;  %v3955_v36 = vmax.f32 %v3891_v35, 0.0  ;;  %v3890_v53 = vadd.f32 %v3781_v16, %v3354_v18  ;;  %v3372_v58 = vadd.f32 %v5000_v54, %v2922_v45 }
 0x243   :  { %v4905_v13 = vpop.f32.mrf.mxu0  ;;  %v3365_v7 = vpop.f32.mrf.mxu1  ;;  %v3677_v16 = vrot.slane %v3649_v38, %v6443_v34  ;;  %v3679_v54 = vcombine.high %v3663_v37, %v3663_v37  ;;  %v7397_v37 = vld [vmem:[#allocation27_spill] sm:$0xff] }
 0x244   :  { %v2934_v39 = vadd.f32 %v4905_v13, %v7386_v15  ;;  %4020 = vst.msk [vmem:[%s6863_s4 + $0x188] sm:$0xff] %vm3970_vm1, %v3955_v36  ;;  %v3954_v55 = vmax.f32 %v3890_v53, 0.0  ;;  %v3893_v52 = vadd.f32 %v3785_v22, %v3372_v58  ;;  %v3366_v23 = vadd.f32 %v3365_v7, %v2916_v48  ;;  %v7393_v36 = vld [vmem:[#allocation23_spill] sm:$0xff]  ;;  %v7394_v7 = vld [vmem:[#allocation24_spill] sm:$0xff] }
 0x245   :  { %v2927_v3 = vpop.f32.mrf.mxu0  ;;  %v5003_v20 = vpop.f32.mrf.mxu1  ;;  %v3801_v18 = vrot.slane %v3677_v16, %v6460_v0 }
 0x246   :  { %v2928_v27 = vadd.f32 %v2927_v3, %v7387_v24  ;;  %4019 = vst.msk [vmem:[%s6863_s4 + $0x180] sm:$0xff] %vm3970_vm1, %v3954_v55  ;;  %v3957_v47 = vmax.f32 %v3893_v52, 0.0  ;;  %v3892_v19 = vadd.f32 %v3785_v22, %v3366_v23  ;;  %v3384_v62 = vadd.f32 %v5003_v20, %v2934_v39  ;;  %v7392_v22 = vld [vmem:[#allocation22_spill] sm:$0xff] }
 0x247   :  { %v4908_v41 = vpop.f32.mrf.mxu0  ;;  %v3377_v32 = vpop.f32.mrf.mxu1  ;;  %v3805_v24 = vrot.slane %v3679_v54, %v6460_v0 }
 0x248   :  { %v2946_v43 = vadd.f32 %v4908_v41, %v7388_v9  ;;  %4022 = vst.msk [vmem:[%s6863_s4 + $0x198] sm:$0xff] %vm3970_vm1, %v3957_v47  ;;  %v3956_v31 = vmax.f32 %v3892_v19, 0.0  ;;  %v3895_v33 = vadd.f32 %v3789_v8, %v3384_v62  ;;  %v3378_v49 = vadd.f32 %v3377_v32, %v2928_v27  ;;  %v7395_v27 = vld [vmem:[#allocation25_spill] sm:$0xff] }
 0x249   :  { %v2939_v40 = vpop.f32.mrf.mxu0  ;;  %v5006_v46 = vpop.f32.mrf.mxu1  ;;  %v3681_v9 = vcombine.high %v3677_v16, %v3677_v16 }
 0x24a   :  { %v2940_v28 = vadd.f32 %v2939_v40, %v7389_v26  ;;  %4021 = vst.msk [vmem:[%s6863_s4 + $0x190] sm:$0xff] %vm3970_vm1, %v3956_v31  ;;  %v3959_v44 = vmax.f32 %v3895_v33, 0.0  ;;  %v3894_v30 = vadd.f32 %v3789_v8, %v3378_v49  ;;  %v3396_v56 = vadd.f32 %v5006_v46, %v2946_v43  ;;  %v7396_v43 = vld [vmem:[#allocation26_spill] sm:$0xff] }
 0x24b   :  { %v4911_v12 = vpop.f32.mrf.mxu0  ;;  %v3389_v14 = vpop.f32.mrf.mxu1 }
 0x24c   :  { %v2958_v61 = vadd.f32 %v4911_v12, %v7390_v60  ;;  %4024 = vst.msk [vmem:[%s6863_s4 + $0x1a8] sm:$0xff] %vm3970_vm1, %v3959_v44  ;;  %v3958_v5 = vmax.f32 %v3894_v30, 0.0  ;;  %v3897_v63 = vadd.f32 %v3793_v4, %v3396_v56  ;;  %v3390_v11 = vadd.f32 %v3389_v14, %v2940_v28 }
 0x24d   :  { %v2951_v29 = vpop.f32.mrf.mxu0  ;;  %v5009_v59 = vpop.f32.mrf.mxu1  ;;  %v3809_v56 = vrot.slane %v3681_v9, %v6460_v0 }
 0x24e   :  { %v2952_v21 = vadd.f32 %v2951_v29, %v7391_v42  ;;  %4023 = vst.msk [vmem:[%s6863_s4 + $0x1a0] sm:$0xff] %vm3970_vm1, %v3958_v5  ;;  %v3961_v34 = vmax.f32 %v3897_v63, 0.0  ;;  %v3896_v57 = vadd.f32 %v3793_v4, %v3390_v11  ;;  %v3408_v45 = vadd.f32 %v5009_v59, %v2958_v61 }
 0x24f   :  { %v4914_v2 = vpop.f32.mrf.mxu0  ;;  %v3401_v35 = vpop.f32.mrf.mxu1 }
 0x250   :  { %v2970_v17 = vadd.f32 %v4914_v2, %v7392_v22  ;;  %4026 = vst.msk [vmem:[%s6863_s4 + $0x1b8] sm:$0xff] %vm3970_vm1, %v3961_v34  ;;  %v3960_v1 = vmax.f32 %v3896_v57, 0.0  ;;  %v3899_v51 = vadd.f32 %v3797_v50, %v3408_v45  ;;  %v3402_v10 = vadd.f32 %v3401_v35, %v2952_v21 }
 0x251   :  { %v2963_v48 = vpop.f32.mrf.mxu0  ;;  %v5012_v58 = vpop.f32.mrf.mxu1 }
 0x252   :  { %v2964_v53 = vadd.f32 %v2963_v48, %v7393_v36  ;;  %4025 = vst.msk [vmem:[%s6863_s4 + $0x1b0] sm:$0xff] %vm3970_vm1, %v3960_v1  ;;  %v3963_v13 = vmax.f32 %v3899_v51, 0.0  ;;  %v3898_v25 = vadd.f32 %v3797_v50, %v3402_v10  ;;  %v3420_v15 = vadd.f32 %v5012_v58, %v2970_v17 }
 0x253   :  { %v4917_v39 = vpop.f32.mrf.mxu0  ;;  %v3413_v55 = vpop.f32.mrf.mxu1 }
 0x254   :  { %v2982_v6 = vadd.f32 %v4917_v39, %v7394_v7  ;;  %4028 = vst.msk [vmem:[%s6863_s4 + $0x1c8] sm:$0xff] %vm3970_vm1, %v3963_v13  ;;  %v3962_v52 = vmax.f32 %v3898_v25, 0.0  ;;  %v3901_v23 = vadd.f32 %v3801_v18, %v3420_v15  ;;  %v3414_v3 = vadd.f32 %v3413_v55, %v2964_v53 }
 0x255   :  { %v2975_v8 = vpop.f32.mrf.mxu0  ;;  %v5015_v47 = vpop.f32.mrf.mxu1 }
 0x256   :  { %v2976_v20 = vadd.f32 %v2975_v8, %v7395_v27  ;;  %4027 = vst.msk [vmem:[%s6863_s4 + $0x1c0] sm:$0xff] %vm3970_vm1, %v3962_v52  ;;  %v3965_v19 = vmax.f32 %v3901_v23, 0.0  ;;  %v3900_v62 = vadd.f32 %v3801_v18, %v3414_v3  ;;  %v3432_v41 = vadd.f32 %v5015_v47, %v2982_v6 }
 0x257   :  { %v4920_v38 = vpop.f32.mrf.mxu0  ;;  %v3425_v4 = vpop.f32.mrf.mxu1 }
 0x258   :  { %v2994_v32 = vadd.f32 %v4920_v38, %v7396_v43  ;;  %4030 = vst.msk [vmem:[%s6863_s4 + $0x1d8] sm:$0xff] %vm3970_vm1, %v3965_v19  ;;  %v3964_v31 = vmax.f32 %v3900_v62, 0.0  ;;  %v3903_v33 = vadd.f32 %v3805_v24, %v3432_v41  ;;  %v3426_v49 = vadd.f32 %v3425_v4, %v2976_v20 }
 0x259   :  { %v2987_v40 = vpop.f32.mrf.mxu0  ;;  %v5018_v28 = vpop.f32.mrf.mxu1 }
 0x25a   :  { %v2988_v26 = vadd.f32 %v2987_v40, %v7397_v37  ;;  %4029 = vst.msk [vmem:[%s6863_s4 + $0x1d0] sm:$0xff] %vm3970_vm1, %v3964_v31  ;;  %v3967_v46 = vmax.f32 %v3903_v33, 0.0  ;;  %v3902_v44 = vadd.f32 %v3805_v24, %v3426_v49  ;;  %v3444_v30 = vadd.f32 %v5018_v28, %v2994_v32 }
 0x25b   :  { %v3437_v12 = vpop.f32.mrf.mxu1 }
 0x25c   :  { %4032 = vst.msk [vmem:[%s6863_s4 + $0x1e8] sm:$0xff] %vm3970_vm1, %v3967_v46  ;;  %v3966_v60 = vmax.f32 %v3902_v44, 0.0  ;;  %v3905_v61 = vadd.f32 %v3809_v56, %v3444_v30  ;;  %v3438_v14 = vadd.f32 %v3437_v12, %v2988_v26 }
 0x25e   :  { %4031 = vst.msk [vmem:[%s6863_s4 + $0x1e0] sm:$0xff] %vm3970_vm1, %v3966_v60  ;;  %v3969_v16 = vmax.f32 %v3905_v61, 0.0  ;;  %v3904_v5 = vadd.f32 %v3809_v56, %v3438_v14 }
 0x260   :  { %4034 = vst.msk [vmem:[%s6863_s4 + $0x1f8] sm:$0xff] %vm3970_vm1, %v3969_v16  ;;  %v3968_v0 = vmax.f32 %v3904_v5, 0.0 }
 0x262   :  { %4033 = vst.msk [vmem:[%s6863_s4 + $0x1f0] sm:$0xff] %vm3970_vm1, %v3968_v0 }
 0x263   :  { %4039 = vsyncpa [#allocation3], 1 }

</bundles_post_ra>
